<compile_context>
chip_gen: v7x
topology: tpu7x:2x2x1
jax: 0.10.0
libtpu: 0.0.40
codegen_flags: <defaults>
</compile_context>

<pallas_src>
import functools

import jax
import jax.numpy as jnp
from jax import lax
from jax.experimental import pallas as pl
from jax.experimental.pallas import tpu as pltpu

LANES = 128       # lane width of layer-1/2 activations and packed weight columns
OUT_LANES = 8     # final output channel padding (Cout=3 -> 8)


def _round_up(x, m):
    return ((x + m - 1) // m) * m


def _cdiv(a, b):
    return -(-a // b)


# ---------------------------------------------------------------------------
# Kernel: fused conv1(im2col matmul) -> relu -> conv2 -> relu -> conv3
# for ONE (batch, row-strip) grid point.  All activations stay in VMEM.
# ---------------------------------------------------------------------------
def _fused_cnn_kernel(p_ref, w1_ref, b1_ref, w2_ref, b2_ref, w3_ref, b3_ref,
                      o_ref, a1_ref, a2_ref, *, width, m2, m3, out_lanes):
    """
    p_ref : (m1, K1)       layer-1 im2col patches (K1 = 9*3 padded to 32)
    w1_ref: (K1, 128)      layer-1 weights (tap-major, cin-minor; cout padded)
    wN_ref: (9*128, 128)   layers 2/3 weights, row = tap*128 + cin(padded)
    bN_ref: (1, 128)       padded biases (kept f32)
    o_ref : (m3, 8)        final output, channels padded 3 -> 8
    a1_ref: (m1, 128)      VMEM scratch: layer-1 activation (flat rows x channels)
    a2_ref: (m2, 128)      VMEM scratch: layer-2 activation
    `width` is the padded row pitch (multiple of 8), so kh*width is sublane-aligned.
    """
    # ---- layer 1: single matmul, K = 32 (27 real rows) -------------------
    y1 = jnp.dot(p_ref[...], w1_ref[...], preferred_element_type=jnp.float32)
    y1 = jnp.maximum(y1 + b1_ref[...], 0.0)
    a1_ref[...] = y1.astype(a1_ref.dtype)

    # ---- layers 2/3: 9 accumulated per-tap matmuls (no patch concat) -----
    def conv3x3(src_ref, w_ref, b_ref, m_out):
        acc = None
        for kh in range(3):
            base = kh * width                      # multiple of 8 -> aligned slab
            for kw in range(3):
                tap = kh * 3 + kw
                d = jnp.dot(src_ref[pl.ds(base + kw, m_out), :],
                            w_ref[pl.ds(tap * LANES, LANES), :],
                            preferred_element_type=jnp.float32)
                acc = d if acc is None else acc + d
        return acc + b_ref[...]

    y2 = jnp.maximum(conv3x3(a1_ref, w2_ref, b2_ref, m2), 0.0)
    a2_ref[...] = y2.astype(a2_ref.dtype)

    y3 = conv3x3(a2_ref, w3_ref, b3_ref, m3)
    o_ref[...] = y3[:, :out_lanes].astype(o_ref.dtype)


# ---------------------------------------------------------------------------
# One-time parameter packing (outside the hot path)
# ---------------------------------------------------------------------------
def _pack_conv1(w_oihw, b):
    """(64,3,3,3)+(64,) -> im2col layout (round_up(27,8)=32, 128) and (1,128)."""
    cout, cin, kh, kw = w_oihw.shape
    assert kh == 3 and kw == 3
    k1 = _round_up(9 * cin, 8)
    w = jnp.transpose(w_oihw, (2, 3, 1, 0)).reshape(9 * cin, cout)   # row=tap*cin+c
    w = jnp.pad(w, ((0, k1 - 9 * cin), (0, LANES - cout))).astype(jnp.float32)
    b = jnp.pad(b, (0, LANES - cout)).reshape(1, LANES).astype(jnp.float32)
    return w, b


def _pack_conv(w_oihw, b):
    """(Cout,Cin,3,3)+(Cout,) -> (9*128, 128) tap-major / cin-padded and (1,128)."""
    cout, cin, kh, kw = w_oihw.shape
    assert kh == 3 and kw == 3
    w = jnp.transpose(w_oihw, (2, 3, 1, 0))                           # (3,3,Cin,Cout)
    w = jnp.pad(w, ((0, 0), (0, 0), (0, LANES - cin), (0, LANES - cout)))
    w = w.reshape(9 * LANES, LANES).astype(jnp.float32)
    b = jnp.pad(b, (0, LANES - cout)).reshape(1, LANES).astype(jnp.float32)
    return w, b


def prepare_params(params):
    w1, b1 = _pack_conv1(params["w1"], params["b1"])
    w2, b2 = _pack_conv(params["w2"], params["b2"])
    w3, b3 = _pack_conv(params["w3"], params["b3"])
    return {"w1": w1, "b1": b1, "w2": w2, "b2": b2, "w3": w3, "b3": b3}


# ---------------------------------------------------------------------------
# Strip-height selection (VMEM budget; also keeps both v7x TCs busy at B=1)
# ---------------------------------------------------------------------------
def _pick_strip_rows(h_out, w_pad, batch, act_itemsize, k1,
                     max_strip_rows=None, budget_bytes=36 * 1024 * 1024):
    def vmem_need(sh):
        m3 = sh * w_pad
        m2 = m3 + 2 * w_pad + 2
        m1 = _round_up(m2 + 2 * w_pad + 2, 8)
        patch_in = 2 * m1 * k1 * act_itemsize              # double-buffered input
        out_blk = 2 * m3 * OUT_LANES * 4                   # double-buffered output
        scratch = (m1 + m2) * LANES * act_itemsize         # a1 + a2
        weights = 2 * ((k1 + 18 * LANES) * LANES * act_itemsize + 3 * LANES * 4)
        return patch_in + out_blk + scratch + weights

    sh = max(1, h_out)
    while sh > 1 and vmem_need(sh) > budget_bytes:
        sh -= 1
    if batch * _cdiv(h_out, sh) < 2 and h_out >= 2:        # keep 2nd v7x TC busy
        sh = _cdiv(h_out, 2)
    if max_strip_rows is not None:
        sh = max(1, min(sh, max_strip_rows))
    return sh


# ---------------------------------------------------------------------------
# Forward pass (matches Simple.forward: NCHW (B,3,H,W) -> NCHW (B,3,H-6,W-6))
# ---------------------------------------------------------------------------
@functools.partial(jax.jit, static_argnames=("use_bf16", "max_strip_rows"))
def simple_forward(x_nchw, packed, *, use_bf16=False, max_strip_rows=None):
    B, cin, H, W = x_nchw.shape
    assert cin == 3 and H >= 7 and W >= 7
    h_out, w_out = H - 6, W - 6
    w_pad = _round_up(W, 8)                       # padded row pitch (sublane aligned)
    compute_dtype = jnp.bfloat16 if use_bf16 else jnp.float32
    k1 = packed["w1"].shape[0]                    # 32

    sh = _pick_strip_rows(h_out, w_pad, B, jnp.dtype(compute_dtype).itemsize, k1,
                          max_strip_rows=max_strip_rows)
    n_strips = _cdiv(h_out, sh)
    h_out_pad = n_strips * sh

    # Per-strip flat row counts (3x3 VALID layer needs 2*pitch + 2 extra rows).
    m3 = sh * w_pad
    m2 = m3 + 2 * w_pad + 2
    m1 = _round_up(m2 + 2 * w_pad + 2, 8)
    src_len = m1 + 2 * w_pad + 2
    m0 = (n_strips - 1) * sh * w_pad + src_len    # flat input rows needed overall

    # NCHW -> flat (B, m0, 3) with padded row pitch and zero row padding.
    x = jnp.transpose(x_nchw, (0, 2, 3, 1)).astype(jnp.float32)        # (B,H,W,3)
    x = jnp.pad(x, ((0, 0), (0, 0), (0, w_pad - W), (0, 0)))           # (B,H,Wp,3)
    x = x.reshape(B, H * w_pad, cin)
    x = jnp.pad(x, ((0, 0), (0, max(0, m0 - H * w_pad)), (0, 0)))      # (B,m0,3)

    # Layer-1 im2col in XLA: (B, n_strips, m1, 27 -> k1).  Cheap slices + concat.
    strips = jnp.stack(
        [x[:, s * sh * w_pad: s * sh * w_pad + src_len, :] for s in range(n_strips)],
        axis=1)                                                        # (B,S,src,3)
    pieces = []
    for kh in range(3):
        for kw in range(3):
            off = kh * w_pad + kw
            pieces.append(strips[:, :, off:off + m1, :])
    patch = jnp.concatenate(pieces, axis=-1)                           # (B,S,m1,27)
    patch = jnp.pad(patch, ((0, 0), (0, 0), (0, 0), (0, k1 - 9 * cin)))
    patch = patch.astype(compute_dtype)

    w1 = packed["w1"].astype(compute_dtype)
    w2 = packed["w2"].astype(compute_dtype)
    w3 = packed["w3"].astype(compute_dtype)
    b1, b2, b3 = packed["b1"], packed["b2"], packed["b3"]              # f32 biases

    kernel = functools.partial(_fused_cnn_kernel, width=w_pad, m2=m2, m3=m3,
                               out_lanes=OUT_LANES)

    out_flat = pl.pallas_call(
        kernel,
        out_shape=jax.ShapeDtypeStruct((B, n_strips, m3, OUT_LANES), jnp.float32),
        grid_spec=pltpu.PrefetchScalarGridSpec(
            num_scalar_prefetch=0,
            grid=(B, n_strips),
            in_specs=[
                pl.BlockSpec((None, None, m1, k1), lambda b, s: (b, s, 0, 0)),
                pl.BlockSpec((k1, LANES), lambda b, s: (0, 0)),          # w1
                pl.BlockSpec((1, LANES), lambda b, s: (0, 0)),           # b1
                pl.BlockSpec((9 * LANES, LANES), lambda b, s: (0, 0)),   # w2
                pl.BlockSpec((1, LANES), lambda b, s: (0, 0)),           # b2
                pl.BlockSpec((9 * LANES, LANES), lambda b, s: (0, 0)),   # w3
                pl.BlockSpec((1, LANES), lambda b, s: (0, 0)),           # b3
            ],
            out_specs=pl.BlockSpec((None, None, m3, OUT_LANES),
                                   lambda b, s: (b, s, 0, 0)),
            scratch_shapes=[
                pltpu.VMEM((m1, LANES), compute_dtype),   # layer-1 activation
                pltpu.VMEM((m2, LANES), compute_dtype),   # layer-2 activation
            ],
        ),
        compiler_params=pltpu.CompilerParams(
            dimension_semantics=("parallel", "parallel"),
            vmem_limit_bytes=48 * 1024 * 1024,
        ),
    )(patch, w1, b1, w2, b2, w3, b3)

    # (B, S, sh*w_pad, 8) -> (B, H_out_pad, w_pad, 8) -> valid NCHW region.
    out = out_flat.reshape(B, h_out_pad, w_pad, OUT_LANES)
    out = out[:, :h_out, :w_out, :3]
    return jnp.transpose(out, (0, 3, 1, 2))


# ---------------------------------------------------------------------------
# Init + pure-JAX reference + self-check
# ---------------------------------------------------------------------------
def init_params(key):
    """Deterministic parameter init (PyTorch layout: Cout, Cin, KH, KW)."""
    keys = jax.random.split(key, 6)

    def conv_params(kw_key, b_key, cin, cout):
        fan_in = cin * 3 * 3
        scale = 1.0 / jnp.sqrt(fan_in)
        w = jax.random.uniform(kw_key, (cout, cin, 3, 3),
                               minval=-scale, maxval=scale, dtype=jnp.float32)
        b = jax.random.uniform(b_key, (cout,),
                               minval=-scale, maxval=scale, dtype=jnp.float32)
        return w, b

    w1, b1 = conv_params(keys[0], keys[1], 3, 64)
    w2, b2 = conv_params(keys[2], keys[3], 64, 64)
    w3, b3 = conv_params(keys[4], keys[5], 64, 3)
    return {"w1": w1, "b1": b1, "w2": w2, "b2": b2, "w3": w3, "b3": b3}


def _reference_forward(x_nchw, params):
    dn = ("NCHW", "OIHW", "NCHW")

    def conv(x, w, b):
        y = lax.conv_general_dilated(x, w, (1, 1), "VALID", dimension_numbers=dn)
        return y + b.reshape(1, -1, 1, 1)

    x = jnp.maximum(conv(x_nchw, params["w1"], params["b1"]), 0.0)
    x = jnp.maximum(conv(x, params["w2"], params["b2"]), 0.0)
    return conv(x, params["w3"], params["b3"])


if __name__ == "__main__":
    key = jax.random.PRNGKey(0)
    k_x, k_p = jax.random.split(key)

    x = jax.random.normal(k_x, (2, 3, 16, 16), dtype=jnp.float32)
    params = init_params(k_p)
    packed = prepare_params(params)          # one-time im2col weight repack

    ref = _reference_forward(x, params)

    # Default f32 path (single strip at this size).
    out = jax.block_until_ready(simple_forward(x, packed))
    assert out.shape == (2, 3, 10, 10), out.shape
    assert jnp.allclose(out, ref, atol=1e-4, rtol=1e-4), "f32 mismatch vs reference"

    # Forced multi-strip path (exercises the v7x row-strip grid axis).
    out_s = jax.block_until_ready(simple_forward(x, packed, max_strip_rows=4))
    assert jnp.allclose(out_s, ref, atol=1e-4, rtol=1e-4), "strip mismatch vs reference"

    # bf16-MXU path (tolerance-gated; 3-6x MXU throughput on bf16-native MXUs).
    out_bf = jax.block_until_ready(simple_forward(x, packed, use_bf16=True))
    assert jnp.allclose(out_bf, ref, atol=5e-2, rtol=5e-2), "bf16 mismatch vs reference"

    print("KERNEL_OK")
</pallas_src>

<mosaic_0001>
module attributes {stable_mosaic.version = 11 : i64} {
  func.func @_fused_cnn_kernel(%arg0: i32, %arg1: i32, %arg2: memref<1x1x232x32xf32, #tpu.memory_space<vmem>>, %arg3: memref<32x128xf32, #tpu.memory_space<vmem>>, %arg4: memref<1x128xf32, #tpu.memory_space<vmem>>, %arg5: memref<1152x128xf32, #tpu.memory_space<vmem>>, %arg6: memref<1x128xf32, #tpu.memory_space<vmem>>, %arg7: memref<1152x128xf32, #tpu.memory_space<vmem>>, %arg8: memref<1x128xf32, #tpu.memory_space<vmem>>, %arg9: memref<1x1x160x8xf32, #tpu.memory_space<vmem>>, %arg10: memref<232x128xf32, #tpu.memory_space<vmem>>, %arg11: memref<194x128xf32, #tpu.memory_space<vmem>>) attributes {dimension_semantics = [#tpu.dimension_semantics<parallel>, #tpu.dimension_semantics<parallel>], iteration_bounds = array<i64: 2, 1>, scalar_prefetch = 0 : i64, scratch_operands = 2 : i64, tpu.core_type = #tpu.core_type<tc>, window_params = [{transform_indices = @transform_0, window_bounds = array<i64: 1, 1, 232, 32>}, {pipeline_mode = #tpu.pipeline_mode<synchronous>, transform_indices = @transform_1, window_bounds = array<i64: 32, 128>}, {pipeline_mode = #tpu.pipeline_mode<synchronous>, transform_indices = @transform_2, window_bounds = array<i64: 1, 128>}, {pipeline_mode = #tpu.pipeline_mode<synchronous>, transform_indices = @transform_3, window_bounds = array<i64: 1152, 128>}, {pipeline_mode = #tpu.pipeline_mode<synchronous>, transform_indices = @transform_4, window_bounds = array<i64: 1, 128>}, {pipeline_mode = #tpu.pipeline_mode<synchronous>, transform_indices = @transform_5, window_bounds = array<i64: 1152, 128>}, {pipeline_mode = #tpu.pipeline_mode<synchronous>, transform_indices = @transform_6, window_bounds = array<i64: 1, 128>}, {transform_indices = @transform_7, window_bounds = array<i64: 1, 1, 160, 8>}]} {
    %c0 = arith.constant 0 : index
    %c0_0 = arith.constant 0 : index
    %c0_1 = arith.constant 0 : index
    %c0_2 = arith.constant 0 : index
    %0 = vector.load %arg2[%c0, %c0_0, %c0_1, %c0_2] : memref<1x1x232x32xf32, #tpu.memory_space<vmem>>, vector<1x1x232x32xf32>
    %1 = vector.shape_cast %0 : vector<1x1x232x32xf32> to vector<232x32xf32>
    %c0_3 = arith.constant 0 : index
    %c0_4 = arith.constant 0 : index
    %2 = vector.load %arg3[%c0_3, %c0_4] : memref<32x128xf32, #tpu.memory_space<vmem>>, vector<32x128xf32>
    %cst = arith.constant dense<0.000000e+00> : vector<232x128xf32>
    %3 = tpu.matmul %1, %2, %cst {dimension_numbers = #tpu.dot_dimension_numbers<[1], [0], [0], [1], [0, 0, 1, 1], [], []>} : vector<232x32xf32>, vector<32x128xf32>, vector<232x128xf32> -> vector<232x128xf32>
    %c0_5 = arith.constant 0 : index
    %c0_6 = arith.constant 0 : index
    %4 = vector.load %arg4[%c0_5, %c0_6] : memref<1x128xf32, #tpu.memory_space<vmem>>, vector<1x128xf32>
    %5 = vector.broadcast %4 : vector<1x128xf32> to vector<232x128xf32>
    %6 = arith.addf %3, %5 : vector<232x128xf32>
    %cst_7 = arith.constant 0.000000e+00 : f32
    %7 = vector.broadcast %cst_7 : f32 to vector<232x128xf32>
    %8 = arith.maximumf %6, %7 : vector<232x128xf32>
    %c0_8 = arith.constant 0 : index
    %c0_9 = arith.constant 0 : index
    %9 = vector.load %arg10[%c0_8, %c0_9] : memref<232x128xf32, #tpu.memory_space<vmem>>, vector<232x128xf32>
    tpu.vector_store %arg10[%c0_8, %c0_9], %8 {strides = array<i32>} : memref<232x128xf32, #tpu.memory_space<vmem>>, vector<232x128xf32>,
    %c0_10 = arith.constant 0 : index
    %c0_11 = arith.constant 0 : index
    %10 = vector.load %arg10[%c0_10, %c0_11] : memref<232x128xf32, #tpu.memory_space<vmem>>, vector<194x128xf32>
    %c0_12 = arith.constant 0 : index
    %c0_13 = arith.constant 0 : index
    %11 = vector.load %arg5[%c0_12, %c0_13] : memref<1152x128xf32, #tpu.memory_space<vmem>>, vector<128x128xf32>
    %cst_14 = arith.constant dense<0.000000e+00> : vector<194x128xf32>
    %12 = tpu.matmul %10, %11, %cst_14 {dimension_numbers = #tpu.dot_dimension_numbers<[1], [0], [0], [1], [0, 0, 1, 1], [], []>} : vector<194x128xf32>, vector<128x128xf32>, vector<194x128xf32> -> vector<194x128xf32>
    %c1 = arith.constant 1 : index
    %c0_15 = arith.constant 0 : index
    %13 = vector.load %arg10[%c1, %c0_15] : memref<232x128xf32, #tpu.memory_space<vmem>>, vector<194x128xf32>
    %c128 = arith.constant 128 : index
    %c0_16 = arith.constant 0 : index
    %14 = vector.load %arg5[%c128, %c0_16] : memref<1152x128xf32, #tpu.memory_space<vmem>>, vector<128x128xf32>
    %cst_17 = arith.constant dense<0.000000e+00> : vector<194x128xf32>
    %15 = tpu.matmul %13, %14, %cst_17 {dimension_numbers = #tpu.dot_dimension_numbers<[1], [0], [0], [1], [0, 0, 1, 1], [], []>} : vector<194x128xf32>, vector<128x128xf32>, vector<194x128xf32> -> vector<194x128xf32>
    %16 = arith.addf %12, %15 : vector<194x128xf32>
    %c2 = arith.constant 2 : index
    %c0_18 = arith.constant 0 : index
    %17 = vector.load %arg10[%c2, %c0_18] : memref<232x128xf32, #tpu.memory_space<vmem>>, vector<194x128xf32>
    %c256 = arith.constant 256 : index
    %c0_19 = arith.constant 0 : index
    %18 = vector.load %arg5[%c256, %c0_19] : memref<1152x128xf32, #tpu.memory_space<vmem>>, vector<128x128xf32>
    %cst_20 = arith.constant dense<0.000000e+00> : vector<194x128xf32>
    %19 = tpu.matmul %17, %18, %cst_20 {dimension_numbers = #tpu.dot_dimension_numbers<[1], [0], [0], [1], [0, 0, 1, 1], [], []>} : vector<194x128xf32>, vector<128x128xf32>, vector<194x128xf32> -> vector<194x128xf32>
    %20 = arith.addf %16, %19 : vector<194x128xf32>
    %c16 = arith.constant 16 : index
    %c0_21 = arith.constant 0 : index
    %21 = vector.load %arg10[%c16, %c0_21] : memref<232x128xf32, #tpu.memory_space<vmem>>, vector<194x128xf32>
    %c384 = arith.constant 384 : index
    %c0_22 = arith.constant 0 : index
    %22 = vector.load %arg5[%c384, %c0_22] : memref<1152x128xf32, #tpu.memory_space<vmem>>, vector<128x128xf32>
    %cst_23 = arith.constant dense<0.000000e+00> : vector<194x128xf32>
    %23 = tpu.matmul %21, %22, %cst_23 {dimension_numbers = #tpu.dot_dimension_numbers<[1], [0], [0], [1], [0, 0, 1, 1], [], []>} : vector<194x128xf32>, vector<128x128xf32>, vector<194x128xf32> -> vector<194x128xf32>
    %24 = arith.addf %20, %23 : vector<194x128xf32>
    %c17 = arith.constant 17 : index
    %c0_24 = arith.constant 0 : index
    %25 = vector.load %arg10[%c17, %c0_24] : memref<232x128xf32, #tpu.memory_space<vmem>>, vector<194x128xf32>
    %c512 = arith.constant 512 : index
    %c0_25 = arith.constant 0 : index
    %26 = vector.load %arg5[%c512, %c0_25] : memref<1152x128xf32, #tpu.memory_space<vmem>>, vector<128x128xf32>
    %cst_26 = arith.constant dense<0.000000e+00> : vector<194x128xf32>
    %27 = tpu.matmul %25, %26, %cst_26 {dimension_numbers = #tpu.dot_dimension_numbers<[1], [0], [0], [1], [0, 0, 1, 1], [], []>} : vector<194x128xf32>, vector<128x128xf32>, vector<194x128xf32> -> vector<194x128xf32>
    %28 = arith.addf %24, %27 : vector<194x128xf32>
    %c18 = arith.constant 18 : index
    %c0_27 = arith.constant 0 : index
    %29 = vector.load %arg10[%c18, %c0_27] : memref<232x128xf32, #tpu.memory_space<vmem>>, vector<194x128xf32>
    %c640 = arith.constant 640 : index
    %c0_28 = arith.constant 0 : index
    %30 = vector.load %arg5[%c640, %c0_28] : memref<1152x128xf32, #tpu.memory_space<vmem>>, vector<128x128xf32>
    %cst_29 = arith.constant dense<0.000000e+00> : vector<194x128xf32>
    %31 = tpu.matmul %29, %30, %cst_29 {dimension_numbers = #tpu.dot_dimension_numbers<[1], [0], [0], [1], [0, 0, 1, 1], [], []>} : vector<194x128xf32>, vector<128x128xf32>, vector<194x128xf32> -> vector<194x128xf32>
    %32 = arith.addf %28, %31 : vector<194x128xf32>
    %c32 = arith.constant 32 : index
    %c0_30 = arith.constant 0 : index
    %33 = vector.load %arg10[%c32, %c0_30] : memref<232x128xf32, #tpu.memory_space<vmem>>, vector<194x128xf32>
    %c768 = arith.constant 768 : index
    %c0_31 = arith.constant 0 : index
    %34 = vector.load %arg5[%c768, %c0_31] : memref<1152x128xf32, #tpu.memory_space<vmem>>, vector<128x128xf32>
    %cst_32 = arith.constant dense<0.000000e+00> : vector<194x128xf32>
    %35 = tpu.matmul %33, %34, %cst_32 {dimension_numbers = #tpu.dot_dimension_numbers<[1], [0], [0], [1], [0, 0, 1, 1], [], []>} : vector<194x128xf32>, vector<128x128xf32>, vector<194x128xf32> -> vector<194x128xf32>
    %36 = arith.addf %32, %35 : vector<194x128xf32>
    %c33 = arith.constant 33 : index
    %c0_33 = arith.constant 0 : index
    %37 = vector.load %arg10[%c33, %c0_33] : memref<232x128xf32, #tpu.memory_space<vmem>>, vector<194x128xf32>
    %c896 = arith.constant 896 : index
    %c0_34 = arith.constant 0 : index
    %38 = vector.load %arg5[%c896, %c0_34] : memref<1152x128xf32, #tpu.memory_space<vmem>>, vector<128x128xf32>
    %cst_35 = arith.constant dense<0.000000e+00> : vector<194x128xf32>
    %39 = tpu.matmul %37, %38, %cst_35 {dimension_numbers = #tpu.dot_dimension_numbers<[1], [0], [0], [1], [0, 0, 1, 1], [], []>} : vector<194x128xf32>, vector<128x128xf32>, vector<194x128xf32> -> vector<194x128xf32>
    %40 = arith.addf %36, %39 : vector<194x128xf32>
    %c34 = arith.constant 34 : index
    %c0_36 = arith.constant 0 : index
    %41 = vector.load %arg10[%c34, %c0_36] : memref<232x128xf32, #tpu.memory_space<vmem>>, vector<194x128xf32>
    %c1024 = arith.constant 1024 : index
    %c0_37 = arith.constant 0 : index
    %42 = vector.load %arg5[%c1024, %c0_37] : memref<1152x128xf32, #tpu.memory_space<vmem>>, vector<128x128xf32>
    %cst_38 = arith.constant dense<0.000000e+00> : vector<194x128xf32>
    %43 = tpu.matmul %41, %42, %cst_38 {dimension_numbers = #tpu.dot_dimension_numbers<[1], [0], [0], [1], [0, 0, 1, 1], [], []>} : vector<194x128xf32>, vector<128x128xf32>, vector<194x128xf32> -> vector<194x128xf32>
    %44 = arith.addf %40, %43 : vector<194x128xf32>
    %c0_39 = arith.constant 0 : index
    %c0_40 = arith.constant 0 : index
    %45 = vector.load %arg6[%c0_39, %c0_40] : memref<1x128xf32, #tpu.memory_space<vmem>>, vector<1x128xf32>
    %46 = vector.broadcast %45 : vector<1x128xf32> to vector<194x128xf32>
    %47 = arith.addf %44, %46 : vector<194x128xf32>
    %cst_41 = arith.constant 0.000000e+00 : f32
    %48 = vector.broadcast %cst_41 : f32 to vector<194x128xf32>
    %49 = arith.maximumf %47, %48 : vector<194x128xf32>
    %c0_42 = arith.constant 0 : index
    %c0_43 = arith.constant 0 : index
    %50 = vector.load %arg11[%c0_42, %c0_43] : memref<194x128xf32, #tpu.memory_space<vmem>>, vector<194x128xf32>
    tpu.vector_store %arg11[%c0_42, %c0_43], %49 {strides = array<i32>} : memref<194x128xf32, #tpu.memory_space<vmem>>, vector<194x128xf32>,
    %c0_44 = arith.constant 0 : index
    %c0_45 = arith.constant 0 : index
    %51 = vector.load %arg11[%c0_44, %c0_45] : memref<194x128xf32, #tpu.memory_space<vmem>>, vector<160x128xf32>
    %c0_46 = arith.constant 0 : index
    %c0_47 = arith.constant 0 : index
    %52 = vector.load %arg7[%c0_46, %c0_47] : memref<1152x128xf32, #tpu.memory_space<vmem>>, vector<128x128xf32>
    %cst_48 = arith.constant dense<0.000000e+00> : vector<160x128xf32>
    %53 = tpu.matmul %51, %52, %cst_48 {dimension_numbers = #tpu.dot_dimension_numbers<[1], [0], [0], [1], [0, 0, 1, 1], [], []>} : vector<160x128xf32>, vector<128x128xf32>, vector<160x128xf32> -> vector<160x128xf32>
    %c1_49 = arith.constant 1 : index
    %c0_50 = arith.constant 0 : index
    %54 = vector.load %arg11[%c1_49, %c0_50] : memref<194x128xf32, #tpu.memory_space<vmem>>, vector<160x128xf32>
    %c128_51 = arith.constant 128 : index
    %c0_52 = arith.constant 0 : index
    %55 = vector.load %arg7[%c128_51, %c0_52] : memref<1152x128xf32, #tpu.memory_space<vmem>>, vector<128x128xf32>
    %cst_53 = arith.constant dense<0.000000e+00> : vector<160x128xf32>
    %56 = tpu.matmul %54, %55, %cst_53 {dimension_numbers = #tpu.dot_dimension_numbers<[1], [0], [0], [1], [0, 0, 1, 1], [], []>} : vector<160x128xf32>, vector<128x128xf32>, vector<160x128xf32> -> vector<160x128xf32>
    %57 = arith.addf %53, %56 : vector<160x128xf32>
    %c2_54 = arith.constant 2 : index
    %c0_55 = arith.constant 0 : index
    %58 = vector.load %arg11[%c2_54, %c0_55] : memref<194x128xf32, #tpu.memory_space<vmem>>, vector<160x128xf32>
    %c256_56 = arith.constant 256 : index
    %c0_57 = arith.constant 0 : index
    %59 = vector.load %arg7[%c256_56, %c0_57] : memref<1152x128xf32, #tpu.memory_space<vmem>>, vector<128x128xf32>
    %cst_58 = arith.constant dense<0.000000e+00> : vector<160x128xf32>
    %60 = tpu.matmul %58, %59, %cst_58 {dimension_numbers = #tpu.dot_dimension_numbers<[1], [0], [0], [1], [0, 0, 1, 1], [], []>} : vector<160x128xf32>, vector<128x128xf32>, vector<160x128xf32> -> vector<160x128xf32>
    %61 = arith.addf %57, %60 : vector<160x128xf32>
    %c16_59 = arith.constant 16 : index
    %c0_60 = arith.constant 0 : index
    %62 = vector.load %arg11[%c16_59, %c0_60] : memref<194x128xf32, #tpu.memory_space<vmem>>, vector<160x128xf32>
    %c384_61 = arith.constant 384 : index
    %c0_62 = arith.constant 0 : index
    %63 = vector.load %arg7[%c384_61, %c0_62] : memref<1152x128xf32, #tpu.memory_space<vmem>>, vector<128x128xf32>
    %cst_63 = arith.constant dense<0.000000e+00> : vector<160x128xf32>
    %64 = tpu.matmul %62, %63, %cst_63 {dimension_numbers = #tpu.dot_dimension_numbers<[1], [0], [0], [1], [0, 0, 1, 1], [], []>} : vector<160x128xf32>, vector<128x128xf32>, vector<160x128xf32> -> vector<160x128xf32>
    %65 = arith.addf %61, %64 : vector<160x128xf32>
    %c17_64 = arith.constant 17 : index
    %c0_65 = arith.constant 0 : index
    %66 = vector.load %arg11[%c17_64, %c0_65] : memref<194x128xf32, #tpu.memory_space<vmem>>, vector<160x128xf32>
    %c512_66 = arith.constant 512 : index
    %c0_67 = arith.constant 0 : index
    %67 = vector.load %arg7[%c512_66, %c0_67] : memref<1152x128xf32, #tpu.memory_space<vmem>>, vector<128x128xf32>
    %cst_68 = arith.constant dense<0.000000e+00> : vector<160x128xf32>
    %68 = tpu.matmul %66, %67, %cst_68 {dimension_numbers = #tpu.dot_dimension_numbers<[1], [0], [0], [1], [0, 0, 1, 1], [], []>} : vector<160x128xf32>, vector<128x128xf32>, vector<160x128xf32> -> vector<160x128xf32>
    %69 = arith.addf %65, %68 : vector<160x128xf32>
    %c18_69 = arith.constant 18 : index
    %c0_70 = arith.constant 0 : index
    %70 = vector.load %arg11[%c18_69, %c0_70] : memref<194x128xf32, #tpu.memory_space<vmem>>, vector<160x128xf32>
    %c640_71 = arith.constant 640 : index
    %c0_72 = arith.constant 0 : index
    %71 = vector.load %arg7[%c640_71, %c0_72] : memref<1152x128xf32, #tpu.memory_space<vmem>>, vector<128x128xf32>
    %cst_73 = arith.constant dense<0.000000e+00> : vector<160x128xf32>
    %72 = tpu.matmul %70, %71, %cst_73 {dimension_numbers = #tpu.dot_dimension_numbers<[1], [0], [0], [1], [0, 0, 1, 1], [], []>} : vector<160x128xf32>, vector<128x128xf32>, vector<160x128xf32> -> vector<160x128xf32>
    %73 = arith.addf %69, %72 : vector<160x128xf32>
    %c32_74 = arith.constant 32 : index
    %c0_75 = arith.constant 0 : index
    %74 = vector.load %arg11[%c32_74, %c0_75] : memref<194x128xf32, #tpu.memory_space<vmem>>, vector<160x128xf32>
    %c768_76 = arith.constant 768 : index
    %c0_77 = arith.constant 0 : index
    %75 = vector.load %arg7[%c768_76, %c0_77] : memref<1152x128xf32, #tpu.memory_space<vmem>>, vector<128x128xf32>
    %cst_78 = arith.constant dense<0.000000e+00> : vector<160x128xf32>
    %76 = tpu.matmul %74, %75, %cst_78 {dimension_numbers = #tpu.dot_dimension_numbers<[1], [0], [0], [1], [0, 0, 1, 1], [], []>} : vector<160x128xf32>, vector<128x128xf32>, vector<160x128xf32> -> vector<160x128xf32>
    %77 = arith.addf %73, %76 : vector<160x128xf32>
    %c33_79 = arith.constant 33 : index
    %c0_80 = arith.constant 0 : index
    %78 = vector.load %arg11[%c33_79, %c0_80] : memref<194x128xf32, #tpu.memory_space<vmem>>, vector<160x128xf32>
    %c896_81 = arith.constant 896 : index
    %c0_82 = arith.constant 0 : index
    %79 = vector.load %arg7[%c896_81, %c0_82] : memref<1152x128xf32, #tpu.memory_space<vmem>>, vector<128x128xf32>
    %cst_83 = arith.constant dense<0.000000e+00> : vector<160x128xf32>
    %80 = tpu.matmul %78, %79, %cst_83 {dimension_numbers = #tpu.dot_dimension_numbers<[1], [0], [0], [1], [0, 0, 1, 1], [], []>} : vector<160x128xf32>, vector<128x128xf32>, vector<160x128xf32> -> vector<160x128xf32>
    %81 = arith.addf %77, %80 : vector<160x128xf32>
    %c34_84 = arith.constant 34 : index
    %c0_85 = arith.constant 0 : index
    %82 = vector.load %arg11[%c34_84, %c0_85] : memref<194x128xf32, #tpu.memory_space<vmem>>, vector<160x128xf32>
    %c1024_86 = arith.constant 1024 : index
    %c0_87 = arith.constant 0 : index
    %83 = vector.load %arg7[%c1024_86, %c0_87] : memref<1152x128xf32, #tpu.memory_space<vmem>>, vector<128x128xf32>
    %cst_88 = arith.constant dense<0.000000e+00> : vector<160x128xf32>
    %84 = tpu.matmul %82, %83, %cst_88 {dimension_numbers = #tpu.dot_dimension_numbers<[1], [0], [0], [1], [0, 0, 1, 1], [], []>} : vector<160x128xf32>, vector<128x128xf32>, vector<160x128xf32> -> vector<160x128xf32>
    %85 = arith.addf %81, %84 : vector<160x128xf32>
    %c0_89 = arith.constant 0 : index
    %c0_90 = arith.constant 0 : index
    %86 = vector.load %arg8[%c0_89, %c0_90] : memref<1x128xf32, #tpu.memory_space<vmem>>, vector<1x128xf32>
    %87 = vector.broadcast %86 : vector<1x128xf32> to vector<160x128xf32>
    %88 = arith.addf %85, %87 : vector<160x128xf32>
    %89 = vector.extract_strided_slice %88 {offsets = [0, 0], sizes = [160, 8], strides = [1, 1]} : vector<160x128xf32> to vector<160x8xf32>
    %c0_91 = arith.constant 0 : index
    %c0_92 = arith.constant 0 : index
    %c0_93 = arith.constant 0 : index
    %c0_94 = arith.constant 0 : index
    %90 = vector.load %arg9[%c0_91, %c0_92, %c0_93, %c0_94] : memref<1x1x160x8xf32, #tpu.memory_space<vmem>>, vector<1x1x160x8xf32>
    %91 = vector.shape_cast %90 : vector<1x1x160x8xf32> to vector<160x8xf32>
    %92 = vector.shape_cast %89 : vector<160x8xf32> to vector<1x1x160x8xf32>
    tpu.vector_store %arg9[%c0_91, %c0_92, %c0_93, %c0_94], %92 {strides = array<i32>} : memref<1x1x160x8xf32, #tpu.memory_space<vmem>>, vector<1x1x160x8xf32>,
    return
  }
  func.func @transform_0(%arg0: i32, %arg1: i32) -> (i32, i32, i32, i32) {
    %c0_i32 = arith.constant 0 : i32
    %c0_i32_0 = arith.constant 0 : i32
    %c0_i32_1 = arith.constant 0 : i32
    return %arg0, %arg1, %c0_i32, %c0_i32_0 : i32, i32, i32, i32
  }
  func.func @transform_1(%arg0: i32, %arg1: i32) -> (i32, i32) {
    %c0_i32 = arith.constant 0 : i32
    %c0_i32_0 = arith.constant 0 : i32
    %c0_i32_1 = arith.constant 0 : i32
    return %c0_i32, %c0_i32_0 : i32, i32
  }
  func.func @transform_2(%arg0: i32, %arg1: i32) -> (i32, i32) {
    %c0_i32 = arith.constant 0 : i32
    %c0_i32_0 = arith.constant 0 : i32
    %c0_i32_1 = arith.constant 0 : i32
    return %c0_i32, %c0_i32_0 : i32, i32
  }
  func.func @transform_3(%arg0: i32, %arg1: i32) -> (i32, i32) {
    %c0_i32 = arith.constant 0 : i32
    %c0_i32_0 = arith.constant 0 : i32
    %c0_i32_1 = arith.constant 0 : i32
    return %c0_i32, %c0_i32_0 : i32, i32
  }
  func.func @transform_4(%arg0: i32, %arg1: i32) -> (i32, i32) {
    %c0_i32 = arith.constant 0 : i32
    %c0_i32_0 = arith.constant 0 : i32
    %c0_i32_1 = arith.constant 0 : i32
    return %c0_i32, %c0_i32_0 : i32, i32
  }
  func.func @transform_5(%arg0: i32, %arg1: i32) -> (i32, i32) {
    %c0_i32 = arith.constant 0 : i32
    %c0_i32_0 = arith.constant 0 : i32
    %c0_i32_1 = arith.constant 0 : i32
    return %c0_i32, %c0_i32_0 : i32, i32
  }
  func.func @transform_6(%arg0: i32, %arg1: i32) -> (i32, i32) {
    %c0_i32 = arith.constant 0 : i32
    %c0_i32_0 = arith.constant 0 : i32
    %c0_i32_1 = arith.constant 0 : i32
    return %c0_i32, %c0_i32_0 : i32, i32
  }
  func.func @transform_7(%arg0: i32, %arg1: i32) -> (i32, i32, i32, i32) {
    %c0_i32 = arith.constant 0 : i32
    %c0_i32_0 = arith.constant 0 : i32
    %c0_i32_1 = arith.constant 0 : i32
    return %arg0, %arg1, %c0_i32, %c0_i32_0 : i32, i32, i32, i32
  }
}

</mosaic_0001>

<bundles_post_ra>
// kernel: simple_forward.1
= control target key start
LH: loop header
LB: loop body
LE: loop exit
PB: predicated region body
PF: predicated region fallthrough
CT: control target
= control target key end

     0   :  { %12 = vsyncpa [#allocation5], 0  ;;  %s8383_s24 = smov 0   ;;  %s8385_s25 = smov 0   ;;  %s10890_s0 = inlined_call_operand.vmem [shape: f32[2,1,232,32], index: 0, kind: input, shape index: {}]   ;;  %s10891_s1 = inlined_call_operand.vmem [shape: f32[32,128], index: 1, kind: input, shape index: {}]   ;;  %s10892_s2 = inlined_call_operand.vmem [shape: f32[1,128], index: 2, kind: input, shape index: {}]   ;;  %s10893_s3 = inlined_call_operand.vmem [shape: f32[1152,128], index: 3, kind: input, shape index: {}]   ;;  %s10894_s4 = inlined_call_operand.vmem [shape: f32[1,128], index: 4, kind: input, shape index: {}]   ;;  %s10895_s5 = inlined_call_operand.hbm [shape: f32[1152,128], index: 5, kind: input, shape index: {}]   ;;  %s10896_s6 = inlined_call_operand.vmem [shape: f32[1,128], index: 6, kind: input, shape index: {}]   ;;  %s10897_s7 = inlined_call_operand.vmem [shape: f32[2,1,160,8], index: 7, kind: output, shape index: {}]  }
   0x1   :  { %s8387_s26 = smov 0  }
   0x2 LB: > { %s5164_s27 = sadd.s32 4294967295, %s8335_s26   ;;  %s30_s28 = sadd.s32 1, %s8331_s25  ;;  %s8335_s26 = sphi %s8387_s26, %s18_s26   ;;  %s8331_s25 = sphi %s8385_s25, %s11008_s25   ;;  %s8327_s24 = sphi %s8383_s24, %s11007_s24  }
   0x3   : > { %p32_p0 = scmp.ge.s32.totalorder %s30_s28, 2  ;;  %p5166_p1 = scmp.ge.s32.totalorder %s8335_s26, 1 }
   0x4   : > { %p217_p2 = scmp.lt.s32.totalorder %s8335_s26, 3  ;;  %p8408_p4 = scmp.eq.s32.totalorder %s5164_s27, 0 }
   0x5   : > { %s11010_s28 = smov (%p32_p0, %s30_s28), 0  ;;  %s8337_s8 = smov [#allocation4]  }
   0x6   : > { %p8404_p3 = pnand %p5166_p1, %p217_p2  ;;  %s241_s9 = sshll.u32 %s8337_s8, 4  ;;  %s242_s9 = int_to_ptr.vmem [resolvable:$true] %s241_s9 }
   0x7   : > { %s10913_s30 = scalar_select %p8408_p4, 1, 0 }
   0x8   : > { %s10912_s29 = scalar_select %p8404_p3, 1, 0 }
   0x9   : > { %p8245_p5 = pneg %p8404_p3  ;;  %s8281_s13 = scalar_lea.hbm %s10895_s5, 18432 }
   0xa   : > { %p8282_p7 = scmp.ne.s32.totalorder %s10895_s5, %s8281_s13  ;;  %p8288_p11 = scmp.lt.u32.totalorder %s8281_s13, %s10895_s5 }
   0xb   : > { %p8416_p6 = pnand %p8408_p4, %p8245_p5 }
   0xd   : > { %p8283_p8 = pneg %p8416_p6 }
   0xf   : > { %p8284_p9 = pnand %p8283_p8, %p8282_p7 }
  0x11   : > { %p8285_p10 = pneg %p8284_p9 }
  0x13   : > { %p8290_p12 = pnand %p8288_p11, %p8285_p10 }
  0x15   : > { %8293 = shalt.err (!%p8290_p12)
}
  0x16   : > { %s8294_s18 = scalar_lea.vmem %s242_s9, 18432  ;;  %p8302_p2 = scmp.lt.s32.totalorder %s242_s9, %s242_s9 }
  0x17   : > { %p8295_p13 = scmp.ne.s32.totalorder %s242_s9, %s8294_s18  ;;  %p8303_p5 = scmp.lt.s32.totalorder %s8294_s18, %s8294_s18 }
  0x19   : > { %p8297_p0 = pnand %p8295_p13, %p8283_p8  ;;  %p8304_p4 = por %p8303_p5, %p8302_p2 }
  0x1b   : > { %p8298_p1 = pneg %p8297_p0 }
  0x1d   : > { %p8305_p3 = pnand %p8304_p4, %p8298_p1 }
  0x1f   : > { %8308 = shalt.err (!%p8305_p3)
}
  0x20   : > { %s8338_s19 = smov 128   ;;  %s8339_s20 = smov 8  }
  0x21   : > { %8248 = dma.hbm_to_vmem [thread:$0]  (!%p8416_p6), %s10895_s5, 18432, %s242_s9, [#allocation5], %s8338_s19, %s8338_s19, %s8339_s20  }
  0x22   : > { %p10915_p7 = scmp.ne.s32.totalorder %s10912_s29, 0 }
  0x24   : > { %272 = sbr.rel (%p10915_p7) target bundleno = 1621 (0x655), region = 48 }
  0x2b   : > { %p10916_p9 = scmp.ne.s32.totalorder %s10913_s30, 0 }
  0x2d   : > { %8322 = dma.done.wait (%p10916_p9), [#allocation5], 18432  }
  0x2e   : > { %8324 = vsyncadd (%p10916_p9), [#allocation5], 4294948864  ;;  %p312_p3 = scmp.lt.s32.totalorder %s8327_s24, 1  ;;  %v10901_v0 = vmov 0.0|0.0   ;;  %vm8341_vm0 = vmmov 0   ;;  %v8342_v1 = vmov 0.0  }
  0x2f   : > { %7549 = vmatprep.subr.bf16.mxu0 %v10901_v0  ;;  %5941 = vmatprep.mubr.msk.f32.mxu0 %vm8341_vm0, %v8342_v1  ;;  %v359_v2 = vld [vmem:[%s10891_s1] sm:$0xff]  ;;  %v360_v3 = vld [vmem:[%s10891_s1 + $0x8] sm:$0xff]  ;;  %v361_v4 = vld [vmem:[%s10891_s1 + $0x10] sm:$0xff]  ;;  %vm370_vm1 = vcmask 261120   ;;  %vm5038_vm2 = vcmask 64512  }
  0x30   : > { %8059 = vmatprep.subr.bf16.mxu1 %v10901_v0  ;;  %5965 = vmatprep.mubr.msk.f32.mxu1 %vm8341_vm0, %v8342_v1  ;;  %s11012_s24 = smov (!%p312_p3, %s8327_s24), 1  ;;  %v7550_v5 = vpack.c.bf16 %v360_v3, %v359_v2  ;;  %v362_v6 = vld [vmem:[%s10891_s1 + $0x18] sm:$0xff]  ;;  %v792_v11 = vld [vmem:[%s10893_s3 + $0x80] sm:$0xff]  ;;  %v793_v12 = vld [vmem:[%s10893_s3 + $0x88] sm:$0xff] }
  0x31   : > { %s8239_s10 = smul.u32 232, %s11012_s24  ;;  %v7553_v7 = vpack.c.bf16 %v362_v6, %v361_v4  ;;  %v7556_v14 = vpack.c.bf16 %v793_v12, %v792_v11  ;;  %v794_v15 = vld [vmem:[%s10893_s3 + $0x90] sm:$0xff]  ;;  %v795_v16 = vld [vmem:[%s10893_s3 + $0x98] sm:$0xff]  ;;  %v796_v19 = vld [vmem:[%s10893_s3 + $0xa0] sm:$0xff] }
  0x32   : > { %7551 = vmatpush3.bf16.msra.mxu0 %v7550_v5  ;;  %8061 = vmatpush3.bf16.msra.mxu1 %v7550_v5  ;;  %v7559_v18 = vpack.c.bf16 %v795_v16, %v794_v15  ;;  %v797_v20 = vld [vmem:[%s10893_s3 + $0xa8] sm:$0xff]  ;;  %v1469_v21 = vld [vmem:[%s10893_s3 + $0x180] sm:$0xff]  ;;  %v1471_v25 = vld [vmem:[%s10893_s3 + $0x190] sm:$0xff] }
  0x33   : > { %7552 = vmatprep.subr.bf16.mxu0 %v10901_v0  ;;  %s8469_s15 = scalar_lea.vmem %s10890_s0, %s8239_s10  ;;  %8060 = vmatprep.subr.bf16.mxu1 %v10901_v0  ;;  %v1470_v22 = vld [vmem:[%s10893_s3 + $0x188] sm:$0xff]  ;;  %v1472_v26 = vld [vmem:[%s10893_s3 + $0x198] sm:$0xff]  ;;  %v7562_v27 = vpack.c.bf16 %v797_v20, %v796_v19  ;;  %v798_v28 = vld [vmem:[%s10893_s3 + $0xb0] sm:$0xff] }
  0x34   : > { %v330_v8 = vld [vmem:[%s8469_s15] sm:$0xff]  ;;  %v331_v10 = vld [vmem:[%s8469_s15 + $0x8] sm:$0xff]  ;;  %v332_v17 = vld [vmem:[%s8469_s15 + $0x10] sm:$0xff]  ;;  %v7628_v24 = vpack.c.bf16 %v1470_v22, %v1469_v21  ;;  %v7631_v29 = vpack.c.bf16 %v1472_v26, %v1471_v25 }
  0x35   : > { %v338_v9 = vld [vmem:[%s8469_s15 + $0x40] sm:$0xff]  ;;  %v339_v13 = vld [vmem:[%s8469_s15 + $0x48] sm:$0xff]  ;;  %v340_v23 = vld [vmem:[%s8469_s15 + $0x50] sm:$0xff] }
  0x36   : > { %7554 = vmatpush3.bf16.msra.mxu0 %v7553_v7  ;;  %8062 = vmatpush3.bf16.msra.mxu1 %v7553_v7  ;;  %v799_v30 = vld [vmem:[%s10893_s3 + $0xb8] sm:$0xff]  ;;  %v1473_v31 = vld [vmem:[%s10893_s3 + $0x1a0] sm:$0xff]  ;;  %v1474_v32 = vld [vmem:[%s10893_s3 + $0x1a8] sm:$0xff] }
  0x37   : > { %7555 = vmatprep.subr.bf16.mxu1 %v10901_v0  ;;  %7627 = vmatprep.subr.bf16.mxu0 %v10901_v0  ;;  %v333_v33 = vld [vmem:[%s8469_s15 + $0x18] sm:$0xff]  ;;  %v7565_v35 = vpack.c.bf16 %v799_v30, %v798_v28  ;;  %v7634_v36 = vpack.c.bf16 %v1474_v32, %v1473_v31  ;;  %v800_v37 = vld [vmem:[%s10893_s3 + $0xc0] sm:$0xff]  ;;  %v801_v38 = vld [vmem:[%s10893_s3 + $0xc8] sm:$0xff] }
  0x38   : > { %v341_v34 = vld [vmem:[%s8469_s15 + $0x58] sm:$0xff]  ;;  %v334_v39 = vld [vmem:[%s8469_s15 + $0x20] sm:$0xff]  ;;  %v7568_v41 = vpack.c.bf16 %v801_v38, %v800_v37  ;;  %v802_v42 = vld [vmem:[%s10893_s3 + $0xd0] sm:$0xff] }
  0x39   : > { %5942 = vmatmul.mubr.msk.f32.vlgmr.msra.gmra.mrb[0].mxu0 %vm370_vm1, %v330_v8  ;;  %5966 = vmatmul.mubr.msk.f32.vlgmr.msra.gmra.mrb[0].mxu1 %vm370_vm1, %v338_v9  ;;  %v342_v40 = vld [vmem:[%s8469_s15 + $0x60] sm:$0xff]  ;;  %v803_v43 = vld [vmem:[%s10893_s3 + $0xd8] sm:$0xff]  ;;  %v335_v44 = vld [vmem:[%s8469_s15 + $0x28] sm:$0xff] }
  0x3a   : > { %5944 = vmatprep.mubr.msk.f32.mxu0 %vm8341_vm0, %v8342_v1  ;;  %5968 = vmatprep.mubr.msk.f32.mxu1 %vm8341_vm0, %v8342_v1  ;;  %v343_v45 = vld [vmem:[%s8469_s15 + $0x68] sm:$0xff]  ;;  %v7571_v46 = vpack.c.bf16 %v803_v43, %v802_v42  ;;  %v804_v47 = vld [vmem:[%s10893_s3 + $0xe0] sm:$0xff]  ;;  %v336_v49 = vld [vmem:[%s8469_s15 + $0x30] sm:$0xff] }
  0x3b   : > { %7557 = vmatpush3.bf16.msra.mxu1 %v7556_v14  ;;  %7629 = vmatpush3.bf16.msra.mxu0 %v7628_v24  ;;  %v805_v48 = vld [vmem:[%s10893_s3 + $0xe8] sm:$0xff]  ;;  %v344_v50 = vld [vmem:[%s8469_s15 + $0x70] sm:$0xff]  ;;  %v337_v52 = vld [vmem:[%s8469_s15 + $0x38] sm:$0xff] }
  0x3c   : > { %7558 = vmatprep.subr.bf16.mxu1 %v10901_v0  ;;  %7630 = vmatprep.subr.bf16.mxu0 %v10901_v0  ;;  %v7574_v51 = vpack.c.bf16 %v805_v48, %v804_v47  ;;  %v345_v53 = vld [vmem:[%s8469_s15 + $0x78] sm:$0xff]  ;;  %v346_v54 = vld [vmem:[%s8469_s15 + $0x80] sm:$0xff]  ;;  %v347_v55 = vld [vmem:[%s8469_s15 + $0x88] sm:$0xff] }
  0x3d   : > { %5945 = vmatmul.mubr.msk.f32.gmra.mrb[2].mxu0 %vm370_vm1, %v331_v10  ;;  %5969 = vmatmul.mubr.msk.f32.gmra.mrb[2].mxu1 %vm370_vm1, %v339_v13  ;;  %v348_v56 = vld [vmem:[%s8469_s15 + $0x90] sm:$0xff]  ;;  %v349_v57 = vld [vmem:[%s8469_s15 + $0x98] sm:$0xff]  ;;  %v350_v58 = vld [vmem:[%s8469_s15 + $0xa0] sm:$0xff] }
  0x3e   : > { %5947 = vmatprep.mubr.msk.f32.mxu0 %vm8341_vm0, %v8342_v1  ;;  %5971 = vmatprep.mubr.msk.f32.mxu1 %vm8341_vm0, %v8342_v1  ;;  %v351_v59 = vld [vmem:[%s8469_s15 + $0xa8] sm:$0xff]  ;;  %v352_v60 = vld [vmem:[%s8469_s15 + $0xb0] sm:$0xff]  ;;  %v353_v61 = vld [vmem:[%s8469_s15 + $0xb8] sm:$0xff] }
  0x3f   : > { %7560 = vmatpush3.bf16.msra.mxu1 %v7559_v18  ;;  %7632 = vmatpush3.bf16.msra.mxu0 %v7631_v29  ;;  %v354_v62 = vld [vmem:[%s8469_s15 + $0xc0] sm:$0xff]  ;;  %v355_v63 = vld [vmem:[%s8469_s15 + $0xc8] sm:$0xff]  ;;  %v356_v2 = vld [vmem:[%s8469_s15 + $0xd0] sm:$0xff] }
  0x40   : > { %7561 = vmatprep.subr.bf16.mxu1 %v10901_v0  ;;  %7633 = vmatprep.subr.bf16.mxu0 %v10901_v0  ;;  %v1475_v3 = vld [vmem:[%s10893_s3 + $0x1b0] sm:$0xff]  ;;  %v1476_v4 = vld [vmem:[%s10893_s3 + $0x1b8] sm:$0xff]  ;;  %v1477_v6 = vld [vmem:[%s10893_s3 + $0x1c0] sm:$0xff] }
  0x41   : > { %5948 = vmatmul.mubr.msk.f32.gmra.mrb[4].mxu0 %vm370_vm1, %v332_v17  ;;  %5972 = vmatmul.mubr.msk.f32.gmra.mrb[4].mxu1 %vm370_vm1, %v340_v23  ;;  %v7637_v5 = vpack.c.bf16 %v1476_v4, %v1475_v3  ;;  %v1478_v7 = vld [vmem:[%s10893_s3 + $0x1c8] sm:$0xff]  ;;  %v1479_v9 = vld [vmem:[%s10893_s3 + $0x1d0] sm:$0xff]  ;;  %v1480_v10 = vld [vmem:[%s10893_s3 + $0x1d8] sm:$0xff] }
  0x42   : > { %5950 = vmatprep.mubr.msk.f32.mxu0 %vm8341_vm0, %v8342_v1  ;;  %5974 = vmatprep.mubr.msk.f32.mxu1 %vm8341_vm0, %v8342_v1  ;;  %v7640_v8 = vpack.c.bf16 %v1478_v7, %v1477_v6  ;;  %v7643_v11 = vpack.c.bf16 %v1480_v10, %v1479_v9  ;;  %v1481_v12 = vld [vmem:[%s10893_s3 + $0x1e0] sm:$0xff]  ;;  %v1482_v13 = vld [vmem:[%s10893_s3 + $0x1e8] sm:$0xff]  ;;  %v357_v14 = vld [vmem:[%s8469_s15 + $0xd8] sm:$0xff] }
  0x43   : > { %7563 = vmatpush3.bf16.msra.mxu1 %v7562_v27  ;;  %7635 = vmatpush3.bf16.msra.mxu0 %v7634_v36  ;;  %v7646_v15 = vpack.c.bf16 %v1482_v13, %v1481_v12  ;;  %v1483_v16 = vld [vmem:[%s10893_s3 + $0x1f0] sm:$0xff]  ;;  %v1484_v17 = vld [vmem:[%s10893_s3 + $0x1f8] sm:$0xff]  ;;  %v358_v18 = vld [vmem:[%s8469_s15 + $0xe0] sm:$0xff]  ;;  %s8240_s15 = smul.u32 160, %s11012_s24 }
  0x44   : > { %7564 = vmatprep.subr.bf16.mxu1 %v10901_v0  ;;  %7636 = vmatprep.subr.bf16.mxu0 %v10901_v0  ;;  %v7649_v19 = vpack.c.bf16 %v1484_v17, %v1483_v16  ;;  %v806_v20 = vld [vmem:[%s10893_s3 + $0xf0] sm:$0xff]  ;;  %v807_v21 = vld [vmem:[%s10893_s3 + $0xf8] sm:$0xff]  ;;  %v8705_v23 = vld [vmem:[%s10892_s2] ss:$0 sm:$0xff] }
  0x45   : > { %5951 = vmatmul.mubr.msk.f32.gmra.mrb[6].mxu0 %vm370_vm1, %v333_v33  ;;  %5975 = vmatmul.mubr.msk.f32.gmra.mrb[6].mxu1 %vm370_vm1, %v341_v34  ;;  %v7577_v22 = vpack.c.bf16 %v807_v21, %v806_v20  ;;  %v1985_v20 = vld [vmem:[%s10893_s3 + $0x2a0] sm:$0xff]  ;;  %v1986_v21 = vld [vmem:[%s10893_s3 + $0x2a8] sm:$0xff]  ;;  %s10837_s11 = scalar_lea.vmem %s10897_s7, %s8240_s15 }
  0x46   : > { %5953 = vmatprep.mubr.msk.f32.mxu0 %vm8341_vm0, %v8342_v1  ;;  %5977 = vmatprep.mubr.msk.f32.mxu1 %vm8341_vm0, %v8342_v1 }
  0x47   : > { %7566 = vmatpush3.bf16.msra.mxu1 %v7565_v35  ;;  %7638 = vmatpush3.bf16.msra.mxu0 %v7637_v5 }
  0x48   : > { %7567 = vmatprep.subr.bf16.mxu1 %v10901_v0  ;;  %7639 = vmatprep.subr.bf16.mxu0 %v10901_v0 }
  0x49   : > { %5954 = vmatmul.mubr.msk.f32.gmra.mrb[8].mxu0 %vm370_vm1, %v334_v39  ;;  %5978 = vmatmul.mubr.msk.f32.gmra.mrb[8].mxu1 %vm370_vm1, %v342_v40  ;;  %v1981_v40 = vld [vmem:[%s10893_s3 + $0x280] sm:$0xff] }
  0x4a   : > { %5956 = vmatprep.mubr.msk.f32.mxu0 %vm8341_vm0, %v8342_v1  ;;  %5980 = vmatprep.mubr.msk.f32.mxu1 %vm8341_vm0, %v8342_v1 }
  0x4b   : > { %7569 = vmatpush3.bf16.msra.mxu1 %v7568_v41  ;;  %7641 = vmatpush3.bf16.msra.mxu0 %v7640_v8  ;;  %v1982_v41 = vld [vmem:[%s10893_s3 + $0x288] sm:$0xff] }
  0x4c   : > { %7570 = vmatprep.subr.bf16.mxu1 %v10901_v0  ;;  %7642 = vmatprep.subr.bf16.mxu0 %v10901_v0  ;;  %v7676_v48 = vpack.c.bf16 %v1982_v41, %v1981_v40 }
  0x4d   : > { %5957 = vmatmul.mubr.msk.f32.gmra.mrb[10].mxu0 %vm370_vm1, %v335_v44  ;;  %5981 = vmatmul.mubr.msk.f32.gmra.mrb[10].mxu1 %vm370_vm1, %v343_v45 }
  0x4e   : > { %5959 = vmatprep.mubr.msk.f32.mxu0 %vm8341_vm0, %v8342_v1  ;;  %5983 = vmatprep.mubr.msk.f32.mxu1 %vm8341_vm0, %v8342_v1 }
  0x4f   : > { %7572 = vmatpush3.bf16.msra.mxu1 %v7571_v46  ;;  %7644 = vmatpush3.bf16.msra.mxu0 %v7643_v11 }
  0x50   : > { %7573 = vmatprep.subr.bf16.mxu1 %v10901_v0  ;;  %7645 = vmatprep.subr.bf16.mxu0 %v10901_v0 }
  0x51   : > { %5960 = vmatmul.mubr.msk.f32.gmra.mrb[12].mxu0 %vm370_vm1, %v336_v49  ;;  %5984 = vmatmul.mubr.msk.f32.gmra.mrb[12].mxu1 %vm370_vm1, %v344_v50  ;;  %v751_v50 = vld [vmem:[%s10893_s3] sm:$0xff] }
  0x52   : > { %5962 = vmatprep.mubr.msk.f32.mxu0 %vm8341_vm0, %v8342_v1  ;;  %5986 = vmatprep.mubr.msk.f32.mxu1 %vm8341_vm0, %v8342_v1 }
  0x53   : > { %7575 = vmatpush3.bf16.msra.mxu1 %v7574_v51  ;;  %7647 = vmatpush3.bf16.msra.mxu0 %v7646_v15  ;;  %v752_v51 = vld [vmem:[%s10893_s3 + $0x8] sm:$0xff] }
  0x54   : > { %7576 = vmatprep.subr.bf16.mxu1 %v10901_v0  ;;  %7648 = vmatprep.subr.bf16.mxu0 %v10901_v0  ;;  %v756_v15 = vld [vmem:[%s10893_s3 + $0x28] sm:$0xff] }
  0x55   : > { %5963 = vmatmul.mubr.msk.f32.gmra.mrb[14].mxu0 %vm370_vm1, %v337_v52  ;;  %5987 = vmatmul.mubr.msk.f32.gmra.mrb[14].mxu1 %vm370_vm1, %v345_v53 }
  0x56   : > { %5989 = vmatprep.mubr.msk.f32.mxu1 %vm8341_vm0, %v8342_v1  ;;  %6381 = vmatprep.mubr.msk.f32.mxu0 %vm8341_vm0, %v8342_v1 }
  0x57   : > { %7650 = vmatpush3.bf16.msra.mxu0 %v7649_v19  ;;  %7578 = vmatpush3.bf16.msra.mxu1 %v7577_v22 }
  0x58   : > { %7675 = vmatprep.subr.bf16.mxu0 %v10901_v0  ;;  %7579 = vmatprep.subr.bf16.mxu1 %v10901_v0 }
  0x59   : > { %5990 = vmatmul.mubr.msk.f32.gmra.mrb[16].mxu1 %vm370_vm1, %v346_v54 }
  0x5a   : > { %5992 = vmatprep.mubr.msk.f32.mxu1 %vm8341_vm0, %v8342_v1 }
  0x5d   : > { %5993 = vmatmul.mubr.msk.f32.gmra.mrb[18].mxu1 %vm370_vm1, %v347_v55 }
  0x5e   : > { %5995 = vmatprep.mubr.msk.f32.mxu1 %vm8341_vm0, %v8342_v1 }
  0x61   : > { %5996 = vmatmul.mubr.msk.f32.gmra.mrb[20].mxu1 %vm370_vm1, %v348_v56 }
  0x62   : > { %5998 = vmatprep.mubr.msk.f32.mxu1 %vm8341_vm0, %v8342_v1 }
  0x65   : > { %5999 = vmatmul.mubr.msk.f32.gmra.mrb[22].mxu1 %vm370_vm1, %v349_v57 }
  0x66   : > { %6001 = vmatprep.mubr.msk.f32.mxu1 %vm8341_vm0, %v8342_v1 }
  0x69   : > { %6002 = vmatmul.mubr.msk.f32.gmra.mrb[24].mxu1 %vm370_vm1, %v350_v58 }
  0x6a   : > { %6004 = vmatprep.mubr.msk.f32.mxu1 %vm8341_vm0, %v8342_v1 }
  0x6d   : > { %6005 = vmatmul.mubr.msk.f32.gmra.mrb[26].mxu1 %vm370_vm1, %v351_v59  ;;  %v1983_v59 = vld [vmem:[%s10893_s3 + $0x290] sm:$0xff] }
  0x6e   : > { %6007 = vmatprep.mubr.msk.f32.mxu1 %vm8341_vm0, %v8342_v1 }
  0x71   : > { %6008 = vmatmul.mubr.msk.f32.gmra.mrb[28].mxu1 %vm370_vm1, %v352_v60  ;;  %v1984_v60 = vld [vmem:[%s10893_s3 + $0x298] sm:$0xff] }
  0x72   : > { %6010 = vmatprep.mubr.msk.f32.mxu1 %vm8341_vm0, %v8342_v1  ;;  %v7679_v7 = vpack.c.bf16 %v1984_v60, %v1983_v59  ;;  %v1989_v59 = vld [vmem:[%s10893_s3 + $0x2c0] sm:$0xff]  ;;  %v1990_v60 = vld [vmem:[%s10893_s3 + $0x2c8] sm:$0xff] }
  0x75   : > { %6011 = vmatmul.mubr.msk.f32.gmra.mrb[30].mxu1 %vm370_vm1, %v353_v61  ;;  %v7580_v61 = vpack.c.bf16 %v752_v51, %v751_v50 }
  0x76   : > { %6013 = vmatprep.mubr.msk.f32.mxu1 %vm8341_vm0, %v8342_v1 }
  0x79   : > { %6014 = vmatmul.mubr.msk.f32.gmra.mrb[32].mxu1 %vm370_vm1, %v354_v62 }
  0x7a   : > { %6016 = vmatprep.mubr.msk.f32.mxu1 %vm8341_vm0, %v8342_v1 }
  0x7d   : > { %6017 = vmatmul.mubr.msk.f32.gmra.mrb[34].mxu1 %vm370_vm1, %v355_v63  ;;  %v753_v63 = vld [vmem:[%s10893_s3 + $0x10] sm:$0xff] }
  0x7e   : > { %6019 = vmatprep.mubr.msk.f32.mxu1 %vm8341_vm0, %v8342_v1 }
  0x81   : > { %6020 = vmatmul.mubr.msk.f32.gmra.mrb[36].mxu1 %vm370_vm1, %v356_v2  ;;  %v754_v2 = vld [vmem:[%s10893_s3 + $0x18] sm:$0xff] }
  0x82   : > { %6022 = vmatprep.mubr.msk.f32.mxu1 %vm8341_vm0, %v8342_v1  ;;  %v7583_v12 = vpack.c.bf16 %v754_v2, %v753_v63 }
  0x85   : > { %6023 = vmatmul.mubr.msk.f32.gmra.mrb[38].mxu1 %vm370_vm1, %v357_v14  ;;  %v755_v14 = vld [vmem:[%s10893_s3 + $0x20] sm:$0xff] }
  0x86   : > { %6025 = vmatprep.mubr.msk.f32.mxu1 %vm8341_vm0, %v8342_v1 }
  0x89   : > { %6026 = vmatmul.mubr.msk.f32.gmra.mrb[40].mxu1 %vm370_vm1, %v358_v18 }
  0x8a   : > { %6060 = vmatprep.mubr.msk.f32.mxu1 %vm8341_vm0, %v8342_v1 }
 0x10c   : > { %v524_v24 = vpop.f32.mrb[0].mxu0  ;;  %v564_v25 = vpop.f32.mrb[0].mxu1 }
 0x10d   : > { %v8708_v26 = vadd.f32 %v8705_v23, %v524_v24  ;;  %v5943_v27 = vpop.f32.mrb[1].mxu0  ;;  %v565_v28 = vadd.f32 %v8705_v23, %v564_v25  ;;  %v5967_v29 = vpop.f32.mrb[1].mxu1 }
 0x10e   : > { %v7586_v29 = vpack.c.bf16 %v756_v15, %v755_v14  ;;  %v1991_v14 = vld [vmem:[%s10893_s3 + $0x2d0] sm:$0xff]  ;;  %v1992_v15 = vld [vmem:[%s10893_s3 + $0x2d8] sm:$0xff] }
 0x10f   : > { %v668_v30 = vmax.f32 %v8708_v26, 0.0  ;;  %v8712_v31 = vmax.f32 %v565_v28, 0.0  ;;  %v1218_v26 = vld [vmem:[%s10893_s3 + $0x128] sm:$0xff] }
 0x110   : > { %v529_v32 = vpop.f32.mrb[2].mxu0  ;;  %v569_v33 = vpop.f32.mrb[2].mxu1 }
 0x111   : > { %697 = vst [vmem:[#allocation2] sm:$0xff] %v668_v30  ;;  %v8717_v34 = vadd.f32 %v8705_v23, %v529_v32  ;;  %v5946_v35 = vpop.f32.mrb[3].mxu0  ;;  %705 = vst [vmem:[#allocation2 + $0x40] sm:$0xff] %v8712_v31  ;;  %v570_v36 = vadd.f32 %v8705_v23, %v569_v33  ;;  %v5970_v37 = vpop.f32.mrb[3].mxu1  ;;  %v757_v33 = vld [vmem:[%s10893_s3 + $0x30] sm:$0xff] }
 0x112   : > { %v758_v35 = vld [vmem:[%s10893_s3 + $0x38] sm:$0xff] }
 0x113   : > { %v669_v38 = vmax.f32 %v8717_v34, 0.0  ;;  %v8722_v39 = vmax.f32 %v570_v36, 0.0  ;;  %v7682_v36 = vpack.c.bf16 %v1986_v21, %v1985_v20  ;;  %v7589_v51 = vpack.c.bf16 %v758_v35, %v757_v33  ;;  %v763_v21 = vld [vmem:[%s10893_s3 + $0x60] sm:$0xff]  ;;  %v1994_v33 = vld [vmem:[%s10893_s3 + $0x2e8] sm:$0xff]  ;;  %v1220_v34 = vld [vmem:[%s10893_s3 + $0x138] sm:$0xff] }
 0x114   : > { %v534_v42 = vpop.f32.mrb[4].mxu0  ;;  %v574_v43 = vpop.f32.mrb[4].mxu1 }
 0x115   : > { %698 = vst [vmem:[#allocation2 + $0x8] sm:$0xff] %v669_v38  ;;  %v535_v44 = vadd.f32 %v8705_v23, %v534_v42  ;;  %v5949_v45 = vpop.f32.mrb[5].mxu0  ;;  %706 = vst [vmem:[#allocation2 + $0x48] sm:$0xff] %v8722_v39  ;;  %v575_v46 = vadd.f32 %v8705_v23, %v574_v43  ;;  %v5973_v47 = vpop.f32.mrb[5].mxu1  ;;  %v1987_v42 = vld [vmem:[%s10893_s3 + $0x2b0] sm:$0xff]  ;;  %v1988_v43 = vld [vmem:[%s10893_s3 + $0x2b8] sm:$0xff] }
 0x117   : > { %v8735_v49 = vmax.f32 %v535_v44, 0.0  ;;  %v8743_v52 = vmax.f32 %v575_v46, 0.0 }
 0x118   : > { %v539_v53 = vpop.f32.mrb[6].mxu0  ;;  %v579_v54 = vpop.f32.mrb[6].mxu1 }
 0x119   : > { %699 = vst [vmem:[#allocation2 + $0x10] sm:$0xff] %v8735_v49  ;;  %v540_v55 = vadd.f32 %v8705_v23, %v539_v53  ;;  %v5952_v56 = vpop.f32.mrb[7].mxu0  ;;  %6382 = vmatmul.mubr.f32.vlgmr.msra.gmra.mrb[16].mxu0 %v8735_v49  ;;  %707 = vst [vmem:[#allocation2 + $0x50] sm:$0xff] %v8743_v52  ;;  %v580_v57 = vadd.f32 %v8705_v23, %v579_v54  ;;  %v5976_v58 = vpop.f32.mrb[7].mxu1  ;;  %v759_v53 = vld [vmem:[%s10893_s3 + $0x40] sm:$0xff]  ;;  %v760_v54 = vld [vmem:[%s10893_s3 + $0x48] sm:$0xff] }
 0x11a   : > { %6384 = vmatprep.mubr.msk.f32.mxu0 %vm8341_vm0, %v8342_v1  ;;  %7677 = vmatpush3.bf16.msra.mxu0 %v7676_v48 }
 0x11b   : > { %v8758_v62 = vmax.f32 %v540_v55, 0.0  ;;  %v8766_v3 = vmax.f32 %v580_v57, 0.0  ;;  %7678 = vmatprep.subr.bf16.mxu0 %v10901_v0  ;;  %v7685_v55 = vpack.c.bf16 %v1988_v43, %v1987_v42  ;;  %v766_v42 = vld [vmem:[%s10893_s3 + $0x78] sm:$0xff] }
 0x11c   : > { %v544_v4 = vpop.f32.mrb[8].mxu0  ;;  %v767_v5 = vld [vmem:[#allocation2 + $0x1] sm:$0xff]  ;;  %v584_v6 = vpop.f32.mrb[8].mxu1 }
 0x11d   : > { %700 = vst [vmem:[#allocation2 + $0x18] sm:$0xff] %v8758_v62  ;;  %v545_v8 = vadd.f32 %v8705_v23, %v544_v4  ;;  %v5955_v9 = vpop.f32.mrb[9].mxu0  ;;  %6061 = vmatmul.mubr.f32.vlgmr.msra.gmra.mrb[42].mxu1 %v767_v5  ;;  %6385 = vmatmul.mubr.f32.gmra.mrb[18].mxu0 %v8758_v62  ;;  %708 = vst [vmem:[#allocation2 + $0x58] sm:$0xff] %v8766_v3  ;;  %v585_v10 = vadd.f32 %v8705_v23, %v584_v6  ;;  %v5979_v11 = vpop.f32.mrb[9].mxu1 }
 0x11e   : > { %7581 = vmatpush3.bf16.msra.mxu1 %v7580_v61  ;;  %6063 = vmatprep.mubr.msk.f32.mxu1 %vm8341_vm0, %v8342_v1  ;;  %v762_v9 = vld [vmem:[%s10893_s3 + $0x58] sm:$0xff] }
 0x11f   : > { %v8776_v13 = vmax.f32 %v545_v8, 0.0  ;;  %6387 = vmatprep.mubr.msk.f32.mxu0 %vm8341_vm0, %v8342_v1  ;;  %7582 = vmatprep.subr.bf16.mxu1 %v10901_v0  ;;  %v8787_v16 = vmax.f32 %v585_v10, 0.0  ;;  %v761_v8 = vld [vmem:[%s10893_s3 + $0x50] sm:$0xff]  ;;  %v7688_v10 = vpack.c.bf16 %v1990_v60, %v1989_v59 }
 0x120   : > { %v549_v17 = vpop.f32.mrb[10].mxu0  ;;  %v768_v18 = vld [vmem:[#allocation2 + $0x9] sm:$0xff]  ;;  %v589_v19 = vpop.f32.mrb[10].mxu1  ;;  %7680 = vmatpush3.bf16.msra.mxu0 %v7679_v7  ;;  %v7592_v7 = vpack.c.bf16 %v760_v54, %v759_v53  ;;  %v7595_v20 = vpack.c.bf16 %v762_v9, %v761_v8 }
 0x121   : > { %701 = vst [vmem:[#allocation2 + $0x20] sm:$0xff] %v8776_v13  ;;  %v550_v22 = vadd.f32 %v8705_v23, %v549_v17  ;;  %v5958_v24 = vpop.f32.mrb[11].mxu0  ;;  %6064 = vmatmul.mubr.f32.gmra.mrb[44].mxu1 %v768_v18  ;;  %6388 = vmatmul.mubr.f32.gmra.mrb[20].mxu0 %v8776_v13  ;;  %709 = vst [vmem:[#allocation2 + $0x60] sm:$0xff] %v8787_v16  ;;  %v590_v25 = vadd.f32 %v8705_v23, %v589_v19  ;;  %v5982_v27 = vpop.f32.mrb[11].mxu1  ;;  %v776_v9 = vld [vmem:[#allocation2 + $0x49] sm:$0xff] }
 0x122   : > { %6066 = vmatprep.mubr.msk.f32.mxu1 %vm8341_vm0, %v8342_v1  ;;  %7584 = vmatpush3.bf16.msra.mxu1 %v7583_v12  ;;  %v7691_v24 = vpack.c.bf16 %v1992_v15, %v1991_v14 }
 0x123   : > { %v8802_v28 = vmax.f32 %v550_v22, 0.0  ;;  %6390 = vmatprep.mubr.msk.f32.mxu0 %vm8341_vm0, %v8342_v1  ;;  %7585 = vmatprep.subr.bf16.mxu1 %v10901_v0  ;;  %v8807_v32 = vmax.f32 %v590_v25, 0.0  ;;  %v764_v22 = vld [vmem:[%s10893_s3 + $0x68] sm:$0xff] }
 0x124   : > { %v554_v37 = vpop.f32.mrb[12].mxu0  ;;  %v769_v40 = vld [vmem:[#allocation2 + $0x11] sm:$0xff]  ;;  %v594_v41 = vpop.f32.mrb[12].mxu1  ;;  %7681 = vmatprep.subr.bf16.mxu0 %v10901_v0 }
 0x125   : > { %702 = vst [vmem:[#allocation2 + $0x28] sm:$0xff] %v8802_v28  ;;  %v555_v44 = vadd.f32 %v8705_v23, %v554_v37  ;;  %v5961_v45 = vpop.f32.mrb[13].mxu0  ;;  %6067 = vmatmul.mubr.f32.gmra.mrb[46].mxu1 %v769_v40  ;;  %6391 = vmatmul.mubr.f32.gmra.mrb[22].mxu0 %v8802_v28  ;;  %710 = vst [vmem:[#allocation2 + $0x68] sm:$0xff] %v8807_v32  ;;  %v595_v46 = vadd.f32 %v8705_v23, %v594_v41  ;;  %v5985_v47 = vpop.f32.mrb[13].mxu1  ;;  %v765_v41 = vld [vmem:[%s10893_s3 + $0x70] sm:$0xff] }
 0x126   : > { %6069 = vmatprep.mubr.msk.f32.mxu1 %vm8341_vm0, %v8342_v1  ;;  %6393 = vmatprep.mubr.msk.f32.mxu0 %vm8341_vm0, %v8342_v1  ;;  %v7598_v40 = vpack.c.bf16 %v764_v22, %v763_v21  ;;  %v1996_v47 = vld [vmem:[%s10893_s3 + $0x2f8] sm:$0xff] }
 0x127   : > { %v8831_v48 = vmax.f32 %v555_v44, 0.0  ;;  %7587 = vmatpush3.bf16.msra.mxu1 %v7586_v29  ;;  %v8833_v50 = vmax.f32 %v595_v46, 0.0  ;;  %7683 = vmatpush3.bf16.msra.mxu0 %v7682_v36  ;;  %v1993_v29 = vld [vmem:[%s10893_s3 + $0x2e0] sm:$0xff]  ;;  %v1995_v46 = vld [vmem:[%s10893_s3 + $0x2f0] sm:$0xff] }
 0x128   : > { %v559_v56 = vpop.f32.mrb[14].mxu0  ;;  %v770_v57 = vld [vmem:[#allocation2 + $0x19] sm:$0xff]  ;;  %7588 = vmatprep.subr.bf16.mxu1 %v10901_v0  ;;  %v599_v58 = vpop.f32.mrb[14].mxu1  ;;  %7684 = vmatprep.subr.bf16.mxu0 %v10901_v0  ;;  %v7694_v43 = vpack.c.bf16 %v1994_v33, %v1993_v29  ;;  %v777_v15 = vld [vmem:[#allocation2 + $0x51] sm:$0xff] }
 0x129   : > { %703 = vst [vmem:[#allocation2 + $0x30] sm:$0xff] %v8831_v48  ;;  %v560_v61 = vadd.f32 %v8705_v23, %v559_v56  ;;  %v5964_v63 = vpop.f32.mrb[15].mxu0  ;;  %6070 = vmatmul.mubr.f32.gmra.mrb[48].mxu1 %v770_v57  ;;  %6394 = vmatmul.mubr.f32.gmra.mrb[24].mxu0 %v8831_v48  ;;  %711 = vst [vmem:[#allocation2 + $0x70] sm:$0xff] %v8833_v50  ;;  %v600_v2 = vadd.f32 %v8705_v23, %v599_v58  ;;  %v5988_v4 = vpop.f32.mrb[15].mxu1  ;;  %v778_v22 = vld [vmem:[#allocation2 + $0x59] sm:$0xff] }
 0x12a   : > { %6072 = vmatprep.mubr.msk.f32.mxu1 %vm8341_vm0, %v8342_v1  ;;  %6396 = vmatprep.mubr.msk.f32.mxu0 %vm8341_vm0, %v8342_v1  ;;  %v7697_v56 = vpack.c.bf16 %v1996_v47, %v1995_v46  ;;  %v775_v63 = vld [vmem:[#allocation2 + $0x41] sm:$0xff] }
 0x12b   : > { %v8858_v5 = vmax.f32 %v560_v61, 0.0  ;;  %7590 = vmatpush3.bf16.msra.mxu1 %v7589_v51  ;;  %v8860_v6 = vmax.f32 %v600_v2, 0.0  ;;  %7686 = vmatpush3.bf16.msra.mxu0 %v7685_v55  ;;  %v7601_v55 = vpack.c.bf16 %v766_v42, %v765_v41 }
 0x12c   : > { %v771_v11 = vld [vmem:[#allocation2 + $0x21] sm:$0xff]  ;;  %v604_v12 = vpop.f32.mrb[16].mxu1  ;;  %7591 = vmatprep.subr.bf16.mxu1 %v10901_v0  ;;  %7687 = vmatprep.subr.bf16.mxu0 %v10901_v0 }
 0x12d   : > { %704 = vst [vmem:[#allocation2 + $0x38] sm:$0xff] %v8858_v5  ;;  %6073 = vmatmul.mubr.f32.gmra.mrb[50].mxu1 %v771_v11  ;;  %6397 = vmatmul.mubr.f32.gmra.mrb[26].mxu0 %v8858_v5  ;;  %712 = vst [vmem:[#allocation2 + $0x78] sm:$0xff] %v8860_v6  ;;  %v605_v17 = vadd.f32 %v8705_v23, %v604_v12  ;;  %v5991_v18 = vpop.f32.mrb[17].mxu1  ;;  %v779_v33 = vld [vmem:[#allocation2 + $0x61] sm:$0xff] }
 0x12e   : > { %6075 = vmatprep.mubr.msk.f32.mxu1 %vm8341_vm0, %v8342_v1  ;;  %6399 = vmatprep.mubr.msk.f32.mxu0 %vm8341_vm0, %v8342_v1 }
 0x12f   : > { %v8884_v19 = vmax.f32 %v605_v17, 0.0  ;;  %7593 = vmatpush3.bf16.msra.mxu1 %v7592_v7  ;;  %7689 = vmatpush3.bf16.msra.mxu0 %v7688_v10 }
 0x130   : > { %v772_v25 = vld [vmem:[#allocation2 + $0x29] sm:$0xff]  ;;  %v609_v27 = vpop.f32.mrb[18].mxu1  ;;  %7594 = vmatprep.subr.bf16.mxu1 %v10901_v0  ;;  %7690 = vmatprep.subr.bf16.mxu0 %v10901_v0 }
 0x131   : > { %6076 = vmatmul.mubr.f32.gmra.mrb[52].mxu1 %v772_v25  ;;  %6400 = vmatmul.mubr.f32.gmra.mrb[28].mxu0 %v8712_v31  ;;  %713 = vst [vmem:[#allocation2 + $0x80] sm:$0xff] %v8884_v19  ;;  %v610_v35 = vadd.f32 %v8705_v23, %v609_v27  ;;  %v5994_v36 = vpop.f32.mrb[19].mxu1  ;;  %v780_v42 = vld [vmem:[#allocation2 + $0x69] sm:$0xff] }
 0x132   : > { %6078 = vmatprep.mubr.msk.f32.mxu1 %vm8341_vm0, %v8342_v1  ;;  %6402 = vmatprep.mubr.msk.f32.mxu0 %vm8341_vm0, %v8342_v1 }
 0x133   : > { %v8907_v37 = vmax.f32 %v610_v35, 0.0  ;;  %7596 = vmatpush3.bf16.msra.mxu1 %v7595_v20  ;;  %7692 = vmatpush3.bf16.msra.mxu0 %v7691_v24 }
 0x134   : > { %v773_v44 = vld [vmem:[#allocation2 + $0x31] sm:$0xff]  ;;  %v614_v45 = vpop.f32.mrb[20].mxu1  ;;  %7597 = vmatprep.subr.bf16.mxu1 %v10901_v0  ;;  %7693 = vmatprep.subr.bf16.mxu0 %v10901_v0  ;;  %v774_v57 = vld [vmem:[#allocation2 + $0x39] sm:$0xff] }
 0x135   : > { %6079 = vmatmul.mubr.f32.gmra.mrb[54].mxu1 %v773_v44  ;;  %6403 = vmatmul.mubr.f32.gmra.mrb[30].mxu0 %v8722_v39  ;;  %714 = vst [vmem:[#allocation2 + $0x88] sm:$0xff] %v8907_v37  ;;  %v615_v51 = vadd.f32 %v8705_v23, %v614_v45  ;;  %v5997_v53 = vpop.f32.mrb[21].mxu1  ;;  %v781_v47 = vld [vmem:[#allocation2 + $0x71] sm:$0xff] }
 0x136   : > { %6081 = vmatprep.mubr.msk.f32.mxu1 %vm8341_vm0, %v8342_v1  ;;  %6405 = vmatprep.mubr.msk.f32.mxu0 %vm8341_vm0, %v8342_v1 }
 0x137   : > { %v8930_v54 = vmax.f32 %v615_v51, 0.0  ;;  %7599 = vmatpush3.bf16.msra.mxu1 %v7598_v40  ;;  %7695 = vmatpush3.bf16.msra.mxu0 %v7694_v43 }
 0x138   : > { %v619_v58 = vpop.f32.mrb[22].mxu1  ;;  %7600 = vmatprep.subr.bf16.mxu1 %v10901_v0  ;;  %7696 = vmatprep.subr.bf16.mxu0 %v10901_v0 }
 0x139   : > { %6082 = vmatmul.mubr.f32.gmra.mrb[56].mxu1 %v774_v57  ;;  %6406 = vmatmul.mubr.f32.gmra.mrb[32].mxu0 %v8743_v52  ;;  %715 = vst [vmem:[#allocation2 + $0x90] sm:$0xff] %v8930_v54  ;;  %v620_v59 = vadd.f32 %v8705_v23, %v619_v58  ;;  %v6000_v60 = vpop.f32.mrb[23].mxu1  ;;  %v782_v57 = vld [vmem:[#allocation2 + $0x79] sm:$0xff] }
 0x13a   : > { %6084 = vmatprep.mubr.msk.f32.mxu1 %vm8341_vm0, %v8342_v1  ;;  %6408 = vmatprep.mubr.msk.f32.mxu0 %vm8341_vm0, %v8342_v1 }
 0x13b   : > { %v8941_v61 = vmax.f32 %v620_v59, 0.0  ;;  %7602 = vmatpush3.bf16.msra.mxu1 %v7601_v55  ;;  %7698 = vmatpush3.bf16.msra.mxu0 %v7697_v56 }
 0x13c   : > { %v624_v2 = vpop.f32.mrb[24].mxu1  ;;  %7603 = vmatprep.subr.bf16.mxu1 %v10901_v0  ;;  %7723 = vmatprep.subr.bf16.mxu0 %v10901_v0  ;;  %v783_v58 = vld [vmem:[#allocation2 + $0x81] sm:$0xff] }
 0x13d   : > { %6085 = vmatmul.mubr.f32.gmra.mrb[58].mxu1 %v775_v63  ;;  %6409 = vmatmul.mubr.f32.gmra.mrb[34].mxu0 %v8766_v3  ;;  %716 = vst [vmem:[#allocation2 + $0x98] sm:$0xff] %v8941_v61  ;;  %v625_v4 = vadd.f32 %v8705_v23, %v624_v2  ;;  %v6003_v7 = vpop.f32.mrb[25].mxu1 }
 0x13e   : > { %6087 = vmatprep.mubr.msk.f32.mxu1 %vm8341_vm0, %v8342_v1  ;;  %6411 = vmatprep.mubr.msk.f32.mxu0 %vm8341_vm0, %v8342_v1 }
 0x13f   : > { %v8952_v8 = vmax.f32 %v625_v4, 0.0 }
 0x140   : > { %v629_v10 = vpop.f32.mrb[26].mxu1  ;;  %v784_v59 = vld [vmem:[#allocation2 + $0x89] sm:$0xff] }
 0x141   : > { %6088 = vmatmul.mubr.f32.gmra.mrb[60].mxu1 %v776_v9  ;;  %6412 = vmatmul.mubr.f32.gmra.mrb[36].mxu0 %v8787_v16  ;;  %717 = vst [vmem:[#allocation2 + $0xa0] sm:$0xff] %v8952_v8  ;;  %v630_v11 = vadd.f32 %v8705_v23, %v629_v10  ;;  %v6006_v12 = vpop.f32.mrb[27].mxu1 }
 0x142   : > { %6090 = vmatprep.mubr.msk.f32.mxu1 %vm8341_vm0, %v8342_v1  ;;  %6414 = vmatprep.mubr.msk.f32.mxu0 %vm8341_vm0, %v8342_v1 }
 0x143   : > { %v8961_v14 = vmax.f32 %v630_v11, 0.0 }
 0x144   : > { %v634_v17 = vpop.f32.mrb[28].mxu1  ;;  %v785_v60 = vld [vmem:[#allocation2 + $0x91] sm:$0xff] }
 0x145   : > { %6091 = vmatmul.mubr.f32.gmra.mrb[62].mxu1 %v777_v15  ;;  %6415 = vmatmul.mubr.f32.gmra.mrb[38].mxu0 %v8807_v32  ;;  %718 = vst [vmem:[#allocation2 + $0xa8] sm:$0xff] %v8961_v14  ;;  %v635_v18 = vadd.f32 %v8705_v23, %v634_v17  ;;  %v6009_v20 = vpop.f32.mrb[29].mxu1 }
 0x146   : > { %6093 = vmatprep.mubr.msk.f32.mxu1 %vm8341_vm0, %v8342_v1  ;;  %6417 = vmatprep.mubr.msk.f32.mxu0 %vm8341_vm0, %v8342_v1 }
 0x147   : > { %v8970_v21 = vmax.f32 %v635_v18, 0.0 }
 0x148   : > { %v639_v24 = vpop.f32.mrb[30].mxu1  ;;  %v9029_v9 = vld [vmem:[#allocation2 + $0x99] sm:$0xff] }
 0x149   : > { %6094 = vmatmul.mubr.f32.gmra.mrb[64].mxu1 %v778_v22  ;;  %6418 = vmatmul.mubr.f32.gmra.mrb[40].mxu0 %v8833_v50  ;;  %719 = vst [vmem:[#allocation2 + $0xb0] sm:$0xff] %v8970_v21  ;;  %v640_v25 = vadd.f32 %v8705_v23, %v639_v24  ;;  %v6012_v27 = vpop.f32.mrb[31].mxu1  ;;  %v2493_v24 = vld [vmem:[%s10893_s3 + $0x380] sm:$0xff] }
 0x14a   : > { %6096 = vmatprep.mubr.msk.f32.mxu1 %vm8341_vm0, %v8342_v1  ;;  %6420 = vmatprep.mubr.msk.f32.mxu0 %vm8341_vm0, %v8342_v1  ;;  %v1213_v27 = vld [vmem:[%s10893_s3 + $0x100] sm:$0xff] }
 0x14b   : > { %v8979_v29 = vmax.f32 %v640_v25, 0.0  ;;  %v2494_v25 = vld [vmem:[%s10893_s3 + $0x388] sm:$0xff] }
 0x14c   : > { %v644_v35 = vpop.f32.mrb[32].mxu1  ;;  %v9038_v17 = vld [vmem:[#allocation2 + $0xa1] sm:$0xff] }
 0x14d   : > { %6097 = vmatmul.mubr.f32.gmra.mrb[66].mxu1 %v779_v33  ;;  %6421 = vmatmul.mubr.f32.gmra.mrb[42].mxu0 %v8860_v6  ;;  %720 = vst [vmem:[#allocation2 + $0xb8] sm:$0xff] %v8979_v29  ;;  %v8984_v36 = vadd.f32 %v8705_v23, %v644_v35  ;;  %v6015_v40 = vpop.f32.mrb[33].mxu1  ;;  %v1214_v33 = vld [vmem:[%s10893_s3 + $0x108] sm:$0xff]  ;;  %v7724_v35 = vpack.c.bf16 %v2494_v25, %v2493_v24  ;;  %v1223_v24 = vld [vmem:[%s10893_s3 + $0x150] sm:$0xff] }
 0x14e   : > { %6099 = vmatprep.mubr.msk.f32.mxu1 %vm8341_vm0, %v8342_v1  ;;  %6423 = vmatprep.mubr.msk.f32.mxu0 %vm8341_vm0, %v8342_v1  ;;  %v9081_v40 = vld [vmem:[#allocation2 + $0x12] sm:$0xff] }
 0x14f   : > { %v692_v41 = vmax.f32 %v8984_v36, 0.0 }
 0x150   : > { %v649_v43 = vpop.f32.mrb[34].mxu1 }
 0x151   : > { %6100 = vmatmul.mubr.f32.gmra.mrb[68].mxu1 %v780_v42  ;;  %6424 = vmatmul.mubr.f32.gmra.mrb[44].mxu0 %v8884_v19  ;;  %721 = vst [vmem:[#allocation2 + $0xc0] sm:$0xff] %v692_v41  ;;  %v8995_v44 = vadd.f32 %v8705_v23, %v649_v43  ;;  %v6018_v45 = vpop.f32.mrb[35].mxu1  ;;  %v2496_v42 = vld [vmem:[%s10893_s3 + $0x398] sm:$0xff]  ;;  %v7604_v43 = vpack.c.bf16 %v1214_v33, %v1213_v27  ;;  %v2503_v27 = vld [vmem:[%s10893_s3 + $0x3d0] sm:$0xff] }
 0x152   : > { %6102 = vmatprep.mubr.msk.f32.mxu1 %vm8341_vm0, %v8342_v1  ;;  %6426 = vmatprep.mubr.msk.f32.mxu0 %vm8341_vm0, %v8342_v1  ;;  %v1216_v45 = vld [vmem:[%s10893_s3 + $0x118] sm:$0xff] }
 0x153   : > { %v693_v46 = vmax.f32 %v8995_v44, 0.0  ;;  %v1215_v44 = vld [vmem:[%s10893_s3 + $0x110] sm:$0xff]  ;;  %v2504_v33 = vld [vmem:[%s10893_s3 + $0x3d8] sm:$0xff] }
 0x154   : > { %v654_v51 = vpop.f32.mrb[36].mxu1  ;;  %v9055_v18 = vld [vmem:[#allocation2 + $0xb1] sm:$0xff] }
 0x155   : > { %6103 = vmatmul.mubr.f32.gmra.mrb[70].mxu1 %v781_v47  ;;  %6427 = vmatmul.mubr.f32.gmra.mrb[46].mxu0 %v8907_v37  ;;  %722 = vst [vmem:[#allocation2 + $0xc8] sm:$0xff] %v693_v46  ;;  %v655_v53 = vadd.f32 %v8705_v23, %v654_v51  ;;  %v6021_v55 = vpop.f32.mrb[37].mxu1  ;;  %v7607_v51 = vpack.c.bf16 %v1216_v45, %v1215_v44  ;;  %v2506_v44 = vld [vmem:[%s10893_s3 + $0x3e8] sm:$0xff] }
 0x156   : > { %6105 = vmatprep.mubr.msk.f32.mxu1 %vm8341_vm0, %v8342_v1  ;;  %6429 = vmatprep.mubr.msk.f32.mxu0 %vm8341_vm0, %v8342_v1  ;;  %v2497_v55 = vld [vmem:[%s10893_s3 + $0x3a0] sm:$0xff]  ;;  %v9220_v45 = vld [vmem:[#allocation2 + $0x4a] sm:$0xff] }
 0x157   : > { %v694_v56 = vmax.f32 %v655_v53, 0.0  ;;  %v1217_v53 = vld [vmem:[%s10893_s3 + $0x120] sm:$0xff] }
 0x158   : > { %v659_v63 = vpop.f32.mrb[38].mxu1  ;;  %v9062_v22 = vld [vmem:[#allocation2 + $0xb9] sm:$0xff]  ;;  %v791_v36 = vld [vmem:[#allocation2 + $0xc1] sm:$0x3] }
 0x159   : > { %6106 = vmatmul.mubr.f32.gmra.mrb[72].mxu1 %v782_v57  ;;  %6430 = vmatmul.mubr.f32.gmra.mrb[48].mxu0 %v8930_v54  ;;  %723 = vst [vmem:[#allocation2 + $0xd0] sm:$0xff] %v694_v56  ;;  %v660_v2 = vadd.f32 %v8705_v23, %v659_v63  ;;  %v6024_v4 = vpop.f32.mrb[39].mxu1  ;;  %v2498_v56 = vld [vmem:[%s10893_s3 + $0x3a8] sm:$0xff]  ;;  %v7610_v57 = vpack.c.bf16 %v1218_v26, %v1217_v53  ;;  %v2500_v63 = vld [vmem:[%s10893_s3 + $0x3b8] sm:$0xff]  ;;  %v2507_v26 = vld [vmem:[%s10893_s3 + $0x3f0] sm:$0xff] }
 0x15a   : > { %6108 = vmatprep.mubr.msk.f32.mxu1 %vm8341_vm0, %v8342_v1  ;;  %6432 = vmatprep.mubr.msk.f32.mxu0 %vm8341_vm0, %v8342_v1  ;;  %v1221_v4 = vld [vmem:[%s10893_s3 + $0x140] sm:$0xff] }
 0x15b   : > { %v695_v7 = vmax.f32 %v660_v2, 0.0 }
 0x15c   : > { %v664_v10 = vpop.f32.mrb[40].mxu1 }
 0x15d   : > { %6109 = vmatmul.mubr.f32.gmra.mrb[74].mxu1 %v783_v58  ;;  %6433 = vmatmul.mubr.f32.gmra.mrb[50].mxu0 %v8941_v61  ;;  %724 = vst [vmem:[#allocation2 + $0xd8] sm:$0xff] %v695_v7  ;;  %v665_v11 = vadd.f32 %v8705_v23, %v664_v10  ;;  %v6027_v12 = vpop.f32.mrb[41].mxu1  ;;  %v9046_v23 = vld [vmem:[#allocation2 + $0xa9] sm:$0xff]  ;;  %v9160_v10 = vld [vmem:[#allocation2 + $0x32] sm:$0xff] }
 0x15e   : > { %6111 = vmatprep.mubr.msk.f32.mxu1 %vm8341_vm0, %v8342_v1  ;;  %6435 = vmatprep.mubr.msk.f32.mxu0 %vm8341_vm0, %v8342_v1  ;;  %v1219_v58 = vld [vmem:[%s10893_s3 + $0x130] sm:$0xff]  ;;  %v1222_v7 = vld [vmem:[%s10893_s3 + $0x148] sm:$0xff] }
 0x15f   : > { %v696_v15 = vmax.f32 %v665_v11, 0.0  ;;  %v7613_v2 = vpack.c.bf16 %v1220_v34, %v1219_v58  ;;  %v2501_v11 = vld [vmem:[%s10893_s3 + $0x3c0] sm:$0xff]  ;;  %v2502_v12 = vld [vmem:[%s10893_s3 + $0x3c8] sm:$0xff]  ;;  %v9242_v58 = vld [vmem:[#allocation2 + $0x52] sm:$0xff] }
 0x160   : > { %v1468_v20 = vld [vmem:[#allocation2 + $0xd0] sm:$0x3]  ;;  %v7736_v25 = vpack.c.bf16 %v2502_v12, %v2501_v11 }
 0x161   : > { %6112 = vmatmul.mubr.f32.gmra.mrb[76].mxu1 %v784_v59  ;;  %6436 = vmatmul.mubr.f32.gmra.mrb[52].mxu0 %v8952_v8  ;;  %725 = vst [vmem:[#allocation2 + $0xe0] sm:$0xff] %v696_v15  ;;  %v9139_v59 = vld [vmem:[#allocation2 + $0x2a] sm:$0xff]  ;;  %v9176_v15 = vld [vmem:[#allocation2 + $0x3a] sm:$0xff] }
 0x162   : > { %6114 = vmatprep.mubr.msk.f32.mxu1 %vm8341_vm0, %v8342_v1  ;;  %6438 = vmatprep.mubr.msk.f32.mxu0 %vm8341_vm0, %v8342_v1  ;;  %v1979_v34 = vld [vmem:[#allocation2 + $0xca] sm:$0xff] }
 0x163   : > { %v1189_v11 = vld [vmem:[#allocation2 + $0xa] sm:$0xff] }
 0x164   : > { %v9399_v12 = vld [vmem:[#allocation2 + $0x31] sm:$0xff] }
 0x165   : > { %6115 = vmatmul.mubr.f32.gmra.mrb[78].mxu1 %v785_v60  ;;  %6439 = vmatmul.mubr.f32.gmra.mrb[54].mxu0 %v8961_v14  ;;  %v2499_v60 = vld [vmem:[%s10893_s3 + $0x3b0] sm:$0xff] }
 0x166   : > { %6117 = vmatprep.mubr.msk.f32.mxu1 %vm8341_vm0, %v8342_v1  ;;  %6441 = vmatprep.mubr.msk.f32.mxu0 %vm8341_vm0, %v8342_v1 }
 0x169   : > { %6118 = vmatmul.mubr.f32.gmra.mrb[80].mxu1 %v9029_v9  ;;  %6442 = vmatmul.mubr.f32.gmra.mrb[56].mxu0 %v8970_v21 }
 0x16a   : > { %6120 = vmatprep.mubr.msk.f32.mxu1 %vm8341_vm0, %v8342_v1  ;;  %6444 = vmatprep.mubr.msk.f32.mxu0 %vm8341_vm0, %v8342_v1 }
 0x16d   : > { %6121 = vmatmul.mubr.f32.gmra.mrb[82].mxu1 %v9038_v17  ;;  %6445 = vmatmul.mubr.f32.gmra.mrb[58].mxu0 %v8979_v29 }
 0x16e   : > { %6123 = vmatprep.mubr.msk.f32.mxu1 %vm8341_vm0, %v8342_v1  ;;  %6447 = vmatprep.mubr.msk.f32.mxu0 %vm8341_vm0, %v8342_v1 }
 0x171   : > { %6124 = vmatmul.mubr.f32.gmra.mrb[84].mxu1 %v9046_v23  ;;  %6448 = vmatmul.mubr.f32.gmra.mrb[60].mxu0 %v692_v41  ;;  %v2495_v41 = vld [vmem:[%s10893_s3 + $0x390] sm:$0xff] }
 0x172   : > { %6126 = vmatprep.mubr.msk.f32.mxu1 %vm8341_vm0, %v8342_v1  ;;  %6450 = vmatprep.mubr.msk.f32.mxu0 %vm8341_vm0, %v8342_v1  ;;  %v7727_v47 = vpack.c.bf16 %v2496_v42, %v2495_v41  ;;  %v1225_v41 = vld [vmem:[%s10893_s3 + $0x160] sm:$0xff]  ;;  %v7739_v42 = vpack.c.bf16 %v2504_v33, %v2503_v27  ;;  %v1731_v33 = vld [vmem:[%s10893_s3 + $0x230] sm:$0xff] }
 0x173   : > { %v9415_v27 = vld [vmem:[#allocation2 + $0x39] sm:$0xff] }
 0x175   : > { %6127 = vmatmul.mubr.f32.gmra.mrb[86].mxu1 %v9055_v18  ;;  %6451 = vmatmul.mubr.f32.gmra.mrb[62].mxu0 %v693_v46  ;;  %v9100_v46 = vld [vmem:[#allocation2 + $0x1a] sm:$0xff] }
 0x176   : > { %6129 = vmatprep.mubr.msk.f32.mxu1 %vm8341_vm0, %v8342_v1  ;;  %6453 = vmatprep.mubr.msk.f32.mxu0 %vm8341_vm0, %v8342_v1 }
 0x179   : > { %6130 = vmatmul.mubr.f32.gmra.mrb[88].mxu1 %v9062_v22  ;;  %6454 = vmatmul.mubr.f32.gmra.mrb[64].mxu0 %v1468_v20  ;;  %v7616_v20 = vpack.c.bf16 %v1222_v7, %v1221_v4  ;;  %v1188_v4 = vld [vmem:[#allocation2 + $0x2] sm:$0xff] }
 0x17a   : > { %6132 = vmatprep.mubr.msk.f32.mxu1 %vm8341_vm0, %v8342_v1  ;;  %6595 = vmatprep.mubr.msk.f32.mxu0 %vm8341_vm0, %v8342_v1  ;;  %v9391_v7 = vld [vmem:[#allocation2 + $0x29] sm:$0xff] }
 0x17d   : > { %6133 = vmatmul.mubr.f32.gmra.mrb[90].mxu1 %v791_v36  ;;  %6596 = vmatmul.mubr.f32.vlgmr.msra.gmra.mrb[66].mxu0 %v9081_v40 }
 0x17e   : > { %6167 = vmatprep.mubr.msk.f32.mxu1 %vm8341_vm0, %v8342_v1  ;;  %6598 = vmatprep.mubr.msk.f32.mxu0 %vm8341_vm0, %v8342_v1 }
 0x17f   : > { %7725 = vmatpush3.bf16.msra.mxu0 %v7724_v35  ;;  %v9198_v35 = vld [vmem:[#allocation2 + $0x42] sm:$0xff] }
 0x180   : > { %7726 = vmatprep.subr.bf16.mxu0 %v10901_v0 }
 0x181   : > { %6168 = vmatmul.mubr.f32.vlgmr.msra.gmra.mrb[92].mxu1 %v668_v30  ;;  %6599 = vmatmul.mubr.f32.gmra.mrb[68].mxu0 %v9100_v46  ;;  %v9117_v30 = vld [vmem:[#allocation2 + $0x22] sm:$0xff] }
 0x182   : > { %7605 = vmatpush3.bf16.msra.mxu1 %v7604_v43  ;;  %6170 = vmatprep.mubr.msk.f32.mxu1 %vm8341_vm0, %v8342_v1  ;;  %v2505_v43 = vld [vmem:[%s10893_s3 + $0x3e0] sm:$0xff] }
 0x183   : > { %6601 = vmatprep.mubr.msk.f32.mxu0 %vm8341_vm0, %v8342_v1  ;;  %7606 = vmatprep.subr.bf16.mxu1 %v10901_v0  ;;  %v7742_v53 = vpack.c.bf16 %v2506_v44, %v2505_v43  ;;  %v9433_v44 = vld [vmem:[#allocation2 + $0x41] sm:$0xff] }
 0x184   : > { %7728 = vmatpush3.bf16.msra.mxu0 %v7727_v47 }
 0x185   : > { %6171 = vmatmul.mubr.f32.gmra.mrb[94].mxu1 %v669_v38  ;;  %6602 = vmatmul.mubr.f32.gmra.mrb[70].mxu0 %v9117_v30  ;;  %v7730_v38 = vpack.c.bf16 %v2498_v56, %v2497_v55  ;;  %v2508_v55 = vld [vmem:[%s10893_s3 + $0x3f8] sm:$0xff] }
 0x186   : > { %6173 = vmatprep.mubr.msk.f32.mxu1 %vm8341_vm0, %v8342_v1  ;;  %7608 = vmatpush3.bf16.msra.mxu1 %v7607_v51  ;;  %v1227_v51 = vld [vmem:[%s10893_s3 + $0x170] sm:$0xff] }
 0x187   : > { %6604 = vmatprep.mubr.msk.f32.mxu0 %vm8341_vm0, %v8342_v1  ;;  %7609 = vmatprep.subr.bf16.mxu1 %v10901_v0 }
 0x188   : > { %7729 = vmatprep.subr.bf16.mxu0 %v10901_v0 }
 0x189   : > { %6174 = vmatmul.mubr.f32.gmra.mrb[96].mxu1 %v8735_v49  ;;  %6605 = vmatmul.mubr.f32.gmra.mrb[72].mxu0 %v9139_v59  ;;  %v7733_v49 = vpack.c.bf16 %v2500_v63, %v2499_v60  ;;  %v9378_v60 = vld [vmem:[#allocation2 + $0x21] sm:$0xff]  ;;  %v1727_v63 = vld [vmem:[%s10893_s3 + $0x210] sm:$0xff] }
 0x18a   : > { %6176 = vmatprep.mubr.msk.f32.mxu1 %vm8341_vm0, %v8342_v1  ;;  %6607 = vmatprep.mubr.msk.f32.mxu0 %vm8341_vm0, %v8342_v1 }
 0x18b   : > { %7611 = vmatpush3.bf16.msra.mxu1 %v7610_v57  ;;  %7731 = vmatpush3.bf16.msra.mxu0 %v7730_v38  ;;  %v7745_v57 = vpack.c.bf16 %v2508_v55, %v2507_v26  ;;  %v750_v38 = vld [vmem:[#allocation2 + $0xc0] sm:$0x3] }
 0x18c   : > { %7612 = vmatprep.subr.bf16.mxu1 %v10901_v0  ;;  %7732 = vmatprep.subr.bf16.mxu0 %v10901_v0 }
 0x18d   : > { %6177 = vmatmul.mubr.f32.gmra.mrb[98].mxu1 %v8758_v62  ;;  %6608 = vmatmul.mubr.f32.gmra.mrb[74].mxu0 %v9160_v10  ;;  %v1224_v62 = vld [vmem:[%s10893_s3 + $0x158] sm:$0xff] }
 0x18e   : > { %6179 = vmatprep.mubr.msk.f32.mxu1 %vm8341_vm0, %v8342_v1  ;;  %6610 = vmatprep.mubr.msk.f32.mxu0 %vm8341_vm0, %v8342_v1  ;;  %v7619_v36 = vpack.c.bf16 %v1224_v62, %v1223_v24  ;;  %v1730_v24 = vld [vmem:[%s10893_s3 + $0x228] sm:$0xff] }
 0x18f   : > { %7614 = vmatpush3.bf16.msra.mxu1 %v7613_v2  ;;  %7734 = vmatpush3.bf16.msra.mxu0 %v7733_v49  ;;  %v1728_v2 = vld [vmem:[%s10893_s3 + $0x218] sm:$0xff] }
 0x190   : > { %7615 = vmatprep.subr.bf16.mxu1 %v10901_v0  ;;  %7735 = vmatprep.subr.bf16.mxu0 %v10901_v0  ;;  %v7655_v49 = vpack.c.bf16 %v1728_v2, %v1727_v63 }
 0x191   : > { %6180 = vmatmul.mubr.f32.gmra.mrb[100].mxu1 %v8776_v13  ;;  %6611 = vmatmul.mubr.f32.gmra.mrb[76].mxu0 %v9176_v15  ;;  %v1226_v13 = vld [vmem:[%s10893_s3 + $0x168] sm:$0xff] }
 0x192   : > { %6182 = vmatprep.mubr.msk.f32.mxu1 %vm8341_vm0, %v8342_v1  ;;  %6613 = vmatprep.mubr.msk.f32.mxu0 %vm8341_vm0, %v8342_v1  ;;  %v7622_v47 = vpack.c.bf16 %v1226_v13, %v1225_v41 }
 0x193   : > { %7617 = vmatpush3.bf16.msra.mxu1 %v7616_v20  ;;  %7737 = vmatpush3.bf16.msra.mxu0 %v7736_v25  ;;  %v1729_v20 = vld [vmem:[%s10893_s3 + $0x220] sm:$0xff] }
 0x194   : > { %7618 = vmatprep.subr.bf16.mxu1 %v10901_v0  ;;  %7738 = vmatprep.subr.bf16.mxu0 %v10901_v0  ;;  %v7658_v25 = vpack.c.bf16 %v1730_v24, %v1729_v20  ;;  %v9490_v20 = vld [vmem:[#allocation2 + $0x59] sm:$0xff] }
 0x195   : > { %6183 = vmatmul.mubr.f32.gmra.mrb[102].mxu1 %v8802_v28  ;;  %6614 = vmatmul.mubr.f32.gmra.mrb[78].mxu0 %v9198_v35  ;;  %v1228_v28 = vld [vmem:[%s10893_s3 + $0x178] sm:$0xff] }
 0x196   : > { %6185 = vmatprep.mubr.msk.f32.mxu1 %vm8341_vm0, %v8342_v1  ;;  %6616 = vmatprep.mubr.msk.f32.mxu0 %vm8341_vm0, %v8342_v1  ;;  %v7625_v56 = vpack.c.bf16 %v1228_v28, %v1227_v51  ;;  %v1740_v24 = vld [vmem:[%s10893_s3 + $0x278] sm:$0xff] }
 0x197   : > { %7620 = vmatpush3.bf16.msra.mxu1 %v7619_v36  ;;  %7740 = vmatpush3.bf16.msra.mxu0 %v7739_v42  ;;  %v1732_v36 = vld [vmem:[%s10893_s3 + $0x238] sm:$0xff] }
 0x198   : > { %7621 = vmatprep.subr.bf16.mxu1 %v10901_v0  ;;  %7741 = vmatprep.subr.bf16.mxu0 %v10901_v0  ;;  %v7661_v42 = vpack.c.bf16 %v1732_v36, %v1731_v33 }
 0x199   : > { %6186 = vmatmul.mubr.f32.gmra.mrb[104].mxu1 %v8831_v48  ;;  %6617 = vmatmul.mubr.f32.gmra.mrb[80].mxu0 %v9220_v45  ;;  %v9252_v48 = vld [vmem:[#allocation2 + $0x5a] sm:$0xff] }
 0x19a   : > { %6188 = vmatprep.mubr.msk.f32.mxu1 %vm8341_vm0, %v8342_v1  ;;  %6619 = vmatprep.mubr.msk.f32.mxu0 %vm8341_vm0, %v8342_v1 }
 0x19b   : > { %7623 = vmatpush3.bf16.msra.mxu1 %v7622_v47  ;;  %7743 = vmatpush3.bf16.msra.mxu0 %v7742_v53  ;;  %v1734_v47 = vld [vmem:[%s10893_s3 + $0x248] sm:$0xff] }
 0x19c   : > { %7624 = vmatprep.subr.bf16.mxu1 %v10901_v0  ;;  %7744 = vmatprep.subr.bf16.mxu0 %v10901_v0 }
 0x19d   : > { %6189 = vmatmul.mubr.f32.gmra.mrb[106].mxu1 %v8858_v5  ;;  %6620 = vmatmul.mubr.f32.gmra.mrb[82].mxu0 %v9242_v58  ;;  %v9261_v5 = vld [vmem:[#allocation2 + $0x62] sm:$0xff] }
 0x19e   : > { %6191 = vmatprep.mubr.msk.f32.mxu1 %vm8341_vm0, %v8342_v1  ;;  %6622 = vmatprep.mubr.msk.f32.mxu0 %vm8341_vm0, %v8342_v1 }
 0x19f   : > { %7626 = vmatpush3.bf16.msra.mxu1 %v7625_v56  ;;  %7746 = vmatpush3.bf16.msra.mxu0 %v7745_v57  ;;  %v9452_v56 = vld [vmem:[#allocation2 + $0x49] sm:$0xff]  ;;  %v1736_v57 = vld [vmem:[%s10893_s3 + $0x258] sm:$0xff] }
 0x1a0   : > { %7651 = vmatprep.subr.bf16.mxu1 %v10901_v0 }
 0x1a1   : > { %6192 = vmatmul.mubr.f32.gmra.mrb[108].mxu1 %v8712_v31  ;;  %6623 = vmatmul.mubr.f32.gmra.mrb[84].mxu0 %v9252_v48  ;;  %v9269_v31 = vld [vmem:[#allocation2 + $0x6a] sm:$0xff] }
 0x1a2   : > { %6194 = vmatprep.mubr.msk.f32.mxu1 %vm8341_vm0, %v8342_v1  ;;  %6625 = vmatprep.mubr.msk.f32.mxu0 %vm8341_vm0, %v8342_v1 }
 0x1a5   : > { %6195 = vmatmul.mubr.f32.gmra.mrb[110].mxu1 %v8722_v39  ;;  %6626 = vmatmul.mubr.f32.gmra.mrb[86].mxu0 %v9261_v5  ;;  %v9277_v39 = vld [vmem:[#allocation2 + $0x72] sm:$0xff] }
 0x1a6   : > { %6197 = vmatprep.mubr.msk.f32.mxu1 %vm8341_vm0, %v8342_v1  ;;  %6628 = vmatprep.mubr.msk.f32.mxu0 %vm8341_vm0, %v8342_v1 }
 0x1a9   : > { %6198 = vmatmul.mubr.f32.gmra.mrb[112].mxu1 %v8743_v52  ;;  %6629 = vmatmul.mubr.f32.gmra.mrb[88].mxu0 %v9269_v31  ;;  %v9285_v52 = vld [vmem:[#allocation2 + $0x7a] sm:$0xff] }
 0x1aa   : > { %6200 = vmatprep.mubr.msk.f32.mxu1 %vm8341_vm0, %v8342_v1  ;;  %6631 = vmatprep.mubr.msk.f32.mxu0 %vm8341_vm0, %v8342_v1 }
 0x1ad   : > { %6201 = vmatmul.mubr.f32.gmra.mrb[114].mxu1 %v8766_v3  ;;  %6632 = vmatmul.mubr.f32.gmra.mrb[90].mxu0 %v9277_v39  ;;  %v9293_v3 = vld [vmem:[#allocation2 + $0x82] sm:$0xff] }
 0x1ae   : > { %6203 = vmatprep.mubr.msk.f32.mxu1 %vm8341_vm0, %v8342_v1  ;;  %6634 = vmatprep.mubr.msk.f32.mxu0 %vm8341_vm0, %v8342_v1 }
 0x1b1   : > { %6204 = vmatmul.mubr.f32.gmra.mrb[116].mxu1 %v8787_v16  ;;  %6635 = vmatmul.mubr.f32.gmra.mrb[92].mxu0 %v9285_v52  ;;  %v9301_v16 = vld [vmem:[#allocation2 + $0x8a] sm:$0xff] }
 0x1b2   : > { %6206 = vmatprep.mubr.msk.f32.mxu1 %vm8341_vm0, %v8342_v1  ;;  %6637 = vmatprep.mubr.msk.f32.mxu0 %vm8341_vm0, %v8342_v1 }
 0x1b5   : > { %6207 = vmatmul.mubr.f32.gmra.mrb[118].mxu1 %v8807_v32  ;;  %6638 = vmatmul.mubr.f32.gmra.mrb[94].mxu0 %v9293_v3  ;;  %v9309_v32 = vld [vmem:[#allocation2 + $0x92] sm:$0xff] }
 0x1b6   : > { %6209 = vmatprep.mubr.msk.f32.mxu1 %vm8341_vm0, %v8342_v1  ;;  %6640 = vmatprep.mubr.msk.f32.mxu0 %vm8341_vm0, %v8342_v1 }
 0x1b9   : > { %6210 = vmatmul.mubr.f32.gmra.mrb[120].mxu1 %v8833_v50  ;;  %6641 = vmatmul.mubr.f32.gmra.mrb[96].mxu0 %v9301_v16  ;;  %v9317_v50 = vld [vmem:[#allocation2 + $0x9a] sm:$0xff] }
 0x1ba   : > { %6212 = vmatprep.mubr.msk.f32.mxu1 %vm8341_vm0, %v8342_v1  ;;  %6643 = vmatprep.mubr.msk.f32.mxu0 %vm8341_vm0, %v8342_v1 }
 0x1bd   : > { %6213 = vmatmul.mubr.f32.gmra.mrb[122].mxu1 %v8860_v6  ;;  %6644 = vmatmul.mubr.f32.gmra.mrb[98].mxu0 %v9309_v32  ;;  %v9325_v6 = vld [vmem:[#allocation2 + $0xa2] sm:$0xff] }
 0x1be   : > { %6215 = vmatprep.mubr.msk.f32.mxu1 %vm8341_vm0, %v8342_v1  ;;  %6646 = vmatprep.mubr.msk.f32.mxu0 %vm8341_vm0, %v8342_v1 }
 0x1c1   : > { %6216 = vmatmul.mubr.f32.gmra.mrb[124].mxu1 %v8884_v19  ;;  %6647 = vmatmul.mubr.f32.gmra.mrb[100].mxu0 %v9317_v50  ;;  %v9333_v19 = vld [vmem:[#allocation2 + $0xaa] sm:$0xff] }
 0x1c2   : > { %6218 = vmatprep.mubr.msk.f32.mxu1 %vm8341_vm0, %v8342_v1  ;;  %6649 = vmatprep.mubr.msk.f32.mxu0 %vm8341_vm0, %v8342_v1 }
 0x1c5   : > { %6219 = vmatmul.mubr.f32.gmra.mrb[126].mxu1 %v8907_v37  ;;  %6650 = vmatmul.mubr.f32.gmra.mrb[102].mxu0 %v9325_v6  ;;  %v9341_v37 = vld [vmem:[#allocation2 + $0xb2] sm:$0xff] }
 0x1c6   : > { %6221 = vmatprep.mubr.msk.f32.mxu1 %vm8341_vm0, %v8342_v1  ;;  %6652 = vmatprep.mubr.msk.f32.mxu0 %vm8341_vm0, %v8342_v1 }
 0x1c9   : > { %6222 = vmatmul.mubr.f32.gmra.mrb[128].mxu1 %v8930_v54  ;;  %6653 = vmatmul.mubr.f32.gmra.mrb[104].mxu0 %v9333_v19  ;;  %v9349_v54 = vld [vmem:[#allocation2 + $0xba] sm:$0xff] }
 0x1ca   : > { %6224 = vmatprep.mubr.msk.f32.mxu1 %vm8341_vm0, %v8342_v1  ;;  %6655 = vmatprep.mubr.msk.f32.mxu0 %vm8341_vm0, %v8342_v1 }
 0x1cd   : > { %6225 = vmatmul.mubr.f32.gmra.mrb[130].mxu1 %v8941_v61  ;;  %6656 = vmatmul.mubr.f32.gmra.mrb[106].mxu0 %v9341_v37  ;;  %v1978_v61 = vld [vmem:[#allocation2 + $0xc2] sm:$0xff] }
 0x1ce   : > { %6227 = vmatprep.mubr.msk.f32.mxu1 %vm8341_vm0, %v8342_v1  ;;  %6658 = vmatprep.mubr.msk.f32.mxu0 %vm8341_vm0, %v8342_v1 }
 0x1d1   : > { %6228 = vmatmul.mubr.f32.gmra.mrb[132].mxu1 %v8952_v8  ;;  %6659 = vmatmul.mubr.f32.gmra.mrb[108].mxu0 %v9349_v54  ;;  %v1980_v8 = vld [vmem:[#allocation2 + $0xd2] sm:$0x3] }
 0x1d2   : > { %6230 = vmatprep.mubr.msk.f32.mxu1 %vm8341_vm0, %v8342_v1  ;;  %6661 = vmatprep.mubr.msk.f32.mxu0 %vm8341_vm0, %v8342_v1 }
 0x1d5   : > { %6231 = vmatmul.mubr.f32.gmra.mrb[134].mxu1 %v8961_v14  ;;  %6662 = vmatmul.mubr.f32.gmra.mrb[110].mxu0 %v1978_v61  ;;  %v1725_v14 = vld [vmem:[%s10893_s3 + $0x200] sm:$0xff] }
 0x1d6   : > { %6233 = vmatprep.mubr.msk.f32.mxu1 %vm8341_vm0, %v8342_v1  ;;  %6664 = vmatprep.mubr.msk.f32.mxu0 %vm8341_vm0, %v8342_v1 }
 0x1d9   : > { %6234 = vmatmul.mubr.f32.gmra.mrb[136].mxu1 %v8970_v21  ;;  %6665 = vmatmul.mubr.f32.gmra.mrb[112].mxu0 %v1979_v34  ;;  %v1726_v21 = vld [vmem:[%s10893_s3 + $0x208] sm:$0xff] }
 0x1da   : > { %6236 = vmatprep.mubr.msk.f32.mxu1 %vm8341_vm0, %v8342_v1  ;;  %6667 = vmatprep.mubr.msk.f32.mxu0 %vm8341_vm0, %v8342_v1 }
 0x1dd   : > { %6237 = vmatmul.mubr.f32.gmra.mrb[138].mxu1 %v8979_v29  ;;  %6668 = vmatmul.mubr.f32.gmra.mrb[114].mxu0 %v1980_v8  ;;  %v7652_v29 = vpack.c.bf16 %v1726_v21, %v1725_v14 }
 0x1de   : > { %6239 = vmatprep.mubr.msk.f32.mxu1 %vm8341_vm0, %v8342_v1  ;;  %6809 = vmatprep.mubr.msk.f32.mxu0 %vm8341_vm0, %v8342_v1 }
 0x1e1   : > { %6240 = vmatmul.mubr.f32.gmra.mrb[140].mxu1 %v750_v38  ;;  %6810 = vmatmul.mubr.f32.vlgmr.msra.gmra.mrb[116].mxu0 %v9378_v60  ;;  %v9471_v38 = vld [vmem:[#allocation2 + $0x51] sm:$0xff] }
 0x1e2   : > { %6274 = vmatprep.mubr.msk.f32.mxu1 %vm8341_vm0, %v8342_v1  ;;  %6812 = vmatprep.mubr.msk.f32.mxu0 %vm8341_vm0, %v8342_v1 }
 0x1e5   : > { %6275 = vmatmul.mubr.f32.vlgmr.msra.gmra.mrb[142].mxu1 %v1188_v4  ;;  %6813 = vmatmul.mubr.f32.gmra.mrb[118].mxu0 %v9391_v7 }
 0x1e6   : > { %7653 = vmatpush3.bf16.msra.mxu1 %v7652_v29  ;;  %6277 = vmatprep.mubr.msk.f32.mxu1 %vm8341_vm0, %v8342_v1  ;;  %v1738_v29 = vld [vmem:[%s10893_s3 + $0x268] sm:$0xff] }
 0x1e7   : > { %6815 = vmatprep.mubr.msk.f32.mxu0 %vm8341_vm0, %v8342_v1  ;;  %7654 = vmatprep.subr.bf16.mxu1 %v10901_v0 }
 0x1e9   : > { %6278 = vmatmul.mubr.f32.gmra.mrb[144].mxu1 %v1189_v11  ;;  %6816 = vmatmul.mubr.f32.gmra.mrb[120].mxu0 %v9399_v12 }
 0x1ea   : > { %6280 = vmatprep.mubr.msk.f32.mxu1 %vm8341_vm0, %v8342_v1  ;;  %7656 = vmatpush3.bf16.msra.mxu1 %v7655_v49 }
 0x1eb   : > { %6818 = vmatprep.mubr.msk.f32.mxu0 %vm8341_vm0, %v8342_v1  ;;  %7657 = vmatprep.subr.bf16.mxu1 %v10901_v0 }
 0x1ec   : > { %v9413_v62 = vpop.f32.mrb[16].mxu0 }
 0x1ed   : > { %6281 = vmatmul.mubr.f32.gmra.mrb[146].mxu1 %v9081_v40  ;;  %v6383_v41 = vpop.f32.mrb[17].mxu0  ;;  %6819 = vmatmul.mubr.f32.gmra.mrb[122].mxu0 %v9415_v27  ;;  %v1733_v40 = vld [vmem:[%s10893_s3 + $0x240] sm:$0xff] }
 0x1ee   : > { %6283 = vmatprep.mubr.msk.f32.mxu1 %vm8341_vm0, %v8342_v1  ;;  %6821 = vmatprep.mubr.msk.f32.mxu0 %vm8341_vm0, %v8342_v1  ;;  %v7664_v28 = vpack.c.bf16 %v1734_v47, %v1733_v40  ;;  %v9509_v40 = vld [vmem:[#allocation2 + $0x61] sm:$0xff] }
 0x1ef   : > { %7659 = vmatpush3.bf16.msra.mxu1 %v7658_v25 }
 0x1f0   : > { %v9429_v13 = vpop.f32.mrb[42].mxu1  ;;  %v9431_v43 = vpop.f32.mrb[18].mxu0  ;;  %7660 = vmatprep.subr.bf16.mxu1 %v10901_v0 }
 0x1f1   : > { %v6062_v51 = vpop.f32.mrb[43].mxu1  ;;  %6284 = vmatmul.mubr.f32.gmra.mrb[148].mxu1 %v9100_v46  ;;  %v6386_v53 = vpop.f32.mrb[19].mxu0  ;;  %6822 = vmatmul.mubr.f32.gmra.mrb[124].mxu0 %v9433_v44  ;;  %v1735_v46 = vld [vmem:[%s10893_s3 + $0x250] sm:$0xff] }
 0x1f2   : > { %6286 = vmatprep.mubr.msk.f32.mxu1 %vm8341_vm0, %v8342_v1  ;;  %6824 = vmatprep.mubr.msk.f32.mxu0 %vm8341_vm0, %v8342_v1  ;;  %v7667_v8 = vpack.c.bf16 %v1736_v57, %v1735_v46 }
 0x1f3   : > { %7662 = vmatpush3.bf16.msra.mxu1 %v7661_v42 }
 0x1f4   : > { %v9448_v26 = vpop.f32.mrb[44].mxu1  ;;  %v9450_v55 = vpop.f32.mrb[20].mxu0  ;;  %7663 = vmatprep.subr.bf16.mxu1 %v10901_v0 }
 0x1f5   : > { %v6065_v61 = vpop.f32.mrb[45].mxu1  ;;  %6287 = vmatmul.mubr.f32.gmra.mrb[150].mxu1 %v9117_v30  ;;  %v6389_v34 = vpop.f32.mrb[21].mxu0  ;;  %6825 = vmatmul.mubr.f32.gmra.mrb[126].mxu0 %v9452_v56  ;;  %v1737_v30 = vld [vmem:[%s10893_s3 + $0x260] sm:$0xff] }
 0x1f6   : > { %6289 = vmatprep.mubr.msk.f32.mxu1 %vm8341_vm0, %v8342_v1  ;;  %6827 = vmatprep.mubr.msk.f32.mxu0 %vm8341_vm0, %v8342_v1  ;;  %v7670_v4 = vpack.c.bf16 %v1738_v29, %v1737_v30  ;;  %v9535_v34 = vld [vmem:[#allocation2 + $0x71] sm:$0xff] }
 0x1f7   : > { %7665 = vmatpush3.bf16.msra.mxu1 %v7664_v28  ;;  %v9522_v28 = vld [vmem:[#allocation2 + $0x69] sm:$0xff] }
 0x1f8   : > { %v9467_v14 = vpop.f32.mrb[46].mxu1  ;;  %v9469_v21 = vpop.f32.mrb[22].mxu0  ;;  %7666 = vmatprep.subr.bf16.mxu1 %v10901_v0 }
 0x1f9   : > { %v6068_v63 = vpop.f32.mrb[47].mxu1  ;;  %6290 = vmatmul.mubr.f32.gmra.mrb[152].mxu1 %v9139_v59  ;;  %v6392_v2 = vpop.f32.mrb[23].mxu0  ;;  %6828 = vmatmul.mubr.f32.gmra.mrb[128].mxu0 %v9471_v38  ;;  %v1739_v59 = vld [vmem:[%s10893_s3 + $0x270] sm:$0xff] }
 0x1fa   : > { %6292 = vmatprep.mubr.msk.f32.mxu1 %vm8341_vm0, %v8342_v1  ;;  %6830 = vmatprep.mubr.msk.f32.mxu0 %vm8341_vm0, %v8342_v1  ;;  %v7673_v36 = vpack.c.bf16 %v1740_v24, %v1739_v59  ;;  %v9547_v63 = vld [vmem:[#allocation2 + $0x79] sm:$0xff]  ;;  %v9559_v24 = vld [vmem:[#allocation2 + $0x81] sm:$0xff] }
 0x1fb   : > { %7668 = vmatpush3.bf16.msra.mxu1 %v7667_v8 }
 0x1fc   : > { %v9486_v49 = vpop.f32.mrb[48].mxu1  ;;  %v9488_v11 = vpop.f32.mrb[24].mxu0  ;;  %7669 = vmatprep.subr.bf16.mxu1 %v10901_v0 }
 0x1fd   : > { %v6071_v25 = vpop.f32.mrb[49].mxu1  ;;  %6293 = vmatmul.mubr.f32.gmra.mrb[154].mxu1 %v9160_v10  ;;  %v6395_v33 = vpop.f32.mrb[25].mxu0  ;;  %6831 = vmatmul.mubr.f32.gmra.mrb[130].mxu0 %v9490_v20 }
 0x1fe   : > { %6295 = vmatprep.mubr.msk.f32.mxu1 %vm8341_vm0, %v8342_v1  ;;  %6833 = vmatprep.mubr.msk.f32.mxu0 %vm8341_vm0, %v8342_v1 }
 0x1ff   : > { %7671 = vmatpush3.bf16.msra.mxu1 %v7670_v4 }
 0x200   : > { %v9505_v41 = vpop.f32.mrb[50].mxu1  ;;  %v9507_v42 = vpop.f32.mrb[26].mxu0  ;;  %7672 = vmatprep.subr.bf16.mxu1 %v10901_v0 }
 0x201   : > { %v6074_v10 = vpop.f32.mrb[51].mxu1  ;;  %6296 = vmatmul.mubr.f32.gmra.mrb[156].mxu1 %v9176_v15  ;;  %v6398_v47 = vpop.f32.mrb[27].mxu0  ;;  %6834 = vmatmul.mubr.f32.gmra.mrb[132].mxu0 %v9509_v40 }
 0x202   : > { %6298 = vmatprep.mubr.msk.f32.mxu1 %vm8341_vm0, %v8342_v1  ;;  %6836 = vmatprep.mubr.msk.f32.mxu0 %vm8341_vm0, %v8342_v1  ;;  %v9571_v10 = vld [vmem:[#allocation2 + $0x89] sm:$0xff] }
 0x203   : > { %7674 = vmatpush3.bf16.msra.mxu1 %v7673_v36 }
 0x204   : > { %v9518_v51 = vpop.f32.mrb[52].mxu1  ;;  %v9520_v53 = vpop.f32.mrb[28].mxu0  ;;  %7699 = vmatprep.subr.bf16.mxu1 %v10901_v0  ;;  %v2490_v0 = vld [vmem:[#allocation2 + $0xd1] sm:$0xff] }
 0x205   : > { %v6077_v46 = vpop.f32.mrb[53].mxu1  ;;  %6299 = vmatmul.mubr.f32.gmra.mrb[158].mxu1 %v9198_v35  ;;  %v6401_v15 = vpop.f32.mrb[29].mxu0  ;;  %6837 = vmatmul.mubr.f32.gmra.mrb[134].mxu0 %v9522_v28 }
 0x206   : > { %6301 = vmatprep.mubr.msk.f32.mxu1 %vm8341_vm0, %v8342_v1  ;;  %6839 = vmatprep.mubr.msk.f32.mxu0 %vm8341_vm0, %v8342_v1 }
 0x208   : > { %v9531_v57 = vpop.f32.mrb[54].mxu1  ;;  %v9533_v61 = vpop.f32.mrb[30].mxu0 }
 0x209   : > { %v6080_v8 = vpop.f32.mrb[55].mxu1  ;;  %6302 = vmatmul.mubr.f32.gmra.mrb[160].mxu1 %v9220_v45  ;;  %v6404_v30 = vpop.f32.mrb[31].mxu0  ;;  %6840 = vmatmul.mubr.f32.gmra.mrb[136].mxu0 %v9535_v34 }
 0x20a   : > { %6304 = vmatprep.mubr.msk.f32.mxu1 %vm8341_vm0, %v8342_v1  ;;  %6842 = vmatprep.mubr.msk.f32.mxu0 %vm8341_vm0, %v8342_v1  ;;  %v9583_v8 = vld [vmem:[#allocation2 + $0x91] sm:$0xff] }
 0x20c   : > { %v9543_v35 = vpop.f32.mrb[56].mxu1  ;;  %v9545_v29 = vpop.f32.mrb[32].mxu0 }
 0x20d   : > { %v6083_v2 = vpop.f32.mrb[57].mxu1  ;;  %6305 = vmatmul.mubr.f32.gmra.mrb[162].mxu1 %v9242_v58  ;;  %v6407_v4 = vpop.f32.mrb[33].mxu0  ;;  %6843 = vmatmul.mubr.f32.gmra.mrb[138].mxu0 %v9547_v63 }
 0x20e   : > { %6307 = vmatprep.mubr.msk.f32.mxu1 %vm8341_vm0, %v8342_v1  ;;  %6845 = vmatprep.mubr.msk.f32.mxu0 %vm8341_vm0, %v8342_v1 }
 0x210   : > { %v9555_v45 = vpop.f32.mrb[58].mxu1  ;;  %v9557_v59 = vpop.f32.mrb[34].mxu0 }
 0x211   : > { %v6086_v25 = vpop.f32.mrb[59].mxu1  ;;  %6308 = vmatmul.mubr.f32.gmra.mrb[164].mxu1 %v9252_v48  ;;  %v6410_v33 = vpop.f32.mrb[35].mxu0  ;;  %6846 = vmatmul.mubr.f32.gmra.mrb[140].mxu0 %v9559_v24 }
 0x212   : > { %6310 = vmatprep.mubr.msk.f32.mxu1 %vm8341_vm0, %v8342_v1  ;;  %6848 = vmatprep.mubr.msk.f32.mxu0 %vm8341_vm0, %v8342_v1 }
 0x214   : > { %v9567_v58 = vpop.f32.mrb[60].mxu1  ;;  %v9569_v36 = vpop.f32.mrb[36].mxu0 }
 0x215   : > { %10917 = vst [vmem:[#allocation7_spill] sm:$0xff] %v9569_v36  ;;  %v6089_v47 = vpop.f32.mrb[61].mxu1  ;;  %6311 = vmatmul.mubr.f32.gmra.mrb[166].mxu1 %v9261_v5  ;;  %v6413_v46 = vpop.f32.mrb[37].mxu0  ;;  %6849 = vmatmul.mubr.f32.gmra.mrb[142].mxu0 %v9571_v10 }
 0x216   : > { %6313 = vmatprep.mubr.msk.f32.mxu1 %vm8341_vm0, %v8342_v1  ;;  %6851 = vmatprep.mubr.msk.f32.mxu0 %vm8341_vm0, %v8342_v1 }
 0x218   : > { %v9579_v48 = vpop.f32.mrb[62].mxu1  ;;  %v9581_v15 = vpop.f32.mrb[38].mxu0 }
 0x219   : > { %10918 = vst [vmem:[#allocation8_spill] sm:$0xff] %v9581_v15  ;;  %v6092_v30 = vpop.f32.mrb[63].mxu1  ;;  %6314 = vmatmul.mubr.f32.gmra.mrb[168].mxu1 %v9269_v31  ;;  %v6416_v2 = vpop.f32.mrb[39].mxu0  ;;  %6852 = vmatmul.mubr.f32.gmra.mrb[144].mxu0 %v9583_v8 }
 0x21a   : > { %6316 = vmatprep.mubr.msk.f32.mxu1 %vm8341_vm0, %v8342_v1  ;;  %6854 = vmatprep.mubr.msk.f32.mxu0 %vm8341_vm0, %v8342_v1 }
 0x21c   : > { %v9591_v5 = vpop.f32.mrb[64].mxu1  ;;  %v9593_v4 = vpop.f32.mrb[40].mxu0 }
 0x21d   : > { %10919 = vst [vmem:[#allocation9_spill] sm:$0xff] %v9593_v4  ;;  %v6095_v25 = vpop.f32.mrb[65].mxu1  ;;  %6317 = vmatmul.mubr.f32.gmra.mrb[170].mxu1 %v9277_v39  ;;  %v6419_v33 = vpop.f32.mrb[41].mxu0  ;;  %6855 = vmatmul.mubr.f32.gmra.mrb[146].mxu0 %v9029_v9 }
 0x21e   : > { %6319 = vmatprep.mubr.msk.f32.mxu1 %vm8341_vm0, %v8342_v1  ;;  %6857 = vmatprep.mubr.msk.f32.mxu0 %vm8341_vm0, %v8342_v1 }
 0x220   : > { %v9601_v31 = vpop.f32.mrb[66].mxu1  ;;  %v9603_v47 = vpop.f32.mrb[42].mxu0 }
 0x221   : > { %10920 = vst [vmem:[#allocation10_spill] sm:$0xff] %v9603_v47  ;;  %v6098_v46 = vpop.f32.mrb[67].mxu1  ;;  %6320 = vmatmul.mubr.f32.gmra.mrb[172].mxu1 %v9285_v52  ;;  %v6422_v30 = vpop.f32.mrb[43].mxu0  ;;  %6858 = vmatmul.mubr.f32.gmra.mrb[148].mxu0 %v9038_v17  ;;  %v1700_v47 = vld [vmem:[#allocation2 + $0x11] sm:$0xff] }
 0x222   : > { %6322 = vmatprep.mubr.msk.f32.mxu1 %vm8341_vm0, %v8342_v1  ;;  %6860 = vmatprep.mubr.msk.f32.mxu0 %vm8341_vm0, %v8342_v1 }
 0x224   : > { %v9611_v9 = vpop.f32.mrb[68].mxu1  ;;  %v9613_v39 = vpop.f32.mrb[44].mxu0 }
 0x225   : > { %10921 = vst [vmem:[#allocation11_spill] sm:$0xff] %v9613_v39  ;;  %v6101_v2 = vpop.f32.mrb[69].mxu1  ;;  %6323 = vmatmul.mubr.f32.gmra.mrb[174].mxu1 %v9293_v3  ;;  %v6425_v25 = vpop.f32.mrb[45].mxu0  ;;  %6861 = vmatmul.mubr.f32.gmra.mrb[150].mxu0 %v9046_v23 }
 0x226   : > { %6325 = vmatprep.mubr.msk.f32.mxu1 %vm8341_vm0, %v8342_v1  ;;  %6863 = vmatprep.mubr.msk.f32.mxu0 %vm8341_vm0, %v8342_v1  ;;  %v9645_v25 = vld [vmem:[#allocation2 + $0xc1] sm:$0xff] }
 0x228   : > { %v9621_v17 = vpop.f32.mrb[70].mxu1  ;;  %v9623_v52 = vpop.f32.mrb[46].mxu0 }
 0x229   : > { %10922 = vst [vmem:[#allocation12_spill] sm:$0xff] %v9623_v52  ;;  %v6104_v33 = vpop.f32.mrb[71].mxu1  ;;  %6326 = vmatmul.mubr.f32.gmra.mrb[176].mxu1 %v9301_v16  ;;  %v6428_v46 = vpop.f32.mrb[47].mxu0  ;;  %6864 = vmatmul.mubr.f32.gmra.mrb[152].mxu0 %v9055_v18  ;;  %v2240_v52 = vld [vmem:[%s10893_s3 + $0x318] sm:$0xff] }
 0x22a   : > { %6328 = vmatprep.mubr.msk.f32.mxu1 %vm8341_vm0, %v8342_v1  ;;  %6866 = vmatprep.mubr.msk.f32.mxu0 %vm8341_vm0, %v8342_v1 }
 0x22c   : > { %v9631_v23 = vpop.f32.mrb[72].mxu1  ;;  %v9633_v3 = vpop.f32.mrb[48].mxu0 }
 0x22d   : > { %10923 = vst [vmem:[#allocation13_spill] sm:$0xff] %v9633_v3  ;;  %v6107_v30 = vpop.f32.mrb[73].mxu1  ;;  %6329 = vmatmul.mubr.f32.gmra.mrb[178].mxu1 %v9309_v32  ;;  %v6431_v2 = vpop.f32.mrb[49].mxu0  ;;  %6867 = vmatmul.mubr.f32.gmra.mrb[154].mxu0 %v9062_v22 }
 0x22e   : > { %6331 = vmatprep.mubr.msk.f32.mxu1 %vm8341_vm0, %v8342_v1  ;;  %6869 = vmatprep.mubr.msk.f32.mxu0 %vm8341_vm0, %v8342_v1  ;;  %v9657_v30 = vld [vmem:[#allocation2 + $0xc9] sm:$0xff] }
 0x230   : > { %v9641_v18 = vpop.f32.mrb[74].mxu1  ;;  %v9643_v16 = vpop.f32.mrb[50].mxu0 }
 0x231   : > { %10924 = vst [vmem:[#allocation14_spill] sm:$0xff] %v9643_v16  ;;  %v6110_v33 = vpop.f32.mrb[75].mxu1  ;;  %6332 = vmatmul.mubr.f32.gmra.mrb[180].mxu1 %v9317_v50  ;;  %v6434_v46 = vpop.f32.mrb[51].mxu0  ;;  %6870 = vmatmul.mubr.f32.gmra.mrb[156].mxu0 %v9645_v25  ;;  %v2491_v16 = vld [vmem:[#allocation2 + $0xd9] sm:$0xff] }
 0x232   : > { %6334 = vmatprep.mubr.msk.f32.mxu1 %vm8341_vm0, %v8342_v1  ;;  %6872 = vmatprep.mubr.msk.f32.mxu0 %vm8341_vm0, %v8342_v1 }
 0x234   : > { %v9653_v22 = vpop.f32.mrb[76].mxu1  ;;  %v9655_v32 = vpop.f32.mrb[52].mxu0 }
 0x235   : > { %10925 = vst [vmem:[#allocation15_spill] sm:$0xff] %v9655_v32  ;;  %v6113_v2 = vpop.f32.mrb[77].mxu1  ;;  %6335 = vmatmul.mubr.f32.gmra.mrb[182].mxu1 %v9325_v6  ;;  %v6437_v33 = vpop.f32.mrb[53].mxu0  ;;  %6873 = vmatmul.mubr.f32.gmra.mrb[158].mxu0 %v9657_v30 }
 0x236   : > { %6337 = vmatprep.mubr.msk.f32.mxu1 %vm8341_vm0, %v8342_v1  ;;  %6875 = vmatprep.mubr.msk.f32.mxu0 %vm8341_vm0, %v8342_v1 }
 0x238   : > { %v9665_v50 = vpop.f32.mrb[78].mxu1  ;;  %v9667_v46 = vpop.f32.mrb[54].mxu0 }
 0x239   : > { %10926 = vst [vmem:[#allocation16_spill] sm:$0xff] %v9667_v46  ;;  %v6116_v32 = vpop.f32.mrb[79].mxu1  ;;  %6338 = vmatmul.mubr.f32.gmra.mrb[184].mxu1 %v9333_v19  ;;  %v6440_v2 = vpop.f32.mrb[55].mxu0  ;;  %6876 = vmatmul.mubr.f32.gmra.mrb[160].mxu0 %v2490_v0 }
 0x23a   : > { %6340 = vmatprep.mubr.msk.f32.mxu1 %vm8341_vm0, %v8342_v1  ;;  %6878 = vmatprep.mubr.msk.f32.mxu0 %vm8341_vm0, %v8342_v1  ;;  %v2492_v32 = vld [vmem:[#allocation2 + $0xe1] sm:$0x3] }
 0x23c   : > { %v9674_v6 = vpop.f32.mrb[80].mxu1  ;;  %v9676_v33 = vpop.f32.mrb[56].mxu0 }
 0x23d   : > { %10927 = vst [vmem:[#allocation17_spill] sm:$0xff] %v9676_v33  ;;  %v6119_v3 = vpop.f32.mrb[81].mxu1  ;;  %6341 = vmatmul.mubr.f32.gmra.mrb[186].mxu1 %v9341_v37  ;;  %v6443_v46 = vpop.f32.mrb[57].mxu0  ;;  %6879 = vmatmul.mubr.f32.gmra.mrb[162].mxu0 %v2491_v16  ;;  %v2237_v37 = vld [vmem:[%s10893_s3 + $0x300] sm:$0xff] }
 0x23e   : > { %6343 = vmatprep.mubr.msk.f32.mxu1 %vm8341_vm0, %v8342_v1  ;;  %6881 = vmatprep.mubr.msk.f32.mxu0 %vm8341_vm0, %v8342_v1  ;;  %v2238_v3 = vld [vmem:[%s10893_s3 + $0x308] sm:$0xff]  ;;  %v1212_v46 = vld [vmem:[#allocation2 + $0xc2] sm:$0x3] }
 0x240   : > { %v9683_v0 = vpop.f32.mrb[82].mxu1  ;;  %v9685_v19 = vpop.f32.mrb[58].mxu0 }
 0x241   : > { %10928 = vst [vmem:[#allocation18_spill] sm:$0xff] %v9685_v19  ;;  %v6122_v2 = vpop.f32.mrb[83].mxu1  ;;  %6344 = vmatmul.mubr.f32.gmra.mrb[188].mxu1 %v9349_v54  ;;  %v6446_v33 = vpop.f32.mrb[59].mxu0  ;;  %6882 = vmatmul.mubr.f32.gmra.mrb[164].mxu0 %v2492_v32  ;;  %v2239_v32 = vld [vmem:[%s10893_s3 + $0x310] sm:$0xff] }
 0x242   : > { %6346 = vmatprep.mubr.msk.f32.mxu1 %vm8341_vm0, %v8342_v1  ;;  %v7700_v33 = vpack.c.bf16 %v2238_v3, %v2237_v37  ;;  %v7703_v37 = vpack.c.bf16 %v2240_v52, %v2239_v32  ;;  %v10931_v3 = vmov 0.0|0.0   ;;  %v2243_v32 = vld [vmem:[%s10893_s3 + $0x330] sm:$0xff] }
 0x244   : > { %v9696_v16 = vpop.f32.mrb[84].mxu1  ;;  %v9698_v19 = vpop.f32.mrb[60].mxu0 }
 0x245   : > { %10929 = vst [vmem:[#allocation19_spill] sm:$0xff] %v9698_v19  ;;  %v6125_v2 = vpop.f32.mrb[85].mxu1  ;;  %6347 = vmatmul.mubr.f32.gmra.mrb[190].mxu1 %v1212_v46  ;;  %v6449_v54 = vpop.f32.mrb[61].mxu0  ;;  %v2242_v19 = vld [vmem:[%s10893_s3 + $0x328] sm:$0xff] }
 0x246   : > { %6488 = vmatprep.mubr.msk.f32.mxu1 %vm8341_vm0, %v8342_v1  ;;  %v2241_v54 = vld [vmem:[%s10893_s3 + $0x320] sm:$0xff] }
 0x247   : > { %v7706_v52 = vpack.c.bf16 %v2242_v19, %v2241_v54  ;;  %v2246_v54 = vld [vmem:[%s10893_s3 + $0x348] sm:$0xff] }
 0x248   : > { %v9708_v39 = vpop.f32.mrb[86].mxu1  ;;  %v9710_v4 = vpop.f32.mrb[62].mxu0 }
 0x249   : > { %10930 = vst [vmem:[#allocation20_spill] sm:$0xff] %v9710_v4  ;;  %v6128_v2 = vpop.f32.mrb[87].mxu1  ;;  %6489 = vmatmul.mubr.f32.vlgmr.msra.gmra.mrb[192].mxu1 %v1700_v47  ;;  %v6452_v46 = vpop.f32.mrb[63].mxu0  ;;  %v2244_v4 = vld [vmem:[%s10893_s3 + $0x338] sm:$0xff] }
 0x24a   : > { %7701 = vmatpush3.bf16.msra.mxu1 %v7700_v33  ;;  %6491 = vmatprep.mubr.msk.f32.mxu1 %vm8341_vm0, %v8342_v1  ;;  %v1701_v2 = vld [vmem:[#allocation2 + $0x19] sm:$0xff]  ;;  %v7709_v19 = vpack.c.bf16 %v2244_v4, %v2243_v32  ;;  %v2247_v32 = vld [vmem:[%s10893_s3 + $0x350] sm:$0xff] }
 0x24b   : > { %7702 = vmatprep.subr.bf16.mxu1 %v10931_v3 }
 0x24c   : > { %v9721_v15 = vpop.f32.mrb[88].mxu1  ;;  %v9723_v47 = vpop.f32.mrb[64].mxu0 }
 0x24d   : > { %v6131_v33 = vpop.f32.mrb[89].mxu1  ;;  %6492 = vmatmul.mubr.f32.gmra.mrb[194].mxu1 %v1701_v2  ;;  %v6455_v46 = vpop.f32.mrb[65].mxu0 }
 0x24e   : > { %6494 = vmatprep.mubr.msk.f32.mxu1 %vm8341_vm0, %v8342_v1  ;;  %7704 = vmatpush3.bf16.msra.mxu1 %v7703_v37  ;;  %v2245_v37 = vld [vmem:[%s10893_s3 + $0x340] sm:$0xff] }
 0x24f   : > { %7705 = vmatprep.subr.bf16.mxu1 %v10931_v3 }
 0x250   : > { %v9734_v36 = vpop.f32.mrb[90].mxu1  ;;  %v9736_v33 = vpop.f32.mrb[66].mxu0 }
 0x251   : > { %10932 = vst [vmem:[#allocation21_spill] sm:$0xff] %v9736_v33  ;;  %v6134_v2 = vpop.f32.mrb[91].mxu1  ;;  %6495 = vmatmul.mubr.f32.gmra.mrb[196].mxu1 %v9378_v60  ;;  %v6597_v46 = vpop.f32.mrb[67].mxu0 }
 0x252   : > { %6497 = vmatprep.mubr.msk.f32.mxu1 %vm8341_vm0, %v8342_v1  ;;  %7707 = vmatpush3.bf16.msra.mxu1 %v7706_v52  ;;  %v7712_v52 = vpack.c.bf16 %v2246_v54, %v2245_v37  ;;  %v2249_v54 = vld [vmem:[%s10893_s3 + $0x360] sm:$0xff] }
 0x253   : > { %7708 = vmatprep.subr.bf16.mxu1 %v10931_v3 }
 0x254   : > { %v1064_v33 = vpop.f32.mrb[92].mxu1  ;;  %v9748_v2 = vpop.f32.mrb[68].mxu0 }
 0x255   : > { %v9751_v60 = vadd.f32 %v1064_v33, %v9429_v13  ;;  %v6169_v46 = vpop.f32.mrb[93].mxu1  ;;  %6498 = vmatmul.mubr.f32.gmra.mrb[198].mxu1 %v9391_v7  ;;  %v6600_v4 = vpop.f32.mrb[69].mxu0  ;;  %v2248_v13 = vld [vmem:[%s10893_s3 + $0x358] sm:$0xff] }
 0x256   : > { %6500 = vmatprep.mubr.msk.f32.mxu1 %vm8341_vm0, %v8342_v1  ;;  %7710 = vmatpush3.bf16.msra.mxu1 %v7709_v19  ;;  %v7715_v37 = vpack.c.bf16 %v2248_v13, %v2247_v32  ;;  %v2251_v13 = vld [vmem:[%s10893_s3 + $0x370] sm:$0xff] }
 0x257   : > { %7711 = vmatprep.subr.bf16.mxu1 %v10931_v3 }
 0x258   : > { %v1069_v33 = vpop.f32.mrb[94].mxu1  ;;  %v9763_v46 = vpop.f32.mrb[70].mxu0 }
 0x259   : > { %10933 = vst [vmem:[#allocation22_spill] sm:$0xff] %v9763_v46  ;;  %v9766_v7 = vadd.f32 %v1069_v33, %v9448_v26  ;;  %v6172_v4 = vpop.f32.mrb[95].mxu1  ;;  %6501 = vmatmul.mubr.f32.gmra.mrb[200].mxu1 %v9399_v12  ;;  %v6603_v19 = vpop.f32.mrb[71].mxu0  ;;  %v2250_v26 = vld [vmem:[%s10893_s3 + $0x368] sm:$0xff] }
 0x25a   : > { %6503 = vmatprep.mubr.msk.f32.mxu1 %vm8341_vm0, %v8342_v1  ;;  %7713 = vmatpush3.bf16.msra.mxu1 %v7712_v52  ;;  %v7718_v32 = vpack.c.bf16 %v2250_v26, %v2249_v54 }
 0x25b   : > { %7714 = vmatprep.subr.bf16.mxu1 %v10931_v3 }
 0x25c   : > { %v1074_v33 = vpop.f32.mrb[96].mxu1  ;;  %v9778_v4 = vpop.f32.mrb[72].mxu0 }
 0x25d   : > { %10934 = vst [vmem:[#allocation23_spill] sm:$0xff] %v9778_v4  ;;  %v9781_v12 = vadd.f32 %v1074_v33, %v9467_v14  ;;  %v6175_v19 = vpop.f32.mrb[97].mxu1  ;;  %6504 = vmatmul.mubr.f32.gmra.mrb[202].mxu1 %v9415_v27  ;;  %v6606_v52 = vpop.f32.mrb[73].mxu0  ;;  %v2252_v14 = vld [vmem:[%s10893_s3 + $0x378] sm:$0xff] }
 0x25e   : > { %6506 = vmatprep.mubr.msk.f32.mxu1 %vm8341_vm0, %v8342_v1  ;;  %7716 = vmatpush3.bf16.msra.mxu1 %v7715_v37  ;;  %v7721_v54 = vpack.c.bf16 %v2252_v14, %v2251_v13 }
 0x25f   : > { %7717 = vmatprep.subr.bf16.mxu1 %v10931_v3 }
 0x260   : > { %v1079_v33 = vpop.f32.mrb[98].mxu1  ;;  %v9793_v19 = vpop.f32.mrb[74].mxu0 }
 0x261   : > { %10935 = vst [vmem:[#allocation24_spill] sm:$0xff] %v9793_v19  ;;  %v9796_v27 = vadd.f32 %v1079_v33, %v9486_v49  ;;  %v6178_v52 = vpop.f32.mrb[99].mxu1  ;;  %6507 = vmatmul.mubr.f32.gmra.mrb[204].mxu1 %v9433_v44  ;;  %v6609_v37 = vpop.f32.mrb[75].mxu0 }
 0x262   : > { %6509 = vmatprep.mubr.msk.f32.mxu1 %vm8341_vm0, %v8342_v1  ;;  %7719 = vmatpush3.bf16.msra.mxu1 %v7718_v32 }
 0x263   : > { %7720 = vmatprep.subr.bf16.mxu1 %v10931_v3 }
 0x264   : > { %v1084_v26 = vpop.f32.mrb[100].mxu1  ;;  %v9802_v4 = vpop.f32.mrb[76].mxu0 }
 0x265   : > { %v9805_v46 = vadd.f32 %v1084_v26, %v9505_v41  ;;  %v6181_v19 = vpop.f32.mrb[101].mxu1  ;;  %6510 = vmatmul.mubr.f32.gmra.mrb[206].mxu1 %v9452_v56  ;;  %v6612_v49 = vpop.f32.mrb[77].mxu0 }
 0x266   : > { %6512 = vmatprep.mubr.msk.f32.mxu1 %vm8341_vm0, %v8342_v1  ;;  %7722 = vmatpush3.bf16.msra.mxu1 %v7721_v54 }
 0x267   : > { %7747 = vmatprep.subr.bf16.mxu1 %v10931_v3 }
 0x268   : > { %v1089_v44 = vpop.f32.mrb[102].mxu1  ;;  %v9811_v32 = vpop.f32.mrb[78].mxu0 }
 0x269   : > { %v9814_v13 = vadd.f32 %v1089_v44, %v9518_v51  ;;  %v6184_v14 = vpop.f32.mrb[103].mxu1  ;;  %6513 = vmatmul.mubr.f32.gmra.mrb[208].mxu1 %v9471_v38  ;;  %v6615_v41 = vpop.f32.mrb[79].mxu0 }
 0x26a   : > { %6515 = vmatprep.mubr.msk.f32.mxu1 %vm8341_vm0, %v8342_v1 }
 0x26c   : > { %v1094_v56 = vpop.f32.mrb[104].mxu1  ;;  %v9819_v33 = vpop.f32.mrb[80].mxu0 }
 0x26d   : > { %v9822_v19 = vadd.f32 %v1094_v56, %v9531_v57  ;;  %v6187_v52 = vpop.f32.mrb[105].mxu1  ;;  %6516 = vmatmul.mubr.f32.gmra.mrb[210].mxu1 %v9490_v20  ;;  %v6618_v37 = vpop.f32.mrb[81].mxu0 }
 0x26e   : > { %6518 = vmatprep.mubr.msk.f32.mxu1 %vm8341_vm0, %v8342_v1 }
 0x270   : > { %v1099_v51 = vpop.f32.mrb[106].mxu1  ;;  %v9827_v54 = vpop.f32.mrb[82].mxu0 }
 0x271   : > { %v9830_v38 = vadd.f32 %v1099_v51, %v9543_v35  ;;  %v6190_v26 = vpop.f32.mrb[107].mxu1  ;;  %6519 = vmatmul.mubr.f32.gmra.mrb[212].mxu1 %v9509_v40  ;;  %v6621_v49 = vpop.f32.mrb[83].mxu0 }
 0x272   : > { %6521 = vmatprep.mubr.msk.f32.mxu1 %vm8341_vm0, %v8342_v1 }
 0x274   : > { %v1104_v57 = vpop.f32.mrb[108].mxu1  ;;  %v9835_v44 = vpop.f32.mrb[84].mxu0 }
 0x275   : > { %v9838_v20 = vadd.f32 %v1104_v57, %v9555_v45  ;;  %v6193_v14 = vpop.f32.mrb[109].mxu1  ;;  %6522 = vmatmul.mubr.f32.gmra.mrb[214].mxu1 %v9522_v28  ;;  %v6624_v41 = vpop.f32.mrb[85].mxu0 }
 0x276   : > { %6524 = vmatprep.mubr.msk.f32.mxu1 %vm8341_vm0, %v8342_v1 }
 0x278   : > { %v1109_v35 = vpop.f32.mrb[110].mxu1  ;;  %v9843_v56 = vpop.f32.mrb[86].mxu0 }
 0x279   : > { %v9846_v40 = vadd.f32 %v1109_v35, %v9567_v58  ;;  %v6196_v52 = vpop.f32.mrb[111].mxu1  ;;  %6525 = vmatmul.mubr.f32.gmra.mrb[216].mxu1 %v9535_v34  ;;  %v6627_v37 = vpop.f32.mrb[87].mxu0 }
 0x27a   : > { %6527 = vmatprep.mubr.msk.f32.mxu1 %vm8341_vm0, %v8342_v1 }
 0x27c   : > { %v1114_v45 = vpop.f32.mrb[112].mxu1  ;;  %v9851_v51 = vpop.f32.mrb[88].mxu0 }
 0x27d   : > { %v9854_v28 = vadd.f32 %v1114_v45, %v9579_v48  ;;  %v6199_v26 = vpop.f32.mrb[113].mxu1  ;;  %6528 = vmatmul.mubr.f32.gmra.mrb[218].mxu1 %v9547_v63  ;;  %v6630_v49 = vpop.f32.mrb[89].mxu0 }
 0x27e   : > { %6530 = vmatprep.mubr.msk.f32.mxu1 %vm8341_vm0, %v8342_v1 }
 0x280   : > { %v1119_v58 = vpop.f32.mrb[114].mxu1  ;;  %v9859_v57 = vpop.f32.mrb[90].mxu0 }
 0x281   : > { %v9862_v34 = vadd.f32 %v1119_v58, %v9591_v5  ;;  %v6202_v14 = vpop.f32.mrb[115].mxu1  ;;  %6531 = vmatmul.mubr.f32.gmra.mrb[220].mxu1 %v9559_v24  ;;  %v6633_v41 = vpop.f32.mrb[91].mxu0  ;;  %v1717_v58 = vld [vmem:[#allocation2 + $0x99] sm:$0xff] }
 0x282   : > { %6533 = vmatprep.mubr.msk.f32.mxu1 %vm8341_vm0, %v8342_v1 }
 0x284   : > { %v1124_v48 = vpop.f32.mrb[116].mxu1  ;;  %v9867_v35 = vpop.f32.mrb[92].mxu0 }
 0x285   : > { %v9870_v63 = vadd.f32 %v1124_v48, %v9601_v31  ;;  %v6205_v52 = vpop.f32.mrb[117].mxu1  ;;  %6534 = vmatmul.mubr.f32.gmra.mrb[222].mxu1 %v9571_v10  ;;  %v6636_v37 = vpop.f32.mrb[93].mxu0 }
 0x286   : > { %6536 = vmatprep.mubr.msk.f32.mxu1 %vm8341_vm0, %v8342_v1  ;;  %v1718_v52 = vld [vmem:[#allocation2 + $0xa1] sm:$0xff] }
 0x288   : > { %v1129_v5 = vpop.f32.mrb[118].mxu1  ;;  %v9875_v45 = vpop.f32.mrb[94].mxu0 }
 0x289   : > { %v9878_v24 = vadd.f32 %v1129_v5, %v9611_v9  ;;  %v6208_v26 = vpop.f32.mrb[119].mxu1  ;;  %6537 = vmatmul.mubr.f32.gmra.mrb[224].mxu1 %v9583_v8  ;;  %v6639_v49 = vpop.f32.mrb[95].mxu0 }
 0x28a   : > { %6539 = vmatprep.mubr.msk.f32.mxu1 %vm8341_vm0, %v8342_v1  ;;  %v1719_v49 = vld [vmem:[#allocation2 + $0xa9] sm:$0xff] }
 0x28c   : > { %v1134_v31 = vpop.f32.mrb[120].mxu1  ;;  %v9883_v10 = vpop.f32.mrb[96].mxu0 }
 0x28d   : > { %v9886_v14 = vadd.f32 %v1134_v31, %v9621_v17  ;;  %v6211_v41 = vpop.f32.mrb[121].mxu1  ;;  %6540 = vmatmul.mubr.f32.gmra.mrb[226].mxu1 %v1717_v58  ;;  %v6642_v48 = vpop.f32.mrb[97].mxu0 }
 0x28e   : > { %6542 = vmatprep.mubr.msk.f32.mxu1 %vm8341_vm0, %v8342_v1 }
 0x290   : > { %v1139_v9 = vpop.f32.mrb[122].mxu1  ;;  %v9890_v8 = vpop.f32.mrb[98].mxu0 }
 0x291   : > { %10936 = vst [vmem:[#allocation25_spill] sm:$0xff] %v9890_v8  ;;  %v9893_v37 = vadd.f32 %v1139_v9, %v9631_v23  ;;  %v6214_v5 = vpop.f32.mrb[123].mxu1  ;;  %6543 = vmatmul.mubr.f32.gmra.mrb[228].mxu1 %v1718_v52  ;;  %v6645_v26 = vpop.f32.mrb[99].mxu0  ;;  %v1720_v9 = vld [vmem:[#allocation2 + $0xb1] sm:$0xff] }
 0x292   : > { %6545 = vmatprep.mubr.msk.f32.mxu1 %vm8341_vm0, %v8342_v1 }
 0x294   : > { %v1144_v17 = vpop.f32.mrb[124].mxu1  ;;  %v9897_v31 = vpop.f32.mrb[100].mxu0 }
 0x295   : > { %10937 = vst [vmem:[#allocation26_spill] sm:$0xff] %v9897_v31  ;;  %v9900_v58 = vadd.f32 %v1144_v17, %v9641_v18  ;;  %v6217_v41 = vpop.f32.mrb[125].mxu1  ;;  %6546 = vmatmul.mubr.f32.gmra.mrb[230].mxu1 %v1719_v49  ;;  %v6648_v48 = vpop.f32.mrb[101].mxu0  ;;  %v1721_v17 = vld [vmem:[#allocation2 + $0xb9] sm:$0xff] }
 0x296   : > { %6548 = vmatprep.mubr.msk.f32.mxu1 %vm8341_vm0, %v8342_v1 }
 0x298   : > { %v1149_v23 = vpop.f32.mrb[126].mxu1  ;;  %v9904_v52 = vpop.f32.mrb[102].mxu0 }
 0x299   : > { %v9907_v5 = vadd.f32 %v1149_v23, %v9653_v22  ;;  %v6220_v26 = vpop.f32.mrb[127].mxu1  ;;  %6549 = vmatmul.mubr.f32.gmra.mrb[232].mxu1 %v1720_v9  ;;  %v6651_v8 = vpop.f32.mrb[103].mxu0 }
 0x29a   : > { %6551 = vmatprep.mubr.msk.f32.mxu1 %vm8341_vm0, %v8342_v1 }
 0x29c   : > { %v1154_v18 = vpop.f32.mrb[128].mxu1  ;;  %v9911_v49 = vpop.f32.mrb[104].mxu0 }
 0x29d   : > { %10938 = vst [vmem:[#allocation27_spill] sm:$0xff] %v9911_v49  ;;  %v9914_v41 = vadd.f32 %v1154_v18, %v9665_v50  ;;  %v6223_v48 = vpop.f32.mrb[129].mxu1  ;;  %6552 = vmatmul.mubr.f32.gmra.mrb[234].mxu1 %v1721_v17  ;;  %v6654_v31 = vpop.f32.mrb[105].mxu0 }
 0x29e   : > { %6554 = vmatprep.mubr.msk.f32.mxu1 %vm8341_vm0, %v8342_v1 }
 0x2a0   : > { %v1159_v22 = vpop.f32.mrb[130].mxu1  ;;  %v9918_v23 = vpop.f32.mrb[106].mxu0 }
 0x2a1   : > { %10939 = vst [vmem:[#allocation28_spill] sm:$0xff] %v9918_v23  ;;  %v9921_v8 = vadd.f32 %v1159_v22, %v9674_v6  ;;  %v6226_v9 = vpop.f32.mrb[131].mxu1  ;;  %6555 = vmatmul.mubr.f32.gmra.mrb[236].mxu1 %v9645_v25  ;;  %v6657_v26 = vpop.f32.mrb[107].mxu0  ;;  %v2749_v25 = vld [vmem:[%s10893_s3 + $0x400] sm:$0xff]  ;;  %v2750_v6 = vld [vmem:[%s10893_s3 + $0x408] sm:$0xff] }
 0x2a2   : > { %6557 = vmatprep.mubr.msk.f32.mxu1 %vm8341_vm0, %v8342_v1  ;;  %v1724_v9 = vld [vmem:[#allocation2 + $0xd1] sm:$0x3] }
 0x2a4   : > { %v1164_v50 = vpop.f32.mrb[132].mxu1  ;;  %v9926_v18 = vpop.f32.mrb[108].mxu0 }
 0x2a5   : > { %10940 = vst [vmem:[#allocation29_spill] sm:$0xff] %v9926_v18  ;;  %v9929_v31 = vadd.f32 %v1164_v50, %v9683_v0  ;;  %v6229_v17 = vpop.f32.mrb[133].mxu1  ;;  %6558 = vmatmul.mubr.f32.gmra.mrb[238].mxu1 %v9657_v30  ;;  %v6660_v48 = vpop.f32.mrb[109].mxu0  ;;  %v2752_v18 = vld [vmem:[%s10893_s3 + $0x418] sm:$0xff] }
 0x2a6   : > { %6560 = vmatprep.mubr.msk.f32.mxu1 %vm8341_vm0, %v8342_v1  ;;  %v7748_v17 = vpack.c.bf16 %v2750_v6, %v2749_v25  ;;  %v2751_v48 = vld [vmem:[%s10893_s3 + $0x410] sm:$0xff]  ;;  %v2753_v6 = vld [vmem:[%s10893_s3 + $0x420] sm:$0xff] }
 0x2a7   : > { %v7751_v25 = vpack.c.bf16 %v2752_v18, %v2751_v48 }
 0x2a8   : > { %v1169_v22 = vpop.f32.mrb[134].mxu1  ;;  %v9940_v26 = vpop.f32.mrb[110].mxu0 }
 0x2a9   : > { %10941 = vst [vmem:[#allocation30_spill] sm:$0xff] %v9940_v26  ;;  %v9943_v0 = vadd.f32 %v1169_v22, %v9696_v16  ;;  %v6232_v30 = vpop.f32.mrb[135].mxu1  ;;  %6561 = vmatmul.mubr.f32.gmra.mrb[240].mxu1 %v1724_v9  ;;  %v6663_v50 = vpop.f32.mrb[111].mxu0  ;;  %v2212_v26 = vld [vmem:[#allocation2 + $0x20] sm:$0xff] }
 0x2aa   : > { %6702 = vmatprep.mubr.msk.f32.mxu1 %vm8341_vm0, %v8342_v1  ;;  %v2754_v30 = vld [vmem:[%s10893_s3 + $0x428] sm:$0xff] }
 0x2ab   : > { %v7754_v48 = vpack.c.bf16 %v2754_v30, %v2753_v6  ;;  %v2757_v30 = vld [vmem:[%s10893_s3 + $0x440] sm:$0xff] }
 0x2ac   : > { %v1174_v23 = vpop.f32.mrb[136].mxu1  ;;  %v9953_v49 = vpop.f32.mrb[112].mxu0 }
 0x2ad   : > { %v9956_v16 = vadd.f32 %v1174_v23, %v9708_v39  ;;  %v6235_v22 = vpop.f32.mrb[137].mxu1  ;;  %6703 = vmatmul.mubr.f32.vlgmr.msra.gmra.mrb[242].mxu1 %v2212_v26  ;;  %v6666_v9 = vpop.f32.mrb[113].mxu0  ;;  %v2213_v23 = vld [vmem:[#allocation2 + $0x28] sm:$0xff] }
 0x2ae   : > { %7749 = vmatpush3.bf16.msra.mxu1 %v7748_v17  ;;  %6705 = vmatprep.mubr.msk.f32.mxu1 %vm8341_vm0, %v8342_v1  ;;  %v2755_v22 = vld [vmem:[%s10893_s3 + $0x430] sm:$0xff]  ;;  %v2756_v9 = vld [vmem:[%s10893_s3 + $0x438] sm:$0xff] }
 0x2af   : > { %7750 = vmatprep.subr.bf16.mxu1 %v10931_v3  ;;  %v7757_v6 = vpack.c.bf16 %v2756_v9, %v2755_v22  ;;  %v2759_v9 = vld [vmem:[%s10893_s3 + $0x450] sm:$0xff] }
 0x2b0   : > { %v1179_v39 = vpop.f32.mrb[138].mxu1  ;;  %v9967_v50 = vpop.f32.mrb[114].mxu0 }
 0x2b1   : > { %v9970_v26 = vadd.f32 %v1179_v39, %v9721_v15  ;;  %v6238_v17 = vpop.f32.mrb[139].mxu1  ;;  %6706 = vmatmul.mubr.f32.gmra.mrb[244].mxu1 %v2213_v23  ;;  %v6669_v18 = vpop.f32.mrb[115].mxu0  ;;  %v2214_v39 = vld [vmem:[#allocation2 + $0x30] sm:$0xff] }
 0x2b2   : > { %6708 = vmatprep.mubr.msk.f32.mxu1 %vm8341_vm0, %v8342_v1  ;;  %7752 = vmatpush3.bf16.msra.mxu1 %v7751_v25 }
 0x2b3   : > { %7753 = vmatprep.subr.bf16.mxu1 %v10931_v3 }
 0x2b4   : > { %v1184_v15 = vpop.f32.mrb[140].mxu1  ;;  %v9981_v17 = vpop.f32.mrb[116].mxu0 }
 0x2b5   : > { %10942 = vst [vmem:[#allocation31_spill] sm:$0xff] %v9981_v17  ;;  %v9984_v23 = vadd.f32 %v1184_v15, %v9734_v36  ;;  %v6241_v18 = vpop.f32.mrb[141].mxu1  ;;  %6709 = vmatmul.mubr.f32.gmra.mrb[246].mxu1 %v2214_v39  ;;  %v6811_v25 = vpop.f32.mrb[117].mxu0  ;;  %v2758_v17 = vld [vmem:[%s10893_s3 + $0x448] sm:$0xff]  ;;  %v2215_v15 = vld [vmem:[#allocation2 + $0x38] sm:$0xff] }
 0x2b6   : > { %6711 = vmatprep.mubr.msk.f32.mxu1 %vm8341_vm0, %v8342_v1  ;;  %7755 = vmatpush3.bf16.msra.mxu1 %v7754_v48  ;;  %v7760_v22 = vpack.c.bf16 %v2758_v17, %v2757_v30 }
 0x2b7   : > { %7756 = vmatprep.subr.bf16.mxu1 %v10931_v3 }
 0x2b8   : > { %v1295_v36 = vpop.f32.mrb[142].mxu1  ;;  %v9995_v18 = vpop.f32.mrb[118].mxu0 }
 0x2b9   : > { %10943 = vst [vmem:[#allocation32_spill] sm:$0xff] %v9995_v18  ;;  %v1419_v39 = vadd.f32 %v1295_v36, %v9751_v60  ;;  %v6276_v25 = vpop.f32.mrb[143].mxu1  ;;  %6712 = vmatmul.mubr.f32.gmra.mrb[248].mxu1 %v2215_v15  ;;  %v6814_v48 = vpop.f32.mrb[119].mxu0  ;;  %v2760_v18 = vld [vmem:[%s10893_s3 + $0x458] sm:$0xff]  ;;  %v2216_v15 = vld [vmem:[#allocation2 + $0x40] sm:$0xff] }
 0x2ba   : > { %6714 = vmatprep.mubr.msk.f32.mxu1 %vm8341_vm0, %v8342_v1  ;;  %7758 = vmatpush3.bf16.msra.mxu1 %v7757_v6  ;;  %v7763_v48 = vpack.c.bf16 %v2760_v18, %v2759_v9 }
 0x2bb   : > { %7759 = vmatprep.subr.bf16.mxu1 %v10931_v3  ;;  %v10008_v60 = vadd.f32 %v9413_v62, %v1419_v39  ;;  %v2761_v62 = vld [vmem:[%s10893_s3 + $0x460] sm:$0xff]  ;;  %v2762_v39 = vld [vmem:[%s10893_s3 + $0x468] sm:$0xff] }
 0x2bc   : > { %v1300_v36 = vpop.f32.mrb[144].mxu1  ;;  %v10010_v25 = vpop.f32.mrb[120].mxu0 }
 0x2bd   : > { %10944 = vst [vmem:[#allocation33_spill] sm:$0xff] %v10010_v25  ;;  %v1420_v6 = vadd.f32 %v1300_v36, %v9766_v7  ;;  %v6279_v17 = vpop.f32.mrb[145].mxu1  ;;  %6715 = vmatmul.mubr.f32.gmra.mrb[250].mxu1 %v2216_v15  ;;  %v6817_v30 = vpop.f32.mrb[121].mxu0  ;;  %v2217_v15 = vld [vmem:[#allocation2 + $0x48] sm:$0xff] }
 0x2be   : > { %6717 = vmatprep.mubr.msk.f32.mxu1 %vm8341_vm0, %v8342_v1  ;;  %7761 = vmatpush3.bf16.msra.mxu1 %v7760_v22  ;;  %v7766_v30 = vpack.c.bf16 %v2762_v39, %v2761_v62 }
 0x2bf   : > { %7762 = vmatprep.subr.bf16.mxu1 %v10931_v3  ;;  %v10023_v7 = vadd.f32 %v9431_v43, %v1420_v6  ;;  %v2763_v43 = vld [vmem:[%s10893_s3 + $0x470] sm:$0xff]  ;;  %v2764_v6 = vld [vmem:[%s10893_s3 + $0x478] sm:$0xff] }
 0x2c0   : > { %v1305_v36 = vpop.f32.mrb[146].mxu1  ;;  %v10025_v17 = vpop.f32.mrb[122].mxu0 }
 0x2c1   : > { %10945 = vst [vmem:[#allocation34_spill] sm:$0xff] %v10025_v17  ;;  %v1421_v22 = vadd.f32 %v1305_v36, %v9781_v12  ;;  %v6282_v18 = vpop.f32.mrb[147].mxu1  ;;  %6718 = vmatmul.mubr.f32.gmra.mrb[252].mxu1 %v2217_v15  ;;  %v6820_v9 = vpop.f32.mrb[123].mxu0  ;;  %v2218_v15 = vld [vmem:[#allocation2 + $0x50] sm:$0xff] }
 0x2c2   : > { %6720 = vmatprep.mubr.msk.f32.mxu1 %vm8341_vm0, %v8342_v1  ;;  %7764 = vmatpush3.bf16.msra.mxu1 %v7763_v48  ;;  %v7769_v9 = vpack.c.bf16 %v2764_v6, %v2763_v43  ;;  %v2220_v43 = vld [vmem:[#allocation2 + $0x60] sm:$0xff] }
 0x2c3   : > { %7765 = vmatprep.subr.bf16.mxu1 %v10931_v3  ;;  %v10038_v12 = vadd.f32 %v9450_v55, %v1421_v22  ;;  %v2219_v22 = vld [vmem:[#allocation2 + $0x58] sm:$0xff] }
 0x2c4   : > { %v1310_v36 = vpop.f32.mrb[148].mxu1  ;;  %v10040_v18 = vpop.f32.mrb[124].mxu0 }
 0x2c5   : > { %10946 = vst [vmem:[#allocation35_spill] sm:$0xff] %v10040_v18  ;;  %v1422_v48 = vadd.f32 %v1310_v36, %v9796_v27  ;;  %v6285_v62 = vpop.f32.mrb[149].mxu1  ;;  %6721 = vmatmul.mubr.f32.gmra.mrb[254].mxu1 %v2218_v15  ;;  %v6823_v39 = vpop.f32.mrb[125].mxu0 }
 0x2c6   : > { %6723 = vmatprep.mubr.msk.f32.mxu1 %vm8341_vm0, %v8342_v1  ;;  %7767 = vmatpush3.bf16.msra.mxu1 %v7766_v30  ;;  %v2221_v39 = vld [vmem:[#allocation2 + $0x68] sm:$0xff] }
 0x2c7   : > { %7768 = vmatprep.subr.bf16.mxu1 %v10931_v3  ;;  %v10047_v17 = vadd.f32 %v9469_v21, %v1422_v48 }
 0x2c8   : > { %v1315_v55 = vpop.f32.mrb[150].mxu1  ;;  %v10049_v25 = vpop.f32.mrb[126].mxu0 }
 0x2c9   : > { %v1423_v18 = vadd.f32 %v1315_v55, %v9805_v46  ;;  %v6288_v27 = vpop.f32.mrb[151].mxu1  ;;  %6724 = vmatmul.mubr.f32.gmra.mrb[0].mxu1 %v2219_v22  ;;  %v6826_v36 = vpop.f32.mrb[127].mxu0 }
 0x2ca   : > { %6726 = vmatprep.mubr.msk.f32.mxu1 %vm8341_vm0, %v8342_v1  ;;  %7770 = vmatpush3.bf16.msra.mxu1 %v7769_v9  ;;  %v2222_v27 = vld [vmem:[#allocation2 + $0x70] sm:$0xff] }
 0x2cb   : > { %v10055_v30 = vadd.f32 %v9488_v11, %v1423_v18 }
 0x2cc   : > { %v1320_v3 = vpop.f32.mrb[152].mxu1  ;;  %v10057_v21 = vpop.f32.mrb[128].mxu0 }
 0x2cd   : > { %v1424_v6 = vadd.f32 %v1320_v3, %v9814_v13  ;;  %v6291_v15 = vpop.f32.mrb[153].mxu1  ;;  %6727 = vmatmul.mubr.f32.gmra.mrb[2].mxu1 %v2220_v43  ;;  %v6829_v48 = vpop.f32.mrb[129].mxu0 }
 0x2ce   : > { %6729 = vmatprep.mubr.msk.f32.mxu1 %vm8341_vm0, %v8342_v1  ;;  %v2223_v15 = vld [vmem:[#allocation2 + $0x78] sm:$0xff] }
 0x2cf   : > { %v10063_v46 = vadd.f32 %v9507_v42, %v1424_v6 }
 0x2d0   : > { %v1325_v62 = vpop.f32.mrb[154].mxu1  ;;  %v10065_v9 = vpop.f32.mrb[130].mxu0 }
 0x2d1   : > { %v1425_v11 = vadd.f32 %v1325_v62, %v9822_v19  ;;  %v6294_v18 = vpop.f32.mrb[155].mxu1  ;;  %6730 = vmatmul.mubr.f32.gmra.mrb[4].mxu1 %v2221_v39  ;;  %v6832_v55 = vpop.f32.mrb[131].mxu0 }
 0x2d2   : > { %6732 = vmatprep.mubr.msk.f32.mxu1 %vm8341_vm0, %v8342_v1  ;;  %v2224_v18 = vld [vmem:[#allocation2 + $0x80] sm:$0xff] }
 0x2d3   : > { %v10071_v13 = vadd.f32 %v9520_v53, %v1425_v11 }
 0x2d4   : > { %v1330_v22 = vpop.f32.mrb[156].mxu1  ;;  %v10073_v36 = vpop.f32.mrb[132].mxu0 }
 0x2d5   : > { %v1426_v42 = vadd.f32 %v1330_v22, %v9830_v38  ;;  %v6297_v3 = vpop.f32.mrb[157].mxu1  ;;  %6733 = vmatmul.mubr.f32.gmra.mrb[6].mxu1 %v2222_v27  ;;  %v6835_v43 = vpop.f32.mrb[133].mxu0 }
 0x2d6   : > { %6735 = vmatprep.mubr.msk.f32.mxu1 %vm8341_vm0, %v8342_v1  ;;  %v2225_v3 = vld [vmem:[#allocation2 + $0x88] sm:$0xff] }
 0x2d7   : > { %v10079_v19 = vadd.f32 %v9533_v61, %v1426_v42 }
 0x2d8   : > { %v1335_v6 = vpop.f32.mrb[158].mxu1  ;;  %v10081_v48 = vpop.f32.mrb[134].mxu0 }
 0x2d9   : > { %v1427_v53 = vadd.f32 %v1335_v6, %v9838_v20  ;;  %v6300_v62 = vpop.f32.mrb[159].mxu1  ;;  %6736 = vmatmul.mubr.f32.gmra.mrb[8].mxu1 %v2223_v15  ;;  %v6838_v39 = vpop.f32.mrb[135].mxu0 }
 0x2da   : > { %6738 = vmatprep.mubr.msk.f32.mxu1 %vm8341_vm0, %v8342_v1  ;;  %v2226_v39 = vld [vmem:[#allocation2 + $0x90] sm:$0xff] }
 0x2db   : > { %v10087_v38 = vadd.f32 %v9545_v29, %v1427_v53 }
 0x2dc   : > { %v1340_v11 = vpop.f32.mrb[160].mxu1  ;;  %v10089_v55 = vpop.f32.mrb[136].mxu0 }
 0x2dd   : > { %v1428_v61 = vadd.f32 %v1340_v11, %v9846_v40  ;;  %v6303_v22 = vpop.f32.mrb[161].mxu1  ;;  %6739 = vmatmul.mubr.f32.gmra.mrb[10].mxu1 %v2224_v18  ;;  %v6841_v27 = vpop.f32.mrb[137].mxu0  ;;  %v10947_v40 = vld [vmem:[#allocation7_spill] sm:$0xff] }
 0x2de   : > { %6741 = vmatprep.mubr.msk.f32.mxu1 %vm8341_vm0, %v8342_v1 }
 0x2df   : > { %v10095_v20 = vadd.f32 %v9557_v59, %v1428_v61 }
 0x2e0   : > { %v1345_v42 = vpop.f32.mrb[162].mxu1  ;;  %v10097_v43 = vpop.f32.mrb[138].mxu0 }
 0x2e1   : > { %v1429_v29 = vadd.f32 %v1345_v42, %v9854_v28  ;;  %v6306_v6 = vpop.f32.mrb[163].mxu1  ;;  %6742 = vmatmul.mubr.f32.gmra.mrb[12].mxu1 %v2225_v3  ;;  %v6844_v15 = vpop.f32.mrb[139].mxu0  ;;  %v10948_v28 = vld [vmem:[#allocation8_spill] sm:$0xff] }
 0x2e2   : > { %6744 = vmatprep.mubr.msk.f32.mxu1 %vm8341_vm0, %v8342_v1  ;;  %v2227_v42 = vld [vmem:[#allocation2 + $0x98] sm:$0xff] }
 0x2e3   : > { %v10103_v53 = vadd.f32 %v10947_v40, %v1429_v29 }
 0x2e4   : > { %v1350_v62 = vpop.f32.mrb[164].mxu1  ;;  %v10105_v11 = vpop.f32.mrb[140].mxu0 }
 0x2e5   : > { %v1430_v59 = vadd.f32 %v1350_v62, %v9862_v34  ;;  %v6309_v18 = vpop.f32.mrb[165].mxu1  ;;  %6745 = vmatmul.mubr.f32.gmra.mrb[14].mxu1 %v2226_v39  ;;  %v6847_v61 = vpop.f32.mrb[141].mxu0  ;;  %v10949_v34 = vld [vmem:[#allocation9_spill] sm:$0xff] }
 0x2e6   : > { %6747 = vmatprep.mubr.msk.f32.mxu1 %vm8341_vm0, %v8342_v1  ;;  %v2228_v39 = vld [vmem:[#allocation2 + $0xa0] sm:$0xff] }
 0x2e7   : > { %v10111_v22 = vadd.f32 %v10948_v28, %v1430_v59 }
 0x2e8   : > { %v1355_v27 = vpop.f32.mrb[166].mxu1  ;;  %v10113_v3 = vpop.f32.mrb[142].mxu0 }
 0x2e9   : > { %v1431_v29 = vadd.f32 %v1355_v27, %v9870_v63  ;;  %v6312_v6 = vpop.f32.mrb[167].mxu1  ;;  %6748 = vmatmul.mubr.f32.gmra.mrb[16].mxu1 %v2227_v42  ;;  %v6850_v15 = vpop.f32.mrb[143].mxu0  ;;  %v10951_v63 = vld [vmem:[#allocation10_spill] sm:$0xff] }
 0x2ea   : > { %6750 = vmatprep.mubr.msk.f32.mxu1 %vm8341_vm0, %v8342_v1  ;;  %v2229_v6 = vld [vmem:[#allocation2 + $0xa8] sm:$0xff] }
 0x2eb   : > { %v10119_v40 = vadd.f32 %v10949_v34, %v1431_v29 }
 0x2ec   : > { %v1360_v62 = vpop.f32.mrb[168].mxu1  ;;  %v10121_v18 = vpop.f32.mrb[144].mxu0 }
 0x2ed   : > { %10950 = vst [vmem:[#allocation7_spill] sm:$0xff] %v10121_v18  ;;  %v1432_v59 = vadd.f32 %v1360_v62, %v9878_v24  ;;  %v6315_v61 = vpop.f32.mrb[169].mxu1  ;;  %6751 = vmatmul.mubr.f32.gmra.mrb[18].mxu1 %v2228_v39  ;;  %v6853_v28 = vpop.f32.mrb[145].mxu0  ;;  %v10953_v24 = vld [vmem:[#allocation11_spill] sm:$0xff] }
 0x2ee   : > { %6753 = vmatprep.mubr.msk.f32.mxu1 %vm8341_vm0, %v8342_v1  ;;  %v2230_v61 = vld [vmem:[#allocation2 + $0xb0] sm:$0xff] }
 0x2ef   : > { %v10127_v27 = vadd.f32 %v10951_v63, %v1432_v59 }
 0x2f0   : > { %v1365_v42 = vpop.f32.mrb[170].mxu1  ;;  %v10129_v15 = vpop.f32.mrb[146].mxu0 }
 0x2f1   : > { %10952 = vst [vmem:[#allocation8_spill] sm:$0xff] %v10129_v15  ;;  %v1433_v29 = vadd.f32 %v1365_v42, %v9886_v14  ;;  %v6318_v34 = vpop.f32.mrb[171].mxu1  ;;  %6754 = vmatmul.mubr.f32.gmra.mrb[20].mxu1 %v2229_v6  ;;  %v6856_v18 = vpop.f32.mrb[147].mxu0  ;;  %v10955_v14 = vld [vmem:[#allocation12_spill] sm:$0xff] }
 0x2f2   : > { %6756 = vmatprep.mubr.msk.f32.mxu1 %vm8341_vm0, %v8342_v1  ;;  %v2231_v6 = vld [vmem:[#allocation2 + $0xb8] sm:$0xff] }
 0x2f3   : > { %v10135_v62 = vadd.f32 %v10953_v24, %v1433_v29 }
 0x2f4   : > { %v1370_v39 = vpop.f32.mrb[172].mxu1  ;;  %v10137_v28 = vpop.f32.mrb[148].mxu0 }
 0x2f5   : > { %10954 = vst [vmem:[#allocation9_spill] sm:$0xff] %v10137_v28  ;;  %v1434_v59 = vadd.f32 %v1370_v39, %v9893_v37  ;;  %v6321_v63 = vpop.f32.mrb[173].mxu1  ;;  %6757 = vmatmul.mubr.f32.gmra.mrb[22].mxu1 %v2230_v61  ;;  %v6859_v15 = vpop.f32.mrb[149].mxu0  ;;  %v10957_v37 = vld [vmem:[#allocation13_spill] sm:$0xff] }
 0x2f6   : > { %6759 = vmatprep.mubr.msk.f32.mxu1 %vm8341_vm0, %v8342_v1  ;;  %v2232_v61 = vld [vmem:[#allocation2 + $0xc0] sm:$0xff] }
 0x2f7   : > { %v10143_v18 = vadd.f32 %v10955_v14, %v1434_v59 }
 0x2f8   : > { %v1375_v42 = vpop.f32.mrb[174].mxu1  ;;  %v10145_v34 = vpop.f32.mrb[150].mxu0 }
 0x2f9   : > { %10956 = vst [vmem:[#allocation10_spill] sm:$0xff] %v10145_v34  ;;  %v1435_v29 = vadd.f32 %v1375_v42, %v9900_v58  ;;  %v6324_v24 = vpop.f32.mrb[175].mxu1  ;;  %6760 = vmatmul.mubr.f32.gmra.mrb[24].mxu1 %v2231_v6  ;;  %v6862_v28 = vpop.f32.mrb[151].mxu0  ;;  %v10959_v58 = vld [vmem:[#allocation14_spill] sm:$0xff] }
 0x2fa   : > { %6762 = vmatprep.mubr.msk.f32.mxu1 %vm8341_vm0, %v8342_v1  ;;  %v2233_v6 = vld [vmem:[#allocation2 + $0xc8] sm:$0xff] }
 0x2fb   : > { %v10151_v15 = vadd.f32 %v10957_v37, %v1435_v29 }
 0x2fc   : > { %v1380_v39 = vpop.f32.mrb[176].mxu1  ;;  %v10153_v63 = vpop.f32.mrb[152].mxu0 }
 0x2fd   : > { %10958 = vst [vmem:[#allocation11_spill] sm:$0xff] %v10153_v63  ;;  %v1436_v59 = vadd.f32 %v1380_v39, %v9907_v5  ;;  %v6327_v14 = vpop.f32.mrb[177].mxu1  ;;  %6763 = vmatmul.mubr.f32.gmra.mrb[26].mxu1 %v2232_v61  ;;  %v6865_v34 = vpop.f32.mrb[153].mxu0  ;;  %v10961_v5 = vld [vmem:[#allocation15_spill] sm:$0xff] }
 0x2fe   : > { %6765 = vmatprep.mubr.msk.f32.mxu1 %vm8341_vm0, %v8342_v1  ;;  %v2234_v61 = vld [vmem:[#allocation2 + $0xd0] sm:$0xff] }
 0x2ff   : > { %v10159_v28 = vadd.f32 %v10959_v58, %v1436_v59 }
 0x300   : > { %v1385_v42 = vpop.f32.mrb[178].mxu1  ;;  %v10161_v24 = vpop.f32.mrb[154].mxu0 }
 0x301   : > { %10960 = vst [vmem:[#allocation12_spill] sm:$0xff] %v10161_v24  ;;  %v1437_v29 = vadd.f32 %v1385_v42, %v9914_v41  ;;  %v6330_v37 = vpop.f32.mrb[179].mxu1  ;;  %6766 = vmatmul.mubr.f32.gmra.mrb[28].mxu1 %v2233_v6  ;;  %v6868_v63 = vpop.f32.mrb[155].mxu0  ;;  %v10963_v41 = vld [vmem:[#allocation16_spill] sm:$0xff] }
 0x302   : > { %6768 = vmatprep.mubr.msk.f32.mxu1 %vm8341_vm0, %v8342_v1  ;;  %v2235_v6 = vld [vmem:[#allocation2 + $0xd8] sm:$0xff] }
 0x303   : > { %v10167_v34 = vadd.f32 %v10961_v5, %v1437_v29 }
 0x304   : > { %v1390_v39 = vpop.f32.mrb[180].mxu1  ;;  %v10169_v14 = vpop.f32.mrb[156].mxu0 }
 0x305   : > { %10962 = vst [vmem:[#allocation13_spill] sm:$0xff] %v10169_v14  ;;  %v1438_v59 = vadd.f32 %v1390_v39, %v9921_v8  ;;  %v6333_v58 = vpop.f32.mrb[181].mxu1  ;;  %6769 = vmatmul.mubr.f32.gmra.mrb[30].mxu1 %v2234_v61  ;;  %v6871_v24 = vpop.f32.mrb[157].mxu0  ;;  %v10965_v8 = vld [vmem:[#allocation17_spill] sm:$0xff] }
 0x306   : > { %6771 = vmatprep.mubr.msk.f32.mxu1 %vm8341_vm0, %v8342_v1  ;;  %v2236_v61 = vld [vmem:[#allocation2 + $0xe0] sm:$0x3] }
 0x307   : > { %v10175_v63 = vadd.f32 %v10963_v41, %v1438_v59 }
 0x308   : > { %v1395_v42 = vpop.f32.mrb[182].mxu1  ;;  %v10177_v37 = vpop.f32.mrb[158].mxu0 }
 0x309   : > { %10964 = vst [vmem:[#allocation14_spill] sm:$0xff] %v10177_v37  ;;  %v1439_v29 = vadd.f32 %v1395_v42, %v9929_v31  ;;  %v6336_v5 = vpop.f32.mrb[183].mxu1  ;;  %6772 = vmatmul.mubr.f32.gmra.mrb[32].mxu1 %v2235_v6  ;;  %v6874_v14 = vpop.f32.mrb[159].mxu0  ;;  %v10967_v31 = vld [vmem:[#allocation18_spill] sm:$0xff] }
 0x30a   : > { %6774 = vmatprep.mubr.msk.f32.mxu1 %vm8341_vm0, %v8342_v1  ;;  %v2724_v6 = vld [vmem:[#allocation2 + $0x22] sm:$0xff] }
 0x30b   : > { %v10183_v24 = vadd.f32 %v10965_v8, %v1439_v29 }
 0x30c   : > { %v1400_v39 = vpop.f32.mrb[184].mxu1  ;;  %v10185_v58 = vpop.f32.mrb[160].mxu0 }
 0x30d   : > { %10966 = vst [vmem:[#allocation15_spill] sm:$0xff] %v10185_v58  ;;  %v1440_v59 = vadd.f32 %v1400_v39, %v9943_v0  ;;  %v6339_v41 = vpop.f32.mrb[185].mxu1  ;;  %6775 = vmatmul.mubr.f32.gmra.mrb[34].mxu1 %v2236_v61  ;;  %v6877_v37 = vpop.f32.mrb[161].mxu0  ;;  %v10969_v0 = vld [vmem:[#allocation19_spill] sm:$0xff] }
 0x30e   : > { %6916 = vmatprep.mubr.msk.f32.mxu1 %vm8341_vm0, %v8342_v1  ;;  %v2725_v61 = vld [vmem:[#allocation2 + $0x2a] sm:$0xff] }
 0x30f   : > { %v10191_v14 = vadd.f32 %v10967_v31, %v1440_v59 }
 0x310   : > { %v1405_v42 = vpop.f32.mrb[186].mxu1  ;;  %v10193_v5 = vpop.f32.mrb[162].mxu0 }
 0x311   : > { %10968 = vst [vmem:[#allocation16_spill] sm:$0xff] %v10193_v5  ;;  %v1441_v29 = vadd.f32 %v1405_v42, %v9956_v16  ;;  %v6342_v8 = vpop.f32.mrb[187].mxu1  ;;  %6917 = vmatmul.mubr.f32.vlgmr.msra.gmra.mrb[36].mxu1 %v2724_v6  ;;  %v6880_v58 = vpop.f32.mrb[163].mxu0  ;;  %v10970_v16 = vld [vmem:[#allocation20_spill] sm:$0xff] }
 0x312   : > { %6919 = vmatprep.mubr.msk.f32.mxu1 %vm8341_vm0, %v8342_v1  ;;  %v2726_v6 = vld [vmem:[#allocation2 + $0x32] sm:$0xff] }
 0x313   : > { %v10199_v37 = vadd.f32 %v10969_v0, %v1441_v29 }
 0x314   : > { %v1410_v39 = vpop.f32.mrb[188].mxu1  ;;  %v10201_v41 = vpop.f32.mrb[164].mxu0 }
 0x315   : > { %v1442_v59 = vadd.f32 %v1410_v39, %v9970_v26  ;;  %v6345_v31 = vpop.f32.mrb[189].mxu1  ;;  %6920 = vmatmul.mubr.f32.gmra.mrb[38].mxu1 %v2725_v61  ;;  %v6883_v5 = vpop.f32.mrb[165].mxu0 }
 0x316   : > { %6922 = vmatprep.mubr.msk.f32.mxu1 %vm8341_vm0, %v8342_v1  ;;  %v2727_v5 = vld [vmem:[#allocation2 + $0x3a] sm:$0xff] }
 0x317   : > { %v10207_v58 = vadd.f32 %v10970_v16, %v1442_v59  ;;  %v10971_v59 = vld [vmem:[#allocation21_spill] sm:$0xff] }
 0x318   : > { %v1415_v42 = vpop.f32.mrb[190].mxu1  ;;  %v2728_v16 = vld [vmem:[#allocation2 + $0x42] sm:$0xff] }
 0x319   : > { %v1443_v29 = vadd.f32 %v1415_v42, %v9984_v23  ;;  %v6348_v8 = vpop.f32.mrb[191].mxu1  ;;  %6923 = vmatmul.mubr.f32.gmra.mrb[40].mxu1 %v2726_v6 }
 0x31a   : > { %6925 = vmatprep.mubr.msk.f32.mxu1 %vm8341_vm0, %v8342_v1 }
 0x31b   : > { %v10213_v26 = vadd.f32 %v9723_v47, %v1443_v29  ;;  %v2729_v29 = vld [vmem:[#allocation2 + $0x4a] sm:$0xff] }
 0x31c   : > { %v1807_v0 = vpop.f32.mrb[192].mxu1 }
 0x31d   : > { %v1931_v39 = vadd.f32 %v1807_v0, %v10008_v60  ;;  %v6490_v61 = vpop.f32.mrb[193].mxu1  ;;  %6926 = vmatmul.mubr.f32.gmra.mrb[42].mxu1 %v2727_v5  ;;  %v10972_v5 = vld [vmem:[#allocation22_spill] sm:$0xff] }
 0x31e   : > { %6928 = vmatprep.mubr.msk.f32.mxu1 %vm8341_vm0, %v8342_v1  ;;  %v2730_v61 = vld [vmem:[#allocation2 + $0x52] sm:$0xff] }
 0x31f   : > { %v10219_v31 = vadd.f32 %v10971_v59, %v1931_v39 }
 0x320   : > { %v1812_v23 = vpop.f32.mrb[194].mxu1 }
 0x321   : > { %v1932_v42 = vadd.f32 %v1812_v23, %v10023_v7  ;;  %v6493_v6 = vpop.f32.mrb[195].mxu1  ;;  %6929 = vmatmul.mubr.f32.gmra.mrb[44].mxu1 %v2728_v16 }
 0x322   : > { %6931 = vmatprep.mubr.msk.f32.mxu1 %vm8341_vm0, %v8342_v1 }
 0x323   : > { %v10225_v47 = vadd.f32 %v9748_v2, %v1932_v42  ;;  %v10973_v2 = vld [vmem:[#allocation23_spill] sm:$0xff]  ;;  %v2731_v42 = vld [vmem:[#allocation2 + $0x5a] sm:$0xff] }
 0x324   : > { %v1817_v60 = vpop.f32.mrb[196].mxu1 }
 0x325   : > { %v1933_v8 = vadd.f32 %v1817_v60, %v10038_v12  ;;  %v6496_v0 = vpop.f32.mrb[197].mxu1  ;;  %6932 = vmatmul.mubr.f32.gmra.mrb[46].mxu1 %v2729_v29  ;;  %v10974_v29 = vld [vmem:[#allocation24_spill] sm:$0xff] }
 0x326   : > { %6934 = vmatprep.mubr.msk.f32.mxu1 %vm8341_vm0, %v8342_v1  ;;  %v2732_v0 = vld [vmem:[#allocation2 + $0x62] sm:$0xff] }
 0x327   : > { %v10231_v39 = vadd.f32 %v10972_v5, %v1933_v8 }
 0x328   : > { %v1822_v7 = vpop.f32.mrb[198].mxu1 }
 0x329   : > { %v1934_v59 = vadd.f32 %v1822_v7, %v10047_v17  ;;  %v6499_v23 = vpop.f32.mrb[199].mxu1  ;;  %6935 = vmatmul.mubr.f32.gmra.mrb[48].mxu1 %v2730_v61 }
 0x32a   : > { %6937 = vmatprep.mubr.msk.f32.mxu1 %vm8341_vm0, %v8342_v1 }
 0x32b   : > { %v10237_v16 = vadd.f32 %v10973_v2, %v1934_v59  ;;  %v2733_v59 = vld [vmem:[#allocation2 + $0x6a] sm:$0xff] }
 0x32c   : > { %v1827_v12 = vpop.f32.mrb[200].mxu1 }
 0x32d   : > { %v1935_v6 = vadd.f32 %v1827_v12, %v10055_v30  ;;  %v6502_v60 = vpop.f32.mrb[201].mxu1  ;;  %6938 = vmatmul.mubr.f32.gmra.mrb[50].mxu1 %v2731_v42  ;;  %v3118_v12 = vld [vmem:[#allocation4 + $0x80] sm:$0xff]  ;;  %v3119_v42 = vld [vmem:[#allocation4 + $0x88] sm:$0xff] }
 0x32e   : > { %6940 = vmatprep.mubr.msk.f32.mxu1 %vm8341_vm0, %v8342_v1 }
 0x32f   : > { %v10243_v8 = vadd.f32 %v10974_v29, %v1935_v6  ;;  %v2734_v29 = vld [vmem:[#allocation2 + $0x72] sm:$0xff] }
 0x330   : > { %v1832_v17 = vpop.f32.mrb[202].mxu1 }
 0x331   : > { %v1936_v5 = vadd.f32 %v1832_v17, %v10063_v46  ;;  %v6505_v7 = vpop.f32.mrb[203].mxu1  ;;  %6941 = vmatmul.mubr.f32.gmra.mrb[52].mxu1 %v2732_v0  ;;  %v7771_v46 = vpack.c.bf16 %v3119_v42, %v3118_v12  ;;  %v3121_v12 = vld [vmem:[#allocation4 + $0x98] sm:$0xff] }
 0x332   : > { %6943 = vmatprep.mubr.msk.f32.mxu1 %vm8341_vm0, %v8342_v1 }
 0x333   : > { %v10249_v61 = vadd.f32 %v9802_v4, %v1936_v5  ;;  %7772 = vmatprep.subr.bf16.mxu0 %v7771_v46  ;;  %8063 = vmatprep.subr.bf16.mxu1 %v7771_v46  ;;  %v2735_v5 = vld [vmem:[#allocation2 + $0x7a] sm:$0xff] }
 0x334   : > { %v1837_v30 = vpop.f32.mrb[204].mxu1  ;;  %7774 = vmatpush3.bf16.msra.mxu0 %v7771_v46  ;;  %8071 = vmatpush3.bf16.msra.mxu1 %v7771_v46 }
 0x335   : > { %v1937_v23 = vadd.f32 %v1837_v30, %v10071_v13  ;;  %v6508_v2 = vpop.f32.mrb[205].mxu1  ;;  %6944 = vmatmul.mubr.f32.gmra.mrb[54].mxu1 %v2733_v59  ;;  %v2736_v59 = vld [vmem:[#allocation2 + $0x82] sm:$0xff] }
 0x336   : > { %6946 = vmatprep.mubr.msk.f32.mxu1 %vm8341_vm0, %v8342_v1 }
 0x337   : > { %v10255_v6 = vadd.f32 %v9811_v32, %v1937_v23 }
 0x338   : > { %v1842_v60 = vpop.f32.mrb[206].mxu1 }
 0x339   : > { %v1938_v4 = vadd.f32 %v1842_v60, %v10079_v19  ;;  %v6511_v17 = vpop.f32.mrb[207].mxu1  ;;  %6947 = vmatmul.mubr.f32.gmra.mrb[56].mxu1 %v2734_v29  ;;  %v2737_v60 = vld [vmem:[#allocation2 + $0x8a] sm:$0xff] }
 0x33a   : > { %6949 = vmatprep.mubr.msk.f32.mxu1 %vm8341_vm0, %v8342_v1  ;;  %v2738_v17 = vld [vmem:[#allocation2 + $0x92] sm:$0xff] }
 0x33b   : > { %v10261_v13 = vadd.f32 %v9819_v33, %v1938_v4  ;;  %v3120_v33 = vld [vmem:[#allocation4 + $0x90] sm:$0xff] }
 0x33c   : > { %v1847_v0 = vpop.f32.mrb[208].mxu1 }
 0x33d   : > { %v1939_v32 = vadd.f32 %v1847_v0, %v10087_v38  ;;  %v6514_v7 = vpop.f32.mrb[209].mxu1  ;;  %6950 = vmatmul.mubr.f32.gmra.mrb[58].mxu1 %v2735_v5  ;;  %v7775_v38 = vpack.c.bf16 %v3121_v12, %v3120_v33  ;;  %v2740_v33 = vld [vmem:[#allocation2 + $0xa2] sm:$0xff] }
 0x33e   : > { %6952 = vmatprep.mubr.msk.f32.mxu1 %vm8341_vm0, %v8342_v1 }
 0x33f   : > { %v10267_v19 = vadd.f32 %v9827_v54, %v1939_v32  ;;  %7776 = vmatprep.subr.bf16.mxu0 %v7775_v38  ;;  %8064 = vmatprep.subr.bf16.mxu1 %v7775_v38  ;;  %v2739_v32 = vld [vmem:[#allocation2 + $0x9a] sm:$0xff] }
 0x340   : > { %v1852_v30 = vpop.f32.mrb[210].mxu1  ;;  %7778 = vmatpush3.bf16.msra.mxu0 %v7775_v38  ;;  %8072 = vmatpush3.bf16.msra.mxu1 %v7775_v38 }
 0x341   : > { %v1940_v23 = vadd.f32 %v1852_v30, %v10095_v20  ;;  %v6517_v2 = vpop.f32.mrb[211].mxu1  ;;  %6953 = vmatmul.mubr.f32.gmra.mrb[60].mxu1 %v2736_v59  ;;  %v3123_v59 = vld [vmem:[#allocation4 + $0xa8] sm:$0xff] }
 0x342   : > { %6955 = vmatprep.mubr.msk.f32.mxu1 %vm8341_vm0, %v8342_v1 }
 0x343   : > { %v10273_v42 = vadd.f32 %v9835_v44, %v1940_v23 }
 0x344   : > { %v1857_v46 = vpop.f32.mrb[212].mxu1 }
 0x345   : > { %v1941_v54 = vadd.f32 %v1857_v46, %v10103_v53  ;;  %v6520_v29 = vpop.f32.mrb[213].mxu1  ;;  %6956 = vmatmul.mubr.f32.gmra.mrb[62].mxu1 %v2737_v60  ;;  %v2741_v46 = vld [vmem:[#allocation2 + $0xaa] sm:$0xff] }
 0x346   : > { %6958 = vmatprep.mubr.msk.f32.mxu1 %vm8341_vm0, %v8342_v1  ;;  %v2742_v29 = vld [vmem:[#allocation2 + $0xb2] sm:$0xff] }
 0x347   : > { %v10279_v20 = vadd.f32 %v9843_v56, %v1941_v54  ;;  %v3122_v56 = vld [vmem:[#allocation4 + $0xa0] sm:$0xff] }
 0x348   : > { %v1862_v4 = vpop.f32.mrb[214].mxu1 }
 0x349   : > { %v1942_v44 = vadd.f32 %v1862_v4, %v10111_v22  ;;  %v6523_v0 = vpop.f32.mrb[215].mxu1  ;;  %6959 = vmatmul.mubr.f32.gmra.mrb[64].mxu1 %v2738_v17  ;;  %v7779_v22 = vpack.c.bf16 %v3123_v59, %v3122_v56  ;;  %v2744_v59 = vld [vmem:[#allocation2 + $0xc2] sm:$0xff] }
 0x34a   : > { %6961 = vmatprep.mubr.msk.f32.mxu1 %vm8341_vm0, %v8342_v1 }
 0x34b   : > { %v10285_v53 = vadd.f32 %v9851_v51, %v1942_v44  ;;  %7780 = vmatprep.subr.bf16.mxu0 %v7779_v22  ;;  %8065 = vmatprep.subr.bf16.mxu1 %v7779_v22  ;;  %v2743_v44 = vld [vmem:[#allocation2 + $0xba] sm:$0xff] }
 0x34c   : > { %v1867_v5 = vpop.f32.mrb[216].mxu1  ;;  %7782 = vmatpush3.bf16.msra.mxu0 %v7779_v22  ;;  %8073 = vmatpush3.bf16.msra.mxu1 %v7779_v22 }
 0x34d   : > { %v1943_v7 = vadd.f32 %v1867_v5, %v10119_v40  ;;  %v6526_v30 = vpop.f32.mrb[217].mxu1  ;;  %6962 = vmatmul.mubr.f32.gmra.mrb[66].mxu1 %v2739_v32  ;;  %v3125_v32 = vld [vmem:[#allocation4 + $0xb8] sm:$0xff] }
 0x34e   : > { %6964 = vmatprep.mubr.msk.f32.mxu1 %vm8341_vm0, %v8342_v1 }
 0x34f   : > { %v10291_v23 = vadd.f32 %v9859_v57, %v1943_v7  ;;  %v10975_v7 = vld [vmem:[#allocation25_spill] sm:$0xff] }
 0x350   : > { %v1872_v2 = vpop.f32.mrb[218].mxu1 }
 0x351   : > { %v1944_v51 = vadd.f32 %v1872_v2, %v10127_v27  ;;  %v6529_v12 = vpop.f32.mrb[219].mxu1  ;;  %6965 = vmatmul.mubr.f32.gmra.mrb[68].mxu1 %v2740_v33 }
 0x352   : > { %6967 = vmatprep.mubr.msk.f32.mxu1 %vm8341_vm0, %v8342_v1 }
 0x353   : > { %v10297_v40 = vadd.f32 %v9867_v35, %v1944_v51  ;;  %v2745_v51 = vld [vmem:[#allocation2 + $0xca] sm:$0xff] }
 0x354   : > { %v1877_v38 = vpop.f32.mrb[220].mxu1 }
 0x355   : > { %v1945_v57 = vadd.f32 %v1877_v38, %v10135_v62  ;;  %v6532_v60 = vpop.f32.mrb[221].mxu1  ;;  %6968 = vmatmul.mubr.f32.gmra.mrb[70].mxu1 %v2741_v46 }
 0x356   : > { %6970 = vmatprep.mubr.msk.f32.mxu1 %vm8341_vm0, %v8342_v1 }
 0x357   : > { %v10303_v27 = vadd.f32 %v9875_v45, %v1945_v57  ;;  %v3124_v45 = vld [vmem:[#allocation4 + $0xb0] sm:$0xff]  ;;  %v2746_v57 = vld [vmem:[#allocation2 + $0xd2] sm:$0xff] }
 0x358   : > { %v1882_v54 = vpop.f32.mrb[222].mxu1 }
 0x359   : > { %v1946_v4 = vadd.f32 %v1882_v54, %v10143_v18  ;;  %v6535_v17 = vpop.f32.mrb[223].mxu1  ;;  %6971 = vmatmul.mubr.f32.gmra.mrb[72].mxu1 %v2742_v29  ;;  %v7783_v18 = vpack.c.bf16 %v3125_v32, %v3124_v45  ;;  %v10977_v29 = vld [vmem:[#allocation27_spill] sm:$0xff] }
 0x35a   : > { %6973 = vmatprep.mubr.msk.f32.mxu1 %vm8341_vm0, %v8342_v1  ;;  %v2747_v17 = vld [vmem:[#allocation2 + $0xda] sm:$0xff] }
 0x35b   : > { %v10309_v35 = vadd.f32 %v9883_v10, %v1946_v4  ;;  %7784 = vmatprep.subr.bf16.mxu0 %v7783_v18  ;;  %8066 = vmatprep.subr.bf16.mxu1 %v7783_v18 }
 0x35c   : > { %v1887_v62 = vpop.f32.mrb[224].mxu1  ;;  %7786 = vmatpush3.bf16.msra.mxu0 %v7783_v18  ;;  %8074 = vmatpush3.bf16.msra.mxu1 %v7783_v18  ;;  %v2748_v18 = vld [vmem:[#allocation2 + $0xe2] sm:$0x3] }
 0x35d   : > { %v1947_v0 = vadd.f32 %v1887_v62, %v10151_v15  ;;  %v6538_v5 = vpop.f32.mrb[225].mxu1  ;;  %6974 = vmatmul.mubr.f32.gmra.mrb[74].mxu1 %v2743_v44  ;;  %v10976_v15 = vld [vmem:[#allocation26_spill] sm:$0xff] }
 0x35e   : > { %6976 = vmatprep.mubr.msk.f32.mxu1 %vm8341_vm0, %v8342_v1  ;;  %v10978_v5 = vld [vmem:[#allocation28_spill] sm:$0xff] }
 0x35f   : > { %v10315_v30 = vadd.f32 %v10975_v7, %v1947_v0  ;;  %v3127_v0 = vld [vmem:[#allocation4 + $0xc8] sm:$0xff] }
 0x360   : > { %v1892_v56 = vpop.f32.mrb[226].mxu1 }
 0x361   : > { %v1948_v10 = vadd.f32 %v1892_v56, %v10159_v28  ;;  %v6541_v22 = vpop.f32.mrb[227].mxu1  ;;  %6977 = vmatmul.mubr.f32.gmra.mrb[76].mxu1 %v2744_v59  ;;  %v3129_v59 = vld [vmem:[#allocation4 + $0xd8] sm:$0xff] }
 0x362   : > { %6979 = vmatprep.mubr.msk.f32.mxu1 %vm8341_vm0, %v8342_v1  ;;  %v10979_v22 = vld [vmem:[#allocation29_spill] sm:$0xff] }
 0x363   : > { %v10321_v2 = vadd.f32 %v10976_v15, %v1948_v10 }
 0x364   : > { %v1897_v33 = vpop.f32.mrb[228].mxu1 }
 0x365   : > { %v1949_v12 = vadd.f32 %v1897_v33, %v10167_v34  ;;  %v6544_v38 = vpop.f32.mrb[229].mxu1  ;;  %6980 = vmatmul.mubr.f32.gmra.mrb[78].mxu1 %v2745_v51 }
 0x366   : > { %6982 = vmatprep.mubr.msk.f32.mxu1 %vm8341_vm0, %v8342_v1  ;;  %v3131_v38 = vld [vmem:[#allocation4 + $0xe8] sm:$0xff] }
 0x367   : > { %v10327_v28 = vadd.f32 %v9904_v52, %v1949_v12  ;;  %v3126_v52 = vld [vmem:[#allocation4 + $0xc0] sm:$0xff] }
 0x368   : > { %v1902_v46 = vpop.f32.mrb[230].mxu1  ;;  %v3130_v12 = vld [vmem:[#allocation4 + $0xe0] sm:$0xff] }
 0x369   : > { %v1950_v60 = vadd.f32 %v1902_v46, %v10175_v63  ;;  %v6547_v54 = vpop.f32.mrb[231].mxu1  ;;  %6983 = vmatmul.mubr.f32.gmra.mrb[80].mxu1 %v2746_v57  ;;  %v7787_v63 = vpack.c.bf16 %v3127_v0, %v3126_v52  ;;  %v10980_v46 = vld [vmem:[#allocation30_spill] sm:$0xff] }
 0x36a   : > { %6985 = vmatprep.mubr.msk.f32.mxu1 %vm8341_vm0, %v8342_v1 }
 0x36b   : > { %v10333_v4 = vadd.f32 %v10977_v29, %v1950_v60  ;;  %7788 = vmatprep.subr.bf16.mxu0 %v7787_v63  ;;  %8067 = vmatprep.subr.bf16.mxu1 %v7787_v63 }
 0x36c   : > { %v1907_v34 = vpop.f32.mrb[232].mxu1  ;;  %7790 = vmatpush3.bf16.msra.mxu0 %v7787_v63  ;;  %8075 = vmatpush3.bf16.msra.mxu1 %v7787_v63 }
 0x36d   : > { %v1951_v62 = vadd.f32 %v1907_v34, %v10183_v24  ;;  %v6550_v44 = vpop.f32.mrb[233].mxu1  ;;  %6986 = vmatmul.mubr.f32.gmra.mrb[82].mxu1 %v2747_v17  ;;  %v3128_v24 = vld [vmem:[#allocation4 + $0xd0] sm:$0xff]  ;;  %v3133_v17 = vld [vmem:[#allocation4 + $0xf8] sm:$0xff] }
 0x36e   : > { %6988 = vmatprep.mubr.msk.f32.mxu1 %vm8341_vm0, %v8342_v1  ;;  %v7791_v10 = vpack.c.bf16 %v3129_v59, %v3128_v24  ;;  %v3132_v34 = vld [vmem:[#allocation4 + $0xf0] sm:$0xff]  ;;  %v10982_v59 = vld [vmem:[#allocation32_spill] sm:$0xff] }
 0x36f   : > { %v10339_v45 = vadd.f32 %v10978_v5, %v1951_v62  ;;  %v7799_v62 = vpack.c.bf16 %v3133_v17, %v3132_v34 }
 0x370   : > { %v1912_v32 = vpop.f32.mrb[234].mxu1  ;;  %7792 = vmatprep.subr.bf16.mxu0 %v7791_v10  ;;  %8068 = vmatprep.subr.bf16.mxu1 %v7791_v10 }
 0x371   : > { %v1952_v7 = vadd.f32 %v1912_v32, %v10191_v14  ;;  %v6553_v56 = vpop.f32.mrb[235].mxu1  ;;  %6989 = vmatmul.mubr.f32.gmra.mrb[84].mxu1 %v2748_v18  ;;  %7794 = vmatpush3.bf16.msra.mxu0 %v7791_v10  ;;  %v7795_v14 = vpack.c.bf16 %v3131_v38, %v3130_v12  ;;  %v10981_v18 = vld [vmem:[#allocation31_spill] sm:$0xff]  ;;  %v10984_v38 = vld [vmem:[#allocation34_spill] sm:$0xff] }
 0x372   : > { %8076 = vmatpush3.bf16.msra.mxu1 %v7791_v10 }
 0x373   : > { %v10343_v15 = vadd.f32 %v10979_v22, %v1952_v7  ;;  %7796 = vmatprep.subr.bf16.mxu0 %v7795_v14  ;;  %8069 = vmatprep.subr.bf16.mxu1 %v7795_v14 }
 0x374   : > { %v1917_v1 = vpop.f32.mrb[236].mxu1 }
 0x375   : > { %v1953_v33 = vadd.f32 %v1917_v1, %v10199_v37  ;;  %v6556_v51 = vpop.f32.mrb[237].mxu1  ;;  %7798 = vmatpush3.bf16.msra.mxu0 %v7795_v14 }
 0x376   : > { %8077 = vmatpush3.bf16.msra.mxu1 %v7795_v14  ;;  %7800 = vmatprep.subr.bf16.mxu0 %v7799_v62 }
 0x377   : > { %v10347_v57 = vadd.f32 %v10980_v46, %v1953_v33  ;;  %8070 = vmatprep.subr.bf16.mxu1 %v7799_v62 }
 0x378   : > { %v1922_v60 = vpop.f32.mrb[238].mxu1 }
 0x379   : > { %v1954_v54 = vadd.f32 %v1922_v60, %v10207_v58  ;;  %v6559_v29 = vpop.f32.mrb[239].mxu1  ;;  %7802 = vmatpush3.bf16.msra.mxu0 %v7799_v62 }
 0x37a   : > { %8078 = vmatpush3.bf16.msra.mxu1 %v7799_v62 }
 0x37b   : > { %v10351_v37 = vadd.f32 %v9953_v49, %v1954_v54  ;;  %v10985_v54 = vld [vmem:[#allocation35_spill] sm:$0xff] }
 0x37c   : > { %v1927_v44 = vpop.f32.mrb[240].mxu1 }
 0x37d   : > { %v1955_v52 = vadd.f32 %v1927_v44, %v10213_v26  ;;  %v6562_v0 = vpop.f32.mrb[241].mxu1 }
 0x37f   : > { %v10355_v63 = vadd.f32 %v9967_v50, %v1955_v52  ;;  %v10983_v50 = vld [vmem:[#allocation33_spill] sm:$0xff] }
 0x380   : > { %v2319_v58 = vpop.f32.mrb[242].mxu1 }
 0x381   : > { %v2443_v5 = vadd.f32 %v2319_v58, %v10219_v31  ;;  %v6704_v32 = vpop.f32.mrb[243].mxu1 }
 0x383   : > { %v10359_v7 = vadd.f32 %v10981_v18, %v2443_v5  ;;  %v3082_v18 = vld [vmem:[#allocation4] sm:$0xff] }
 0x384   : > { %v2324_v49 = vpop.f32.mrb[244].mxu1 }
 0x385   : > { %v2444_v56 = vadd.f32 %v2324_v49, %v10225_v47  ;;  %v6707_v24 = vpop.f32.mrb[245].mxu1 }
 0x387   : > { %v10363_v10 = vadd.f32 %v10982_v59, %v2444_v56 }
 0x388   : > { %v2329_v26 = vpop.f32.mrb[246].mxu1 }
 0x389   : > { %v2445_v22 = vadd.f32 %v2329_v26, %v10231_v39  ;;  %v6710_v1 = vpop.f32.mrb[247].mxu1 }
 0x38b   : > { %v10367_v33 = vadd.f32 %v10983_v50, %v2445_v22 }
 0x38c   : > { %v2334_v51 = vpop.f32.mrb[248].mxu1 }
 0x38d   : > { %v2446_v31 = vadd.f32 %v2334_v51, %v10237_v16  ;;  %v6713_v12 = vpop.f32.mrb[249].mxu1 }
 0x38f   : > { %v10371_v14 = vadd.f32 %v10984_v38, %v2446_v31 }
 0x390   : > { %v2339_v46 = vpop.f32.mrb[250].mxu1 }
 0x391   : > { %v2447_v47 = vadd.f32 %v2339_v46, %v10243_v8  ;;  %v6716_v60 = vpop.f32.mrb[251].mxu1 }
 0x393   : > { %v10375_v29 = vadd.f32 %v10985_v54, %v2447_v47 }
 0x394   : > { %v2344_v34 = vpop.f32.mrb[252].mxu1 }
 0x395   : > { %v2448_v39 = vadd.f32 %v2344_v34, %v10249_v61  ;;  %v6719_v17 = vpop.f32.mrb[253].mxu1  ;;  %v3083_v61 = vld [vmem:[#allocation4 + $0x8] sm:$0xff] }
 0x396   : > { %v10389_v56 = vpack.c.bf16 %v3083_v61, %v3082_v18  ;;  %v10989_v18 = vld [vmem:[#allocation10_spill] sm:$0xff] }
 0x397   : > { %v10379_v62 = vadd.f32 %v10049_v25, %v2448_v39 }
 0x398   : > { %v2349_v44 = vpop.f32.mrb[254].mxu1  ;;  %7804 = vmatprep.subr.bf16.mxu0 %v10389_v56 }
 0x399   : > { %v2449_v16 = vadd.f32 %v2349_v44, %v10255_v6  ;;  %v6722_v52 = vpop.f32.mrb[255].mxu1 }
 0x39b   : > { %v10383_v0 = vadd.f32 %v10057_v21, %v2449_v16 }
 0x39c   : > { %v2354_v58 = vpop.f32.mrb[0].mxu1 }
 0x39d   : > { %v2450_v8 = vadd.f32 %v2354_v58, %v10261_v13  ;;  %v6725_v5 = vpop.f32.mrb[1].mxu1 }
 0x39f   : > { %v10387_v32 = vadd.f32 %v10065_v9, %v2450_v8 }
 0x3a0   : > { %v2359_v49 = vpop.f32.mrb[2].mxu1 }
 0x3a1   : > { %v2451_v25 = vadd.f32 %v2359_v49, %v10267_v19  ;;  %v6728_v24 = vpop.f32.mrb[3].mxu1 }
 0x3a2   : > { %v10990_v24 = vld [vmem:[#allocation11_spill] sm:$0xff] }
 0x3a3   : > { %v10394_v21 = vadd.f32 %v10073_v36, %v2451_v25 }
 0x3a4   : > { %v2364_v6 = vpop.f32.mrb[4].mxu1 }
 0x3a5   : > { %v2452_v13 = vadd.f32 %v2364_v6, %v10273_v42  ;;  %v6731_v59 = vpop.f32.mrb[5].mxu1 }
 0x3a7   : > { %v10398_v9 = vadd.f32 %v10081_v48, %v2452_v13 }
 0x3a8   : > { %v2369_v26 = vpop.f32.mrb[6].mxu1 }
 0x3a9   : > { %v2453_v22 = vadd.f32 %v2369_v26, %v10279_v20  ;;  %v6734_v1 = vpop.f32.mrb[7].mxu1  ;;  %v10991_v26 = vld [vmem:[#allocation12_spill] sm:$0xff] }
 0x3ab   : > { %v10402_v50 = vadd.f32 %v10089_v55, %v2453_v22 }
 0x3ac   : > { %v2374_v19 = vpop.f32.mrb[8].mxu1 }
 0x3ad   : > { %v2454_v51 = vadd.f32 %v2374_v19, %v10285_v53  ;;  %v6737_v31 = vpop.f32.mrb[9].mxu1 }
 0x3af   : > { %v10406_v36 = vadd.f32 %v10097_v43, %v2454_v51  ;;  %v10986_v43 = vld [vmem:[#allocation7_spill] sm:$0xff]  ;;  %v10992_v51 = vld [vmem:[#allocation13_spill] sm:$0xff] }
 0x3b0   : > { %v2379_v12 = vpop.f32.mrb[10].mxu1 }
 0x3b1   : > { %v2455_v42 = vadd.f32 %v2379_v12, %v10291_v23  ;;  %v6740_v38 = vpop.f32.mrb[11].mxu1 }
 0x3b2   : > { %v10993_v38 = vld [vmem:[#allocation14_spill] sm:$0xff] }
 0x3b3   : > { %v10410_v48 = vadd.f32 %v10105_v11, %v2455_v42  ;;  %v10987_v11 = vld [vmem:[#allocation8_spill] sm:$0xff] }
 0x3b4   : > { %v2384_v46 = vpop.f32.mrb[12].mxu1 }
 0x3b5   : > { %v2456_v20 = vadd.f32 %v2384_v46, %v10297_v40  ;;  %v6743_v47 = vpop.f32.mrb[13].mxu1 }
 0x3b7   : > { %v10414_v55 = vadd.f32 %v10113_v3, %v2456_v20  ;;  %v10988_v3 = vld [vmem:[#allocation9_spill] sm:$0xff] }
 0x3b8   : > { %v2389_v60 = vpop.f32.mrb[14].mxu1 }
 0x3b9   : > { %v2457_v53 = vadd.f32 %v2389_v60, %v10303_v27  ;;  %v6746_v54 = vpop.f32.mrb[15].mxu1  ;;  %v10994_v60 = vld [vmem:[#allocation15_spill] sm:$0xff] }
 0x3bb   : > { %v10418_v34 = vadd.f32 %v10986_v43, %v2457_v53 }
 0x3bc   : > { %v2394_v39 = vpop.f32.mrb[16].mxu1 }
 0x3bd   : > { %v2458_v23 = vadd.f32 %v2394_v39, %v10309_v35  ;;  %v6749_v17 = vpop.f32.mrb[17].mxu1  ;;  %v10995_v39 = vld [vmem:[#allocation16_spill] sm:$0xff] }
 0x3bf   : > { %v10422_v44 = vadd.f32 %v10987_v11, %v2458_v23 }
 0x3c0   : > { %v2399_v16 = vpop.f32.mrb[18].mxu1 }
 0x3c1   : > { %v2459_v40 = vadd.f32 %v2399_v16, %v10315_v30  ;;  %v6752_v52 = vpop.f32.mrb[19].mxu1 }
 0x3c3   : > { %v10426_v58 = vadd.f32 %v10988_v3, %v2459_v40 }
 0x3c4   : > { %v2404_v8 = vpop.f32.mrb[20].mxu1 }
 0x3c5   : > { %v2460_v27 = vadd.f32 %v2404_v8, %v10321_v2  ;;  %v6755_v5 = vpop.f32.mrb[21].mxu1 }
 0x3c7   : > { %v10430_v61 = vadd.f32 %v10989_v18, %v2460_v27 }
 0x3c8   : > { %v2409_v49 = vpop.f32.mrb[22].mxu1 }
 0x3c9   : > { %v2461_v35 = vadd.f32 %v2409_v49, %v10327_v28  ;;  %v6758_v25 = vpop.f32.mrb[23].mxu1 }
 0x3cb   : > { %v10434_v6 = vadd.f32 %v10990_v24, %v2461_v35 }
 0x3cc   : > { %v2414_v13 = vpop.f32.mrb[24].mxu1 }
 0x3cd   : > { %v2462_v30 = vadd.f32 %v2414_v13, %v10333_v4  ;;  %v6761_v59 = vpop.f32.mrb[25].mxu1 }
 0x3cf   : > { %v10438_v22 = vadd.f32 %v10991_v26, %v2462_v30 }
 0x3d0   : > { %v2419_v1 = vpop.f32.mrb[26].mxu1 }
 0x3d1   : > { %v2463_v2 = vadd.f32 %v2419_v1, %v10339_v45  ;;  %v6764_v19 = vpop.f32.mrb[27].mxu1 }
 0x3d3   : > { %v10442_v31 = vadd.f32 %v10992_v51, %v2463_v2  ;;  %v3084_v51 = vld [vmem:[#allocation4 + $0x10] sm:$0xff] }
 0x3d4   : > { %v2424_v12 = vpop.f32.mrb[28].mxu1 }
 0x3d5   : > { %v2464_v28 = vadd.f32 %v2424_v12, %v10343_v15  ;;  %v6767_v42 = vpop.f32.mrb[29].mxu1  ;;  %v3085_v12 = vld [vmem:[#allocation4 + $0x18] sm:$0xff] }
 0x3d7   : > { %v10446_v46 = vadd.f32 %v10993_v38, %v2464_v28 }
 0x3d8   : > { %v2429_v20 = vpop.f32.mrb[30].mxu1 }
 0x3d9   : > { %v2465_v4 = vadd.f32 %v2429_v20, %v10347_v57  ;;  %v6770_v47 = vpop.f32.mrb[31].mxu1  ;;  %v10463_v57 = vld [vmem:[%s10894_s4] ss:$0 sm:$0xff] }
 0x3db   : > { %v10450_v53 = vadd.f32 %v10994_v60, %v2465_v4  ;;  %v7807_v4 = vpack.c.bf16 %v3085_v12, %v3084_v51  ;;  %v3086_v60 = vld [vmem:[#allocation4 + $0x20] sm:$0xff] }
 0x3dc   : > { %v2434_v54 = vpop.f32.mrb[32].mxu1 }
 0x3dd   : > { %v2466_v45 = vadd.f32 %v2434_v54, %v10351_v37  ;;  %v6773_v43 = vpop.f32.mrb[33].mxu1  ;;  %v3087_v54 = vld [vmem:[#allocation4 + $0x28] sm:$0xff] }
 0x3df   : > { %v10454_v23 = vadd.f32 %v10995_v39, %v2466_v45 }
 0x3e0   : > { %v2439_v17 = vpop.f32.mrb[34].mxu1 }
 0x3e1   : > { %v2467_v15 = vadd.f32 %v2439_v17, %v10355_v63  ;;  %v6776_v11 = vpop.f32.mrb[35].mxu1 }
 0x3e2   : > { %v3088_v11 = vld [vmem:[#allocation4 + $0x30] sm:$0xff] }
 0x3e3   : > { %v10458_v16 = vadd.f32 %v10201_v41, %v2467_v15 }
 0x3e4   : > { %v2831_v40 = vpop.f32.mrb[36].mxu1 }
 0x3e5   : > { %v2955_v52 = vadd.f32 %v2831_v40, %v10359_v7  ;;  %v6918_v37 = vpop.f32.mrb[37].mxu1  ;;  %v3089_v40 = vld [vmem:[#allocation4 + $0x38] sm:$0xff] }
 0x3e7   : > { %v10467_v3 = vadd.f32 %v10463_v57, %v2955_v52 }
 0x3e8   : > { %v2836_v8 = vpop.f32.mrb[38].mxu1 }
 0x3e9   : > { %v3012_v27 = vmax.f32 %v10467_v3, 0.0  ;;  %v2956_v63 = vadd.f32 %v2836_v8, %v10363_v10  ;;  %v6921_v5 = vpop.f32.mrb[39].mxu1 }
 0x3eb   : > { %3037 = vst [vmem:[#allocation3] sm:$0xff] %v3012_v27  ;;  %v10474_v41 = vadd.f32 %v10463_v57, %v2956_v63  ;;  %v7815_v63 = vpack.c.bf16 %v3089_v40, %v3088_v11 }
 0x3ec   : > { %v2841_v18 = vpop.f32.mrb[40].mxu1 }
 0x3ed   : > { %v3013_v49 = vmax.f32 %v10474_v41, 0.0  ;;  %v2957_v7 = vadd.f32 %v2841_v18, %v10367_v33  ;;  %v6924_v35 = vpop.f32.mrb[41].mxu1  ;;  %v3090_v18 = vld [vmem:[#allocation4 + $0x40] sm:$0xff] }
 0x3ef   : > { %3038 = vst [vmem:[#allocation3 + $0x8] sm:$0xff] %v3013_v49  ;;  %v2989_v25 = vadd.f32 %v10463_v57, %v2957_v7  ;;  %v3091_v7 = vld [vmem:[#allocation4 + $0x48] sm:$0xff] }
 0x3f0   : > { %v2846_v24 = vpop.f32.mrb[42].mxu1 }
 0x3f1   : > { %v10481_v10 = vmax.f32 %v2989_v25, 0.0  ;;  %v2958_v13 = vadd.f32 %v2846_v24, %v10371_v14  ;;  %v6927_v30 = vpop.f32.mrb[43].mxu1 }
 0x3f2   : > { %v7819_v30 = vpack.c.bf16 %v3091_v7, %v3090_v18 }
 0x3f3   : > { %3039 = vst [vmem:[#allocation3 + $0x10] sm:$0xff] %v10481_v10  ;;  %v2990_v59 = vadd.f32 %v10463_v57, %v2958_v13 }
 0x3f4   : > { %v2851_v26 = vpop.f32.mrb[44].mxu1 }
 0x3f5   : > { %v10486_v1 = vmax.f32 %v2990_v59, 0.0  ;;  %v2959_v33 = vadd.f32 %v2851_v26, %v10375_v29  ;;  %v6930_v2 = vpop.f32.mrb[45].mxu1  ;;  %v3092_v26 = vld [vmem:[#allocation4 + $0x50] sm:$0xff] }
 0x3f6   : > { %v3098_v19 = vld [vmem:[#allocation3 + $0x1] sm:$0xff] }
 0x3f7   : > { %3040 = vst [vmem:[#allocation3 + $0x18] sm:$0xff] %v10486_v1  ;;  %v2991_v28 = vadd.f32 %v10463_v57, %v2959_v33  ;;  %7023 = vmatprep.mubr.f32.mxu0 %v3098_v19  ;;  %v3093_v33 = vld [vmem:[#allocation4 + $0x58] sm:$0xff] }
 0x3f8   : > { %v2856_v14 = vpop.f32.mrb[46].mxu1 }
 0x3f9   : > { %v10491_v42 = vmax.f32 %v2991_v28, 0.0  ;;  %v2960_v38 = vadd.f32 %v2856_v14, %v10379_v62  ;;  %v6933_v20 = vpop.f32.mrb[47].mxu1  ;;  %v7811_v62 = vpack.c.bf16 %v3087_v54, %v3086_v60  ;;  %v7823_v28 = vpack.c.bf16 %v3093_v33, %v3092_v26 }
 0x3fa   : > { %v3099_v47 = vld [vmem:[#allocation3 + $0x9] sm:$0xff] }
 0x3fb   : > { %3041 = vst [vmem:[#allocation3 + $0x20] sm:$0xff] %v10491_v42  ;;  %v2992_v29 = vadd.f32 %v10463_v57, %v2960_v38  ;;  %7024 = vmatmul.mubr.f32.vlgmr.msra.gmra.mrb[166].mxu0 %v3099_v47  ;;  %v3094_v38 = vld [vmem:[#allocation4 + $0x60] sm:$0xff]  ;;  %v3095_v20 = vld [vmem:[#allocation4 + $0x68] sm:$0xff] }
 0x3fc   : > { %v2861_v45 = vpop.f32.mrb[48].mxu1  ;;  %7806 = vmatpush3.bf16.msra.mxu0 %v10389_v56 }
 0x3fd   : > { %v10497_v43 = vmax.f32 %v2992_v29, 0.0  ;;  %v2961_v39 = vadd.f32 %v2861_v45, %v10383_v0  ;;  %v6936_v17 = vpop.f32.mrb[49].mxu1  ;;  %7808 = vmatprep.subr.bf16.mxu0 %v7807_v4  ;;  %v7827_v29 = vpack.c.bf16 %v3095_v20, %v3094_v38 }
 0x3fe   : > { %v10500_v15 = vld [vmem:[#allocation3 + $0x11] sm:$0xff]  ;;  %v3097_v17 = vld [vmem:[#allocation4 + $0x78] sm:$0xff] }
 0x3ff   : > { %3042 = vst [vmem:[#allocation3 + $0x28] sm:$0xff] %v10497_v43  ;;  %v2993_v52 = vadd.f32 %v10463_v57, %v2961_v39  ;;  %7026 = vmatprep.mubr.f32.mxu0 %v10500_v15  ;;  %v3096_v39 = vld [vmem:[#allocation4 + $0x70] sm:$0xff] }
 0x400   : > { %v2866_v37 = vpop.f32.mrb[50].mxu1  ;;  %7810 = vmatpush3.bf16.msra.mxu0 %v7807_v4 }
 0x401   : > { %v10505_v56 = vmax.f32 %v2993_v52, 0.0  ;;  %v2962_v8 = vadd.f32 %v2866_v37, %v10387_v32  ;;  %v6939_v0 = vpop.f32.mrb[51].mxu1  ;;  %7812 = vmatprep.subr.bf16.mxu0 %v7811_v62  ;;  %v7831_v37 = vpack.c.bf16 %v3097_v17, %v3096_v39 }
 0x402   : > { %v10508_v5 = vld [vmem:[#allocation3 + $0x19] sm:$0xff]  ;;  %v3484_v0 = vld [vmem:[#allocation4 + $0x100] sm:$0xff] }
 0x403   : > { %3043 = vst [vmem:[#allocation3 + $0x30] sm:$0xff] %v10505_v56  ;;  %v2994_v35 = vadd.f32 %v10463_v57, %v2962_v8  ;;  %7027 = vmatmul.mubr.f32.gmra.mrb[168].mxu0 %v10508_v5 }
 0x404   : > { %v2871_v25 = vpop.f32.mrb[52].mxu1  ;;  %7814 = vmatpush3.bf16.msra.mxu0 %v7811_v62 }
 0x405   : > { %v10513_v24 = vmax.f32 %v2994_v35, 0.0  ;;  %v2963_v13 = vadd.f32 %v2871_v25, %v10394_v21  ;;  %v6942_v32 = vpop.f32.mrb[53].mxu1  ;;  %7816 = vmatprep.subr.bf16.mxu0 %v7815_v63 }
 0x406   : > { %v10516_v59 = vld [vmem:[#allocation3 + $0x21] sm:$0xff] }
 0x407   : > { %3044 = vst [vmem:[#allocation3 + $0x38] sm:$0xff] %v10513_v24  ;;  %v2995_v2 = vadd.f32 %v10463_v57, %v2963_v13  ;;  %7029 = vmatprep.mubr.f32.mxu0 %v10516_v59 }
 0x408   : > { %v2876_v19 = vpop.f32.mrb[54].mxu1  ;;  %7818 = vmatpush3.bf16.msra.mxu0 %v7815_v63  ;;  %v3485_v63 = vld [vmem:[#allocation4 + $0x108] sm:$0xff] }
 0x409   : > { %v10521_v51 = vmax.f32 %v2995_v2, 0.0  ;;  %v2964_v12 = vadd.f32 %v2876_v19, %v10398_v9  ;;  %v6945_v21 = vpop.f32.mrb[55].mxu1  ;;  %7820 = vmatprep.subr.bf16.mxu0 %v7819_v30  ;;  %v10548_v13 = vpack.c.bf16 %v3485_v63, %v3484_v0 }
 0x40a   : > { %v10524_v14 = vld [vmem:[#allocation3 + $0x29] sm:$0xff] }
 0x40b   : > { %3045 = vst [vmem:[#allocation3 + $0x40] sm:$0xff] %v10521_v51  ;;  %v2996_v4 = vadd.f32 %v10463_v57, %v2964_v12  ;;  %7030 = vmatmul.mubr.f32.gmra.mrb[170].mxu0 %v10524_v14 }
 0x40c   : > { %v2881_v47 = vpop.f32.mrb[56].mxu1  ;;  %7822 = vmatpush3.bf16.msra.mxu0 %v7819_v30 }
 0x40d   : > { %v10529_v60 = vmax.f32 %v2996_v4, 0.0  ;;  %v2965_v54 = vadd.f32 %v2881_v47, %v10402_v50  ;;  %v6948_v9 = vpop.f32.mrb[57].mxu1  ;;  %7824 = vmatprep.subr.bf16.mxu0 %v7823_v28 }
 0x40e   : > { %v10532_v45 = vld [vmem:[#allocation3 + $0x31] sm:$0xff] }
 0x40f   : > { %3046 = vst [vmem:[#allocation3 + $0x48] sm:$0xff] %v10529_v60  ;;  %v2997_v62 = vadd.f32 %v10463_v57, %v2965_v54  ;;  %7032 = vmatprep.mubr.f32.mxu0 %v10532_v45 }
 0x410   : > { %v2886_v11 = vpop.f32.mrb[58].mxu1  ;;  %7826 = vmatpush3.bf16.msra.mxu0 %v7823_v28 }
 0x411   : > { %v10537_v40 = vmax.f32 %v2997_v62, 0.0  ;;  %v2966_v52 = vadd.f32 %v2886_v11, %v10406_v36  ;;  %v6951_v50 = vpop.f32.mrb[59].mxu1  ;;  %7828 = vmatprep.subr.bf16.mxu0 %v7827_v29 }
 0x412   : > { %v10540_v8 = vld [vmem:[#allocation3 + $0x39] sm:$0xff] }
 0x413   : > { %3047 = vst [vmem:[#allocation3 + $0x50] sm:$0xff] %v10537_v40  ;;  %v2998_v18 = vadd.f32 %v10463_v57, %v2966_v52  ;;  %7033 = vmatmul.mubr.f32.gmra.mrb[172].mxu0 %v10540_v8 }
 0x414   : > { %v2891_v7 = vpop.f32.mrb[60].mxu1  ;;  %7830 = vmatpush3.bf16.msra.mxu0 %v7827_v29 }
 0x415   : > { %v10545_v35 = vmax.f32 %v2998_v18, 0.0  ;;  %v2967_v25 = vadd.f32 %v2891_v7, %v10410_v48  ;;  %v6954_v36 = vpop.f32.mrb[61].mxu1  ;;  %7832 = vmatprep.subr.bf16.mxu0 %v7831_v37 }
 0x416   : > { %v10550_v32 = vld [vmem:[#allocation3 + $0x41] sm:$0xff] }
 0x417   : > { %3048 = vst [vmem:[#allocation3 + $0x58] sm:$0xff] %v10545_v35  ;;  %v2999_v30 = vadd.f32 %v10463_v57, %v2967_v25  ;;  %7035 = vmatprep.mubr.f32.mxu0 %v10550_v32 }
 0x418   : > { %v2896_v26 = vpop.f32.mrb[62].mxu1  ;;  %7834 = vmatpush3.bf16.msra.mxu0 %v7831_v37 }
 0x419   : > { %v10555_v33 = vmax.f32 %v2999_v30, 0.0  ;;  %v2968_v2 = vadd.f32 %v2896_v26, %v10414_v55  ;;  %v6957_v19 = vpop.f32.mrb[63].mxu1  ;;  %7836 = vmatprep.subr.bf16.mxu0 %v10548_v13 }
 0x41a   : > { %v10559_v48 = vld [vmem:[#allocation3 + $0x49] sm:$0xff] }
 0x41b   : > { %3049 = vst [vmem:[#allocation3 + $0x60] sm:$0xff] %v10555_v33  ;;  %v3000_v12 = vadd.f32 %v10463_v57, %v2968_v2  ;;  %7036 = vmatmul.mubr.f32.gmra.mrb[174].mxu0 %v10559_v48 }
 0x41c   : > { %v2901_v21 = vpop.f32.mrb[64].mxu1 }
 0x41d   : > { %v10564_v28 = vmax.f32 %v3000_v12, 0.0  ;;  %v2969_v38 = vadd.f32 %v2901_v21, %v10418_v34  ;;  %v6960_v20 = vpop.f32.mrb[65].mxu1 }
 0x41e   : > { %v10567_v4 = vld [vmem:[#allocation3 + $0x51] sm:$0xff] }
 0x41f   : > { %3050 = vst [vmem:[#allocation3 + $0x68] sm:$0xff] %v10564_v28  ;;  %v3001_v55 = vadd.f32 %v10463_v57, %v2969_v38  ;;  %7038 = vmatprep.mubr.f32.mxu0 %v10567_v4 }
 0x420   : > { %v2906_v47 = vpop.f32.mrb[66].mxu1 }
 0x421   : > { %v10572_v54 = vmax.f32 %v3001_v55, 0.0  ;;  %v2970_v9 = vadd.f32 %v2906_v47, %v10422_v44  ;;  %v6963_v29 = vpop.f32.mrb[67].mxu1 }
 0x422   : > { %v10575_v39 = vld [vmem:[#allocation3 + $0x59] sm:$0xff] }
 0x423   : > { %3051 = vst [vmem:[#allocation3 + $0x70] sm:$0xff] %v10572_v54  ;;  %v3002_v34 = vadd.f32 %v10463_v57, %v2970_v9  ;;  %7039 = vmatmul.mubr.f32.gmra.mrb[176].mxu0 %v10575_v39 }
 0x424   : > { %v2911_v17 = vpop.f32.mrb[68].mxu1 }
 0x425   : > { %v10580_v62 = vmax.f32 %v3002_v34, 0.0  ;;  %v2971_v11 = vadd.f32 %v2911_v17, %v10426_v58  ;;  %v6966_v52 = vpop.f32.mrb[69].mxu1 }
 0x426   : > { %v10583_v50 = vld [vmem:[#allocation3 + $0x61] sm:$0xff] }
 0x427   : > { %3052 = vst [vmem:[#allocation3 + $0x78] sm:$0xff] %v10580_v62  ;;  %v3003_v44 = vadd.f32 %v10463_v57, %v2971_v11  ;;  %7041 = vmatprep.mubr.f32.mxu0 %v10583_v50 }
 0x428   : > { %v2916_v37 = vpop.f32.mrb[70].mxu1 }
 0x429   : > { %v10588_v0 = vmax.f32 %v3003_v44, 0.0  ;;  %v2972_v63 = vadd.f32 %v2916_v37, %v10430_v61  ;;  %v6969_v18 = vpop.f32.mrb[71].mxu1 }
 0x42a   : > { %v10591_v7 = vld [vmem:[#allocation3 + $0x69] sm:$0xff] }
 0x42b   : > { %3053 = vst [vmem:[#allocation3 + $0x80] sm:$0xff] %v10588_v0  ;;  %v3004_v58 = vadd.f32 %v10463_v57, %v2972_v63  ;;  %7042 = vmatmul.mubr.f32.gmra.mrb[178].mxu0 %v10591_v7  ;;  %v3486_v63 = vld [vmem:[#allocation4 + $0x110] sm:$0xff] }
 0x42c   : > { %v2921_v25 = vpop.f32.mrb[72].mxu1 }
 0x42d   : > { %v10596_v36 = vmax.f32 %v3004_v58, 0.0  ;;  %v2973_v30 = vadd.f32 %v2921_v25, %v10434_v6  ;;  %v6972_v26 = vpop.f32.mrb[73].mxu1 }
 0x42e   : > { %v10599_v2 = vld [vmem:[#allocation3 + $0x71] sm:$0xff] }
 0x42f   : > { %3054 = vst [vmem:[#allocation3 + $0x88] sm:$0xff] %v10596_v36  ;;  %v3005_v61 = vadd.f32 %v10463_v57, %v2973_v30  ;;  %7044 = vmatprep.mubr.f32.mxu0 %v10599_v2 }
 0x430   : > { %v2926_v19 = vpop.f32.mrb[74].mxu1 }
 0x431   : > { %v10604_v12 = vmax.f32 %v3005_v61, 0.0  ;;  %v2974_v21 = vadd.f32 %v2926_v19, %v10438_v22  ;;  %v6975_v38 = vpop.f32.mrb[75].mxu1  ;;  %v3488_v19 = vld [vmem:[#allocation4 + $0x120] sm:$0xff] }
 0x432   : > { %v10607_v20 = vld [vmem:[#allocation3 + $0x79] sm:$0xff] }
 0x433   : > { %3055 = vst [vmem:[#allocation3 + $0x90] sm:$0xff] %v10604_v12  ;;  %v3006_v6 = vadd.f32 %v10463_v57, %v2974_v21  ;;  %7045 = vmatmul.mubr.f32.gmra.mrb[180].mxu0 %v10607_v20  ;;  %v3489_v21 = vld [vmem:[#allocation4 + $0x128] sm:$0xff] }
 0x434   : > { %v2931_v55 = vpop.f32.mrb[76].mxu1 }
 0x435   : > { %v10612_v47 = vmax.f32 %v3006_v6, 0.0  ;;  %v2975_v9 = vadd.f32 %v2931_v55, %v10442_v31  ;;  %v6978_v29 = vpop.f32.mrb[77].mxu1  ;;  %v3487_v31 = vld [vmem:[#allocation4 + $0x118] sm:$0xff]  ;;  %v7843_v55 = vpack.c.bf16 %v3489_v21, %v3488_v19  ;;  %v3496_v19 = vld [vmem:[#allocation4 + $0x160] sm:$0xff] }
 0x436   : > { %v10615_v34 = vld [vmem:[#allocation3 + $0x81] sm:$0xff]  ;;  %v7839_v26 = vpack.c.bf16 %v3487_v31, %v3486_v63  ;;  %v3490_v29 = vld [vmem:[#allocation4 + $0x130] sm:$0xff]  ;;  %v3493_v31 = vld [vmem:[#allocation4 + $0x148] sm:$0xff] }
 0x437   : > { %3056 = vst [vmem:[#allocation3 + $0x98] sm:$0xff] %v10612_v47  ;;  %v10619_v22 = vadd.f32 %v10463_v57, %v2975_v9  ;;  %7047 = vmatprep.mubr.f32.mxu0 %v10615_v34  ;;  %v3492_v63 = vld [vmem:[#allocation4 + $0x140] sm:$0xff] }
 0x438   : > { %v2936_v17 = vpop.f32.mrb[78].mxu1 }
 0x439   : > { %v10905_v11 = vmax.f32 %v10619_v22, 0.0  ;;  %v2976_v52 = vadd.f32 %v2936_v17, %v10446_v46  ;;  %v6981_v44 = vpop.f32.mrb[79].mxu1  ;;  %v3491_v17 = vld [vmem:[#allocation4 + $0x138] sm:$0xff] }
 0x43a   : > { %v10624_v37 = vld [vmem:[#allocation3 + $0x89] sm:$0xff]  ;;  %v7847_v44 = vpack.c.bf16 %v3491_v17, %v3490_v29 }
 0x43b   : > { %3057 = vst [vmem:[#allocation3 + $0xa0] sm:$0xff] %v10905_v11  ;;  %v3008_v18 = vadd.f32 %v10463_v57, %v2976_v52  ;;  %7048 = vmatmul.mubr.f32.gmra.mrb[182].mxu0 %v10624_v37  ;;  %v3706_v29 = vld [vmem:[#allocation4 + $0x188] sm:$0xff]  ;;  %v3930_v11 = vld [vmem:[#allocation4 + $0x220] sm:$0xff] }
 0x43c   : > { %v2941_v58 = vpop.f32.mrb[80].mxu1  ;;  %7085 = vmatprep.mubr.f32.mxu0 %v3012_v27 }
 0x43d   : > { %v10632_v25 = vmax.f32 %v3008_v18, 0.0  ;;  %v2977_v46 = vadd.f32 %v2941_v58, %v10450_v53  ;;  %v6984_v30 = vpop.f32.mrb[81].mxu1 }
 0x43e   : > { %v10635_v61 = vld [vmem:[#allocation3 + $0x91] sm:$0xff] }
 0x43f   : > { %3058 = vst [vmem:[#allocation3 + $0xa8] sm:$0xff] %v10632_v25  ;;  %v10639_v38 = vadd.f32 %v10463_v57, %v2977_v46  ;;  %7050 = vmatprep.mubr.f32.mxu1 %v10635_v61  ;;  %7086 = vmatmul.mubr.f32.vlgmr.msra.gmra.mrb[166].mxu0 %v3013_v49  ;;  %v7851_v46 = vpack.c.bf16 %v3493_v31, %v3492_v63  ;;  %v3494_v30 = vld [vmem:[#allocation4 + $0x150] sm:$0xff]  ;;  %v3465_v63 = vld [vmem:[#allocation3 + $0xa] sm:$0xff] }
 0x440   : > { %7838 = vmatpush3.bf16.msra.mxu0 %v10548_v13  ;;  %v2946_v3 = vpop.f32.mrb[82].mxu1  ;;  %7088 = vmatprep.mubr.f32.mxu0 %v10481_v10  ;;  %v3709_v31 = vld [vmem:[#allocation4 + $0x1a0] sm:$0xff] }
 0x441   : > { %10996 = vst [vmem:[#allocation17_spill] sm:$0xff] %v10639_v38  ;;  %v10904_v53 = vmax.f32 %v10639_v38, 0.0  ;;  %v2978_v27 = vadd.f32 %v2946_v3, %v10454_v23  ;;  %v6987_v6 = vpop.f32.mrb[83].mxu1  ;;  %7840 = vmatprep.subr.bf16.mxu0 %v7839_v26  ;;  %v3498_v3 = vld [vmem:[#allocation4 + $0x170] sm:$0xff] }
 0x442   : > { %v10648_v9 = vld [vmem:[#allocation3 + $0x99] sm:$0xff] }
 0x443   : > { %3059 = vst [vmem:[#allocation3 + $0xb0] sm:$0xff] %v10904_v53  ;;  %v10653_v41 = vadd.f32 %v10463_v57, %v2978_v27  ;;  %7051 = vmatmul.mubr.f32.vlgmr.msra.gmra.mrb[86].mxu1 %v10648_v9  ;;  %7089 = vmatmul.mubr.f32.gmra.mrb[168].mxu0 %v10486_v1  ;;  %v3499_v27 = vld [vmem:[#allocation4 + $0x178] sm:$0xff]  ;;  %v3932_v38 = vld [vmem:[#allocation4 + $0x230] sm:$0xff] }
 0x444   : > { %v2951_v49 = vpop.f32.mrb[84].mxu1  ;;  %7091 = vmatprep.mubr.f32.mxu0 %v10491_v42  ;;  %7842 = vmatpush3.bf16.msra.mxu0 %v7839_v26  ;;  %v7863_v6 = vpack.c.bf16 %v3499_v27, %v3498_v3  ;;  %v3713_v3 = vld [vmem:[#allocation4 + $0x1c0] sm:$0xff]  ;;  %v3714_v27 = vld [vmem:[#allocation4 + $0x1c8] sm:$0xff] }
 0x445   : > { %10997 = vst [vmem:[#allocation18_spill] sm:$0xff] %v10653_v41  ;;  %v10903_v23 = vmax.f32 %v10653_v41, 0.0  ;;  %v2979_v13 = vadd.f32 %v2951_v49, %v10458_v16  ;;  %v6990_v52 = vpop.f32.mrb[85].mxu1  ;;  %7844 = vmatprep.subr.bf16.mxu0 %v7843_v55  ;;  %v3495_v16 = vld [vmem:[#allocation4 + $0x158] sm:$0xff]  ;;  %v3707_v49 = vld [vmem:[#allocation4 + $0x190] sm:$0xff] }
 0x446   : > { %v7855_v26 = vpack.c.bf16 %v3495_v16, %v3494_v30  ;;  %v3464_v52 = vld [vmem:[#allocation3 + $0x2] sm:$0xff]  ;;  %v10681_v30 = vld [vmem:[#allocation3 + $0x1a] sm:$0xff] }
 0x447   : > { %3060 = vst [vmem:[#allocation3 + $0xb8] sm:$0xff] %v10903_v23  ;;  %v3011_v18 = vadd.f32 %v10463_v57, %v2979_v13  ;;  %7092 = vmatmul.mubr.f32.gmra.mrb[170].mxu0 %v10497_v43  ;;  %v3497_v57 = vld [vmem:[#allocation4 + $0x168] sm:$0xff]  ;;  %v3708_v13 = vld [vmem:[#allocation4 + $0x198] sm:$0xff]  ;;  %v3711_v16 = vld [vmem:[#allocation4 + $0x1b0] sm:$0xff] }
 0x448   : > { %7094 = vmatprep.mubr.f32.mxu0 %v10505_v56  ;;  %7846 = vmatpush3.bf16.msra.mxu0 %v7843_v55  ;;  %v7859_v21 = vpack.c.bf16 %v3497_v57, %v3496_v19  ;;  %v3705_v55 = vld [vmem:[#allocation4 + $0x180] sm:$0xff]  ;;  %v3927_v23 = vld [vmem:[#allocation4 + $0x208] sm:$0xff] }
 0x449   : > { %v3036_v58 = vmax.f32 %v3011_v18, 0.0  ;;  %7848 = vmatprep.subr.bf16.mxu0 %v7847_v44  ;;  %v7867_v17 = vpack.c.bf16 %v3706_v29, %v3705_v55  ;;  %v3710_v18 = vld [vmem:[#allocation4 + $0x1a8] sm:$0xff]  ;;  %v10684_v19 = vld [vmem:[#allocation3 + $0x22] sm:$0xff]  ;;  %v7883_v55 = vpack.c.bf16 %v3714_v27, %v3713_v3  ;;  %v10693_v29 = vld [vmem:[#allocation3 + $0x3a] sm:$0xff] }
 0x44a   : > { %v3720_v3 = vld [vmem:[#allocation4 + $0x1f8] sm:$0xff] }
 0x44b   : > { %3061 = vst [vmem:[#allocation3 + $0xc0] sm:$0x3] %v3036_v58  ;;  %7095 = vmatmul.mubr.f32.gmra.mrb[172].mxu0 %v10513_v24  ;;  %v10678_v58 = vld [vmem:[#allocation3 + $0x12] sm:$0xff] }
 0x44c   : > { %7097 = vmatprep.mubr.f32.mxu0 %v10521_v51  ;;  %7850 = vmatpush3.bf16.msra.mxu0 %v7847_v44  ;;  %v7871_v44 = vpack.c.bf16 %v3708_v13, %v3707_v49  ;;  %v3716_v49 = vld [vmem:[#allocation4 + $0x1d8] sm:$0xff] }
 0x44d   : > { %7852 = vmatprep.subr.bf16.mxu0 %v7851_v46  ;;  %v10696_v13 = vld [vmem:[#allocation3 + $0x42] sm:$0xff] }
 0x44f   : > { %7098 = vmatmul.mubr.f32.gmra.mrb[174].mxu0 %v10529_v60 }
 0x450   : > { %7100 = vmatprep.mubr.f32.mxu0 %v10537_v40  ;;  %7854 = vmatpush3.bf16.msra.mxu0 %v7851_v46  ;;  %v7875_v46 = vpack.c.bf16 %v3710_v18, %v3709_v31  ;;  %v3718_v31 = vld [vmem:[#allocation4 + $0x1e8] sm:$0xff] }
 0x451   : > { %7856 = vmatprep.subr.bf16.mxu0 %v7855_v26  ;;  %v10702_v18 = vld [vmem:[#allocation3 + $0x52] sm:$0xff] }
 0x453   : > { %7101 = vmatmul.mubr.f32.gmra.mrb[176].mxu0 %v10545_v35 }
 0x454   : > { %7103 = vmatprep.mubr.f32.mxu0 %v10555_v33  ;;  %7858 = vmatpush3.bf16.msra.mxu0 %v7855_v26  ;;  %v3712_v26 = vld [vmem:[#allocation4 + $0x1b8] sm:$0xff] }
 0x455   : > { %7860 = vmatprep.subr.bf16.mxu0 %v7859_v21  ;;  %v7879_v57 = vpack.c.bf16 %v3712_v26, %v3711_v16  ;;  %v10705_v16 = vld [vmem:[#allocation3 + $0x5a] sm:$0xff] }
 0x456   : > { %v3719_v26 = vld [vmem:[#allocation4 + $0x1f0] sm:$0xff] }
 0x457   : > { %7104 = vmatmul.mubr.f32.gmra.mrb[178].mxu0 %v10564_v28  ;;  %v7895_v27 = vpack.c.bf16 %v3720_v3, %v3719_v26  ;;  %v10723_v26 = vld [vmem:[#allocation3 + $0x8a] sm:$0xff]  ;;  %v10726_v3 = vld [vmem:[#allocation3 + $0x92] sm:$0xff] }
 0x458   : > { %7106 = vmatprep.mubr.f32.mxu0 %v10572_v54  ;;  %7862 = vmatpush3.bf16.msra.mxu0 %v7859_v21  ;;  %v10687_v21 = vld [vmem:[#allocation3 + $0x2a] sm:$0xff]  ;;  %10998 = vst [vmem:[#allocation19_spill] sm:$0xff] %v10726_v3 }
 0x459   : > { %7864 = vmatprep.subr.bf16.mxu0 %v7863_v6 }
 0x45b   : > { %7107 = vmatmul.mubr.f32.gmra.mrb[180].mxu0 %v10580_v62 }
 0x45c   : > { %7109 = vmatprep.mubr.f32.mxu0 %v10588_v0  ;;  %7866 = vmatpush3.bf16.msra.mxu0 %v7863_v6  ;;  %v10690_v6 = vld [vmem:[#allocation3 + $0x32] sm:$0xff] }
 0x45d   : > { %7868 = vmatprep.subr.bf16.mxu0 %v7867_v17 }
 0x45f   : > { %7110 = vmatmul.mubr.f32.gmra.mrb[182].mxu0 %v10596_v36 }
 0x460   : > { %7112 = vmatprep.mubr.f32.mxu0 %v10604_v12 }
 0x463   : > { %7113 = vmatmul.mubr.f32.gmra.mrb[184].mxu0 %v10612_v47 }
 0x464   : > { %7147 = vmatprep.mubr.f32.mxu0 %v3464_v52 }
 0x467   : > { %7148 = vmatmul.mubr.f32.vlgmr.msra.gmra.mrb[166].mxu0 %v3465_v63  ;;  %v3717_v63 = vld [vmem:[#allocation4 + $0x1e0] sm:$0xff] }
 0x468   : > { %7870 = vmatpush3.bf16.msra.mxu0 %v7867_v17  ;;  %7150 = vmatprep.mubr.f32.mxu0 %v10678_v58  ;;  %v3715_v17 = vld [vmem:[#allocation4 + $0x1d0] sm:$0xff] }
 0x469   : > { %7872 = vmatprep.subr.bf16.mxu0 %v7871_v44  ;;  %v7887_v52 = vpack.c.bf16 %v3716_v49, %v3715_v17  ;;  %v10711_v17 = vld [vmem:[#allocation3 + $0x6a] sm:$0xff] }
 0x46a   : > { %v3926_v49 = vld [vmem:[#allocation4 + $0x200] sm:$0xff] }
 0x46b   : > { %7151 = vmatmul.mubr.f32.gmra.mrb[168].mxu0 %v10681_v30 }
 0x46c   : > { %7153 = vmatprep.mubr.f32.mxu0 %v10684_v19  ;;  %7874 = vmatpush3.bf16.msra.mxu0 %v7871_v44  ;;  %v10699_v44 = vld [vmem:[#allocation3 + $0x4a] sm:$0xff] }
 0x46d   : > { %7876 = vmatprep.subr.bf16.mxu0 %v7875_v46 }
 0x46f   : > { %7154 = vmatmul.mubr.f32.gmra.mrb[170].mxu0 %v10687_v21 }
 0x470   : > { %7156 = vmatprep.mubr.f32.mxu0 %v10690_v6  ;;  %7878 = vmatpush3.bf16.msra.mxu0 %v7875_v46  ;;  %v7891_v46 = vpack.c.bf16 %v3718_v31, %v3717_v63  ;;  %v7899_v63 = vpack.c.bf16 %v3927_v23, %v3926_v49  ;;  %v10717_v31 = vld [vmem:[#allocation3 + $0x7a] sm:$0xff] }
 0x471   : > { %7880 = vmatprep.subr.bf16.mxu0 %v7879_v57  ;;  %v3928_v23 = vld [vmem:[#allocation4 + $0x210] sm:$0xff]  ;;  %v3929_v49 = vld [vmem:[#allocation4 + $0x218] sm:$0xff] }
 0x472   : > { %v7903_v53 = vpack.c.bf16 %v3929_v49, %v3928_v23  ;;  %v3935_v23 = vld [vmem:[#allocation4 + $0x248] sm:$0xff] }
 0x473   : > { %7157 = vmatmul.mubr.f32.gmra.mrb[172].mxu0 %v10693_v29  ;;  %v4160_v49 = vld [vmem:[#allocation4 + $0x2e8] sm:$0xff] }
 0x474   : > { %7159 = vmatprep.mubr.f32.mxu0 %v10696_v13  ;;  %7882 = vmatpush3.bf16.msra.mxu0 %v7879_v57  ;;  %v10708_v57 = vld [vmem:[#allocation3 + $0x62] sm:$0xff] }
 0x475   : > { %7884 = vmatprep.subr.bf16.mxu0 %v7883_v55 }
 0x477   : > { %7160 = vmatmul.mubr.f32.gmra.mrb[174].mxu0 %v10699_v44 }
 0x478   : > { %7162 = vmatprep.mubr.f32.mxu0 %v10702_v18  ;;  %7886 = vmatpush3.bf16.msra.mxu0 %v7883_v55  ;;  %v10714_v55 = vld [vmem:[#allocation3 + $0x72] sm:$0xff] }
 0x479   : > { %7888 = vmatprep.subr.bf16.mxu0 %v7887_v52 }
 0x47b   : > { %7163 = vmatmul.mubr.f32.gmra.mrb[176].mxu0 %v10705_v16 }
 0x47c   : > { %7165 = vmatprep.mubr.f32.mxu0 %v10708_v57  ;;  %7890 = vmatpush3.bf16.msra.mxu0 %v7887_v52  ;;  %v10720_v52 = vld [vmem:[#allocation3 + $0x82] sm:$0xff] }
 0x47d   : > { %7892 = vmatprep.subr.bf16.mxu0 %v7891_v46 }
 0x47f   : > { %7166 = vmatmul.mubr.f32.gmra.mrb[178].mxu0 %v10711_v17 }
 0x480   : > { %7168 = vmatprep.mubr.f32.mxu0 %v10714_v55  ;;  %7894 = vmatpush3.bf16.msra.mxu0 %v7891_v46  ;;  %v10729_v46 = vld [vmem:[#allocation3 + $0x9a] sm:$0xff] }
 0x481   : > { %7896 = vmatprep.subr.bf16.mxu0 %v7895_v27  ;;  %10999 = vst [vmem:[#allocation20_spill] sm:$0xff] %v10729_v46 }
 0x483   : > { %7169 = vmatmul.mubr.f32.gmra.mrb[180].mxu0 %v10717_v31 }
 0x484   : > { %7171 = vmatprep.mubr.f32.mxu0 %v10720_v52  ;;  %7898 = vmatpush3.bf16.msra.mxu0 %v7895_v27  ;;  %v3931_v27 = vld [vmem:[#allocation4 + $0x228] sm:$0xff] }
 0x485   : > { %7900 = vmatprep.subr.bf16.mxu0 %v7899_v63  ;;  %v7907_v41 = vpack.c.bf16 %v3931_v27, %v3930_v11  ;;  %v3937_v11 = vld [vmem:[#allocation4 + $0x258] sm:$0xff] }
 0x486   : > { %v4162_v27 = vld [vmem:[#allocation4 + $0x2f8] sm:$0xff] }
 0x487   : > { %7172 = vmatmul.mubr.f32.gmra.mrb[182].mxu0 %v10723_v26 }
 0x488   : > { %7174 = vmatprep.mubr.f32.mxu0 %v10726_v3  ;;  %v3933_v3 = vld [vmem:[#allocation4 + $0x238] sm:$0xff] }
 0x48b   : > { %7175 = vmatmul.mubr.f32.gmra.mrb[184].mxu0 %v10729_v46  ;;  %v7911_v46 = vpack.c.bf16 %v3933_v3, %v3932_v38  ;;  %v3939_v38 = vld [vmem:[#allocation4 + $0x268] sm:$0xff] }
 0x48c   : > { %7209 = vmatprep.mubr.f32.mxu0 %v10481_v10  ;;  %v3934_v10 = vld [vmem:[#allocation4 + $0x240] sm:$0xff]  ;;  %v4156_v3 = vld [vmem:[#allocation4 + $0x2c8] sm:$0xff] }
 0x48f   : > { %7210 = vmatmul.mubr.f32.vlgmr.msra.gmra.mrb[166].mxu0 %v10486_v1  ;;  %v7915_v1 = vpack.c.bf16 %v3935_v23, %v3934_v10  ;;  %v4369_v10 = vld [vmem:[#allocation4 + $0x308] sm:$0xff] }
 0x490   : > { %7902 = vmatpush3.bf16.msra.mxu0 %v7899_v63  ;;  %7212 = vmatprep.mubr.f32.mxu0 %v10491_v42  ;;  %v3936_v42 = vld [vmem:[#allocation4 + $0x250] sm:$0xff]  ;;  %v4152_v63 = vld [vmem:[#allocation4 + $0x2a8] sm:$0xff] }
 0x491   : > { %7904 = vmatprep.subr.bf16.mxu0 %v7903_v53  ;;  %v4373_v23 = vld [vmem:[#allocation4 + $0x328] sm:$0xff] }
 0x493   : > { %7213 = vmatmul.mubr.f32.gmra.mrb[168].mxu0 %v10497_v43  ;;  %v7919_v43 = vpack.c.bf16 %v3937_v11, %v3936_v42  ;;  %v4377_v11 = vld [vmem:[#allocation4 + $0x348] sm:$0xff] }
 0x494   : > { %7215 = vmatprep.mubr.f32.mxu0 %v10505_v56  ;;  %7906 = vmatpush3.bf16.msra.mxu0 %v7903_v53  ;;  %v3938_v56 = vld [vmem:[#allocation4 + $0x260] sm:$0xff]  ;;  %v3941_v53 = vld [vmem:[#allocation4 + $0x278] sm:$0xff] }
 0x495   : > { %7908 = vmatprep.subr.bf16.mxu0 %v7907_v41 }
 0x497   : > { %7216 = vmatmul.mubr.f32.gmra.mrb[170].mxu0 %v10513_v24  ;;  %v7923_v24 = vpack.c.bf16 %v3939_v38, %v3938_v56  ;;  %v4379_v56 = vld [vmem:[#allocation4 + $0x358] sm:$0xff] }
 0x498   : > { %7218 = vmatprep.mubr.f32.mxu0 %v10521_v51  ;;  %7910 = vmatpush3.bf16.msra.mxu0 %v7907_v41  ;;  %v3940_v51 = vld [vmem:[#allocation4 + $0x270] sm:$0xff]  ;;  %v4148_v41 = vld [vmem:[#allocation4 + $0x288] sm:$0xff] }
 0x499   : > { %7912 = vmatprep.subr.bf16.mxu0 %v7911_v46 }
 0x49b   : > { %7219 = vmatmul.mubr.f32.gmra.mrb[172].mxu0 %v10529_v60  ;;  %v7927_v60 = vpack.c.bf16 %v3941_v53, %v3940_v51  ;;  %v4381_v51 = vld [vmem:[#allocation4 + $0x368] sm:$0xff] }
 0x49c   : > { %7221 = vmatprep.mubr.f32.mxu0 %v10537_v40  ;;  %7914 = vmatpush3.bf16.msra.mxu0 %v7911_v46  ;;  %v4147_v40 = vld [vmem:[#allocation4 + $0x280] sm:$0xff]  ;;  %v4158_v46 = vld [vmem:[#allocation4 + $0x2d8] sm:$0xff] }
 0x49d   : > { %7916 = vmatprep.subr.bf16.mxu0 %v7915_v1 }
 0x49f   : > { %7222 = vmatmul.mubr.f32.gmra.mrb[174].mxu0 %v10545_v35  ;;  %v7931_v35 = vpack.c.bf16 %v4148_v41, %v4147_v40  ;;  %v4383_v40 = vld [vmem:[#allocation4 + $0x378] sm:$0xff] }
 0x4a0   : > { %7224 = vmatprep.mubr.f32.mxu0 %v10555_v33  ;;  %7918 = vmatpush3.bf16.msra.mxu0 %v7915_v1  ;;  %v11000_v33 = vmax.f32 %v10619_v22, 0.0  ;;  %v4375_v1 = vld [vmem:[#allocation4 + $0x338] sm:$0xff] }
 0x4a1   : > { %7920 = vmatprep.subr.bf16.mxu0 %v7919_v43 }
 0x4a3   : > { %7225 = vmatmul.mubr.f32.gmra.mrb[176].mxu0 %v10564_v28  ;;  %v4149_v28 = vld [vmem:[#allocation4 + $0x290] sm:$0xff] }
 0x4a4   : > { %7227 = vmatprep.mubr.f32.mxu0 %v10572_v54  ;;  %7922 = vmatpush3.bf16.msra.mxu0 %v7919_v43  ;;  %v4150_v54 = vld [vmem:[#allocation4 + $0x298] sm:$0xff]  ;;  %v4378_v43 = vld [vmem:[#allocation4 + $0x350] sm:$0xff] }
 0x4a5   : > { %7924 = vmatprep.subr.bf16.mxu0 %v7923_v24  ;;  %v7983_v38 = vpack.c.bf16 %v4379_v56, %v4378_v43  ;;  %v4359_v43 = vld [vmem:[#allocation3 + $0x78] sm:$0xff] }
 0x4a6   : > { %v4603_v56 = vld [vmem:[#allocation4 + $0x3f0] sm:$0xff] }
 0x4a7   : > { %7228 = vmatmul.mubr.f32.gmra.mrb[178].mxu0 %v10580_v62  ;;  %v7935_v62 = vpack.c.bf16 %v4150_v54, %v4149_v28  ;;  %v11001_v54 = vld [vmem:[#allocation19_spill] sm:$0xff] }
 0x4a8   : > { %7230 = vmatprep.mubr.f32.mxu0 %v10588_v0  ;;  %7926 = vmatpush3.bf16.msra.mxu0 %v7923_v24  ;;  %v4151_v0 = vld [vmem:[#allocation4 + $0x2a0] sm:$0xff] }
 0x4a9   : > { %7928 = vmatprep.subr.bf16.mxu0 %v7927_v60  ;;  %v4380_v24 = vld [vmem:[#allocation4 + $0x360] sm:$0xff] }
 0x4aa   : > { %v7987_v53 = vpack.c.bf16 %v4381_v51, %v4380_v24  ;;  %v4360_v24 = vld [vmem:[#allocation3 + $0x80] sm:$0xff] }
 0x4ab   : > { %7231 = vmatmul.mubr.f32.gmra.mrb[180].mxu0 %v10596_v36  ;;  %v7939_v36 = vpack.c.bf16 %v4152_v63, %v4151_v0  ;;  %v10795_v0 = vld [vmem:[#allocation3 + $0xa2] sm:$0xff]  ;;  %v10798_v63 = vld [vmem:[#allocation3 + $0xaa] sm:$0xff] }
 0x4ac   : > { %7233 = vmatprep.mubr.f32.mxu0 %v10604_v12  ;;  %7930 = vmatpush3.bf16.msra.mxu0 %v7927_v60  ;;  %v4153_v12 = vld [vmem:[#allocation4 + $0x2b0] sm:$0xff] }
 0x4ad   : > { %7932 = vmatprep.subr.bf16.mxu0 %v7931_v35  ;;  %v4382_v60 = vld [vmem:[#allocation4 + $0x370] sm:$0xff] }
 0x4ae   : > { %v7991_v41 = vpack.c.bf16 %v4383_v40, %v4382_v60  ;;  %v4810_v60 = vld [vmem:[#allocation4 + $0x400] sm:$0xff]  ;;  %v4811_v40 = vld [vmem:[#allocation4 + $0x408] sm:$0xff] }
 0x4af   : > { %7234 = vmatmul.mubr.f32.gmra.mrb[182].mxu0 %v10612_v47  ;;  %v4154_v47 = vld [vmem:[#allocation4 + $0x2b8] sm:$0xff] }
 0x4b0   : > { %7236 = vmatprep.mubr.f32.mxu0 %v11000_v33  ;;  %v7943_v22 = vpack.c.bf16 %v4154_v47, %v4153_v12  ;;  %v4590_v33 = vld [vmem:[#allocation4 + $0x388] sm:$0xff]  ;;  %v4592_v12 = vld [vmem:[#allocation4 + $0x398] sm:$0xff] }
 0x4b1   : > { %v4348_v47 = vld [vmem:[#allocation3 + $0x20] sm:$0xff] }
 0x4b3   : > { %7237 = vmatmul.mubr.f32.gmra.mrb[184].mxu0 %v10632_v25 }
 0x4b4   : > { %7271 = vmatprep.mubr.f32.mxu0 %v10500_v15  ;;  %v4155_v15 = vld [vmem:[#allocation4 + $0x2c0] sm:$0xff] }
 0x4b7   : > { %7272 = vmatmul.mubr.f32.vlgmr.msra.gmra.mrb[166].mxu0 %v10508_v5  ;;  %v7947_v5 = vpack.c.bf16 %v4156_v3, %v4155_v15  ;;  %v4349_v15 = vld [vmem:[#allocation3 + $0x28] sm:$0xff] }
 0x4b8   : > { %7934 = vmatpush3.bf16.msra.mxu0 %v7931_v35  ;;  %7274 = vmatprep.mubr.f32.mxu0 %v10516_v59  ;;  %v4157_v59 = vld [vmem:[#allocation4 + $0x2d0] sm:$0xff]  ;;  %v4589_v35 = vld [vmem:[#allocation4 + $0x380] sm:$0xff] }
 0x4b9   : > { %7936 = vmatprep.subr.bf16.mxu0 %v7935_v62  ;;  %v7995_v28 = vpack.c.bf16 %v4590_v33, %v4589_v35  ;;  %v4593_v3 = vld [vmem:[#allocation4 + $0x3a0] sm:$0xff]  ;;  %v8027_v35 = vpack.c.bf16 %v4811_v40, %v4810_v60  ;;  %v4363_v33 = vld [vmem:[#allocation3 + $0x98] sm:$0xff] }
 0x4ba   : > { %v4581_v60 = vld [vmem:[#allocation3 + $0x81] sm:$0xff] }
 0x4bb   : > { %7275 = vmatmul.mubr.f32.gmra.mrb[168].mxu0 %v10524_v14  ;;  %v7951_v14 = vpack.c.bf16 %v4158_v46, %v4157_v59  ;;  %v4350_v59 = vld [vmem:[#allocation3 + $0x30] sm:$0xff] }
 0x4bc   : > { %7277 = vmatprep.mubr.f32.mxu0 %v10532_v45  ;;  %7938 = vmatpush3.bf16.msra.mxu0 %v7935_v62  ;;  %v4159_v45 = vld [vmem:[#allocation4 + $0x2e0] sm:$0xff]  ;;  %v11002_v62 = vld [vmem:[#allocation20_spill] sm:$0xff] }
 0x4bd   : > { %7940 = vmatprep.subr.bf16.mxu0 %v7939_v36 }
 0x4bf   : > { %7278 = vmatmul.mubr.f32.gmra.mrb[170].mxu0 %v10540_v8  ;;  %v7955_v8 = vpack.c.bf16 %v4160_v49, %v4159_v45  ;;  %v4595_v45 = vld [vmem:[#allocation4 + $0x3b0] sm:$0xff]  ;;  %v4596_v49 = vld [vmem:[#allocation4 + $0x3b8] sm:$0xff] }
 0x4c0   : > { %7280 = vmatprep.mubr.f32.mxu0 %v10550_v32  ;;  %7942 = vmatpush3.bf16.msra.mxu0 %v7939_v36  ;;  %v4161_v32 = vld [vmem:[#allocation4 + $0x2f0] sm:$0xff] }
 0x4c1   : > { %7944 = vmatprep.subr.bf16.mxu0 %v7943_v22  ;;  %v4591_v36 = vld [vmem:[#allocation4 + $0x390] sm:$0xff] }
 0x4c3   : > { %7281 = vmatmul.mubr.f32.gmra.mrb[172].mxu0 %v10559_v48  ;;  %v7959_v48 = vpack.c.bf16 %v4162_v27, %v4161_v32  ;;  %v8007_v32 = vpack.c.bf16 %v4596_v49, %v4595_v45  ;;  %v4353_v27 = vld [vmem:[#allocation3 + $0x48] sm:$0xff]  ;;  %v4815_v45 = vld [vmem:[#allocation4 + $0x428] sm:$0xff] }
 0x4c4   : > { %7283 = vmatprep.mubr.f32.mxu0 %v10567_v4  ;;  %7946 = vmatpush3.bf16.msra.mxu0 %v7943_v22  ;;  %v4368_v4 = vld [vmem:[#allocation4 + $0x300] sm:$0xff]  ;;  %v7999_v22 = vpack.c.bf16 %v4592_v12, %v4591_v36  ;;  %v11003_v36 = vld [vmem:[#allocation17_spill] sm:$0xff] }
 0x4c5   : > { %7948 = vmatprep.subr.bf16.mxu0 %v7947_v5  ;;  %v11004_v12 = vmax.f32 %v11003_v36, 0.0  ;;  %v4571_v49 = vld [vmem:[#allocation3 + $0x31] sm:$0xff]  ;;  %v4588_v36 = vld [vmem:[#allocation3 + $0xb9] sm:$0xff] }
 0x4c7   : > { %7284 = vmatmul.mubr.f32.gmra.mrb[174].mxu0 %v10575_v39  ;;  %v7963_v39 = vpack.c.bf16 %v4369_v10, %v4368_v4  ;;  %v4598_v4 = vld [vmem:[#allocation4 + $0x3c8] sm:$0xff] }
 0x4c8   : > { %7286 = vmatprep.mubr.f32.mxu0 %v10583_v50  ;;  %7950 = vmatpush3.bf16.msra.mxu0 %v7947_v5  ;;  %v10771_v50 = vld [vmem:[#allocation3 + $0xa1] sm:$0xff]  ;;  %v4594_v5 = vld [vmem:[#allocation4 + $0x3a8] sm:$0xff] }
 0x4c9   : > { %7952 = vmatprep.subr.bf16.mxu0 %v7951_v14  ;;  %v8003_v46 = vpack.c.bf16 %v4594_v5, %v4593_v3  ;;  %v4354_v10 = vld [vmem:[#allocation3 + $0x50] sm:$0xff]  ;;  %v4569_v5 = vld [vmem:[#allocation3 + $0x21] sm:$0xff] }
 0x4cb   : > { %7287 = vmatmul.mubr.f32.gmra.mrb[176].mxu0 %v10591_v7  ;;  %v10774_v7 = vld [vmem:[#allocation3 + $0xa9] sm:$0xff] }
 0x4cc   : > { %7289 = vmatprep.mubr.f32.mxu0 %v10599_v2  ;;  %7954 = vmatpush3.bf16.msra.mxu0 %v7951_v14  ;;  %v4370_v2 = vld [vmem:[#allocation4 + $0x310] sm:$0xff] }
 0x4cd   : > { %7956 = vmatprep.subr.bf16.mxu0 %v7955_v8  ;;  %v4351_v14 = vld [vmem:[#allocation3 + $0x38] sm:$0xff] }
 0x4cf   : > { %7290 = vmatmul.mubr.f32.gmra.mrb[178].mxu0 %v10607_v20  ;;  %v4371_v20 = vld [vmem:[#allocation4 + $0x318] sm:$0xff] }
 0x4d0   : > { %7292 = vmatprep.mubr.f32.mxu0 %v10615_v34  ;;  %7958 = vmatpush3.bf16.msra.mxu0 %v7955_v8  ;;  %v7967_v34 = vpack.c.bf16 %v4371_v20, %v4370_v2  ;;  %v4352_v8 = vld [vmem:[#allocation3 + $0x40] sm:$0xff]  ;;  %v4355_v2 = vld [vmem:[#allocation3 + $0x58] sm:$0xff] }
 0x4d1   : > { %7960 = vmatprep.subr.bf16.mxu0 %v7959_v48  ;;  %v4599_v20 = vld [vmem:[#allocation4 + $0x3d0] sm:$0xff] }
 0x4d3   : > { %7293 = vmatmul.mubr.f32.gmra.mrb[180].mxu0 %v10624_v37  ;;  %v4372_v37 = vld [vmem:[#allocation4 + $0x320] sm:$0xff] }
 0x4d4   : > { %7295 = vmatprep.mubr.f32.mxu0 %v10635_v61  ;;  %7962 = vmatpush3.bf16.msra.mxu0 %v7959_v48  ;;  %v7971_v61 = vpack.c.bf16 %v4373_v23, %v4372_v37  ;;  %v4597_v48 = vld [vmem:[#allocation4 + $0x3c0] sm:$0xff]  ;;  %v4356_v37 = vld [vmem:[#allocation3 + $0x60] sm:$0xff] }
 0x4d5   : > { %7964 = vmatprep.subr.bf16.mxu0 %v7963_v39 }
 0x4d7   : > { %7296 = vmatmul.mubr.f32.gmra.mrb[182].mxu0 %v10648_v9  ;;  %v4374_v9 = vld [vmem:[#allocation4 + $0x330] sm:$0xff] }
 0x4d8   : > { %7298 = vmatprep.mubr.f32.mxu0 %v10771_v50  ;;  %v7975_v42 = vpack.c.bf16 %v4375_v1, %v4374_v9  ;;  %v4357_v9 = vld [vmem:[#allocation3 + $0x68] sm:$0xff] }
 0x4d9   : > { %v4601_v1 = vld [vmem:[#allocation4 + $0x3e0] sm:$0xff] }
 0x4db   : > { %7299 = vmatmul.mubr.f32.gmra.mrb[184].mxu0 %v10774_v7 }
 0x4dc   : > { %7333 = vmatprep.mubr.f32.mxu0 %v10678_v58  ;;  %v4376_v58 = vld [vmem:[#allocation4 + $0x340] sm:$0xff] }
 0x4df   : > { %7334 = vmatmul.mubr.f32.vlgmr.msra.gmra.mrb[166].mxu0 %v10681_v30  ;;  %v7979_v30 = vpack.c.bf16 %v4377_v11, %v4376_v58  ;;  %v4358_v11 = vld [vmem:[#allocation3 + $0x70] sm:$0xff] }
 0x4e0   : > { %7966 = vmatpush3.bf16.msra.mxu0 %v7963_v39  ;;  %7336 = vmatprep.mubr.f32.mxu0 %v10684_v19  ;;  %v8011_v39 = vpack.c.bf16 %v4598_v4, %v4597_v48  ;;  %v4573_v48 = vld [vmem:[#allocation3 + $0x41] sm:$0xff] }
 0x4e1   : > { %7968 = vmatprep.subr.bf16.mxu0 %v7967_v34 }
 0x4e3   : > { %7337 = vmatmul.mubr.f32.gmra.mrb[168].mxu0 %v10687_v21 }
 0x4e4   : > { %7339 = vmatprep.mubr.f32.mxu0 %v10690_v6  ;;  %7970 = vmatpush3.bf16.msra.mxu0 %v7967_v34  ;;  %v4600_v34 = vld [vmem:[#allocation4 + $0x3d8] sm:$0xff] }
 0x4e5   : > { %7972 = vmatprep.subr.bf16.mxu0 %v7971_v61  ;;  %v8015_v23 = vpack.c.bf16 %v4600_v34, %v4599_v20  ;;  %v4575_v20 = vld [vmem:[#allocation3 + $0x51] sm:$0xff] }
 0x4e7   : > { %7340 = vmatmul.mubr.f32.gmra.mrb[170].mxu0 %v10693_v29 }
 0x4e8   : > { %7342 = vmatprep.mubr.f32.mxu0 %v10696_v13  ;;  %7974 = vmatpush3.bf16.msra.mxu0 %v7971_v61 }
 0x4e9   : > { %7976 = vmatprep.subr.bf16.mxu0 %v7975_v42 }
 0x4eb   : > { %7343 = vmatmul.mubr.f32.gmra.mrb[172].mxu0 %v10699_v44 }
 0x4ec   : > { %7345 = vmatprep.mubr.f32.mxu0 %v10702_v18  ;;  %7978 = vmatpush3.bf16.msra.mxu0 %v7975_v42  ;;  %v4602_v42 = vld [vmem:[#allocation4 + $0x3e8] sm:$0xff] }
 0x4ed   : > { %7980 = vmatprep.subr.bf16.mxu0 %v7979_v30 }
 0x4ef   : > { %7346 = vmatmul.mubr.f32.gmra.mrb[174].mxu0 %v10705_v16 }
 0x4f0   : > { %7348 = vmatprep.mubr.f32.mxu0 %v10708_v57  ;;  %7982 = vmatpush3.bf16.msra.mxu0 %v7979_v30  ;;  %v8019_v30 = vpack.c.bf16 %v4602_v42, %v4601_v1  ;;  %v4577_v1 = vld [vmem:[#allocation3 + $0x61] sm:$0xff] }
 0x4f1   : > { %7984 = vmatprep.subr.bf16.mxu0 %v7983_v38 }
 0x4f3   : > { %7349 = vmatmul.mubr.f32.gmra.mrb[176].mxu0 %v10711_v17 }
 0x4f4   : > { %7351 = vmatprep.mubr.f32.mxu0 %v10714_v55  ;;  %7986 = vmatpush3.bf16.msra.mxu0 %v7983_v38  ;;  %v4604_v38 = vld [vmem:[#allocation4 + $0x3f8] sm:$0xff] }
 0x4f5   : > { %7988 = vmatprep.subr.bf16.mxu0 %v7987_v53  ;;  %v8023_v51 = vpack.c.bf16 %v4604_v38, %v4603_v56  ;;  %v4579_v56 = vld [vmem:[#allocation3 + $0x71] sm:$0xff] }
 0x4f7   : > { %7352 = vmatmul.mubr.f32.gmra.mrb[178].mxu0 %v10717_v31 }
 0x4f8   : > { %7354 = vmatprep.mubr.f32.mxu0 %v10720_v52  ;;  %7990 = vmatpush3.bf16.msra.mxu0 %v7987_v53  ;;  %v4361_v53 = vld [vmem:[#allocation3 + $0x88] sm:$0xff] }
 0x4f9   : > { %7992 = vmatprep.subr.bf16.mxu0 %v7991_v41 }
 0x4fb   : > { %7355 = vmatmul.mubr.f32.gmra.mrb[180].mxu0 %v10723_v26 }
 0x4fc   : > { %7357 = vmatprep.mubr.f32.mxu0 %v11001_v54  ;;  %7994 = vmatpush3.bf16.msra.mxu0 %v7991_v41  ;;  %v4362_v41 = vld [vmem:[#allocation3 + $0x90] sm:$0xff] }
 0x4fd   : > { %7996 = vmatprep.subr.bf16.mxu0 %v7995_v28 }
 0x4ff   : > { %7358 = vmatmul.mubr.f32.gmra.mrb[182].mxu0 %v11002_v62 }
 0x500   : > { %7360 = vmatprep.mubr.f32.mxu0 %v10795_v0 }
 0x503   : > { %7361 = vmatmul.mubr.f32.gmra.mrb[184].mxu0 %v10798_v63 }
 0x504   : > { %7395 = vmatprep.mubr.f32.mxu0 %v4348_v47  ;;  %v4812_v47 = vld [vmem:[#allocation4 + $0x410] sm:$0xff] }
 0x507   : > { %7396 = vmatmul.mubr.f32.vlgmr.msra.gmra.mrb[166].mxu0 %v4349_v15  ;;  %v11005_v15 = vld [vmem:[#allocation18_spill] sm:$0xff] }
 0x508   : > { %7998 = vmatpush3.bf16.msra.mxu0 %v7995_v28  ;;  %7398 = vmatprep.mubr.f32.mxu0 %v4350_v59  ;;  %v4364_v28 = vld [vmem:[#allocation3 + $0xa0] sm:$0xff]  ;;  %v11006_v3 = vmax.f32 %v11005_v15, 0.0 }
 0x509   : > { %8000 = vmatprep.subr.bf16.mxu0 %v7999_v22 }
 0x50b   : > { %7399 = vmatmul.mubr.f32.gmra.mrb[168].mxu0 %v4351_v14  ;;  %v4814_v14 = vld [vmem:[#allocation4 + $0x420] sm:$0xff] }
 0x50c   : > { %7401 = vmatprep.mubr.f32.mxu0 %v4352_v8  ;;  %8002 = vmatpush3.bf16.msra.mxu0 %v7999_v22  ;;  %v4813_v22 = vld [vmem:[#allocation4 + $0x418] sm:$0xff] }
 0x50d   : > { %8004 = vmatprep.subr.bf16.mxu0 %v8003_v46  ;;  %v8031_v59 = vpack.c.bf16 %v4813_v22, %v4812_v47  ;;  %v4572_v8 = vld [vmem:[#allocation3 + $0x39] sm:$0xff] }
 0x50f   : > { %7402 = vmatmul.mubr.f32.gmra.mrb[170].mxu0 %v4353_v27  ;;  %v4817_v27 = vld [vmem:[#allocation4 + $0x438] sm:$0xff] }
 0x510   : > { %7404 = vmatprep.mubr.f32.mxu0 %v4354_v10  ;;  %8006 = vmatpush3.bf16.msra.mxu0 %v8003_v46  ;;  %v4570_v46 = vld [vmem:[#allocation3 + $0x29] sm:$0xff] }
 0x511   : > { %8008 = vmatprep.subr.bf16.mxu0 %v8007_v32  ;;  %v4574_v10 = vld [vmem:[#allocation3 + $0x49] sm:$0xff] }
 0x513   : > { %7405 = vmatmul.mubr.f32.gmra.mrb[172].mxu0 %v4355_v2  ;;  %v4819_v2 = vld [vmem:[#allocation4 + $0x448] sm:$0xff] }
 0x514   : > { %7407 = vmatprep.mubr.f32.mxu0 %v4356_v37  ;;  %8010 = vmatpush3.bf16.msra.mxu0 %v8007_v32  ;;  %v4816_v32 = vld [vmem:[#allocation4 + $0x430] sm:$0xff] }
 0x515   : > { %8012 = vmatprep.subr.bf16.mxu0 %v8011_v39  ;;  %v8039_v4 = vpack.c.bf16 %v4817_v27, %v4816_v32  ;;  %v4576_v37 = vld [vmem:[#allocation3 + $0x59] sm:$0xff] }
 0x516   : > { %v10801_v61 = vpop.f32.mrb[86].mxu1 }
 0x517   : > { %v10803_v58 = vpop.f32.mrb[87].mxu1  ;;  %7408 = vmatmul.mubr.f32.gmra.mrb[174].mxu0 %v4357_v9  ;;  %v4821_v9 = vld [vmem:[#allocation4 + $0x458] sm:$0xff] }
 0x518   : > { %7410 = vmatprep.mubr.f32.mxu0 %v4358_v11  ;;  %8014 = vmatpush3.bf16.msra.mxu0 %v8011_v39  ;;  %v4818_v39 = vld [vmem:[#allocation4 + $0x440] sm:$0xff] }
 0x519   : > { %8016 = vmatprep.subr.bf16.mxu0 %v8015_v23  ;;  %v8043_v34 = vpack.c.bf16 %v4819_v2, %v4818_v39  ;;  %v4578_v11 = vld [vmem:[#allocation3 + $0x69] sm:$0xff] }
 0x51b   : > { %7411 = vmatmul.mubr.f32.gmra.mrb[176].mxu0 %v4359_v43  ;;  %v4823_v43 = vld [vmem:[#allocation4 + $0x468] sm:$0xff] }
 0x51c   : > { %7413 = vmatprep.mubr.f32.mxu0 %v4360_v24  ;;  %8018 = vmatpush3.bf16.msra.mxu0 %v8015_v23  ;;  %v4820_v23 = vld [vmem:[#allocation4 + $0x450] sm:$0xff] }
 0x51d   : > { %8020 = vmatprep.subr.bf16.mxu0 %v8019_v30  ;;  %v8047_v42 = vpack.c.bf16 %v4821_v9, %v4820_v23  ;;  %v4580_v24 = vld [vmem:[#allocation3 + $0x79] sm:$0xff] }
 0x51f   : > { %7414 = vmatmul.mubr.f32.gmra.mrb[178].mxu0 %v4361_v53  ;;  %v4825_v53 = vld [vmem:[#allocation4 + $0x478] sm:$0xff] }
 0x520   : > { %7416 = vmatprep.mubr.f32.mxu0 %v4362_v41  ;;  %8022 = vmatpush3.bf16.msra.mxu0 %v8019_v30  ;;  %v4822_v30 = vld [vmem:[#allocation4 + $0x460] sm:$0xff] }
 0x521   : > { %8024 = vmatprep.subr.bf16.mxu0 %v8023_v51  ;;  %v8051_v38 = vpack.c.bf16 %v4823_v43, %v4822_v30  ;;  %v4582_v41 = vld [vmem:[#allocation3 + $0x89] sm:$0xff] }
 0x523   : > { %7417 = vmatmul.mubr.f32.gmra.mrb[180].mxu0 %v4363_v33  ;;  %v4584_v33 = vld [vmem:[#allocation3 + $0x99] sm:$0xff] }
 0x524   : > { %7419 = vmatprep.mubr.f32.mxu0 %v4364_v28  ;;  %8026 = vmatpush3.bf16.msra.mxu0 %v8023_v51  ;;  %v4824_v51 = vld [vmem:[#allocation4 + $0x470] sm:$0xff] }
 0x525   : > { %8028 = vmatprep.subr.bf16.mxu0 %v8027_v35  ;;  %v8055_v40 = vpack.c.bf16 %v4825_v53, %v4824_v51  ;;  %v4587_v28 = vld [vmem:[#allocation3 + $0xb1] sm:$0xff] }
 0x527   : > { %7420 = vmatmul.mubr.f32.gmra.mrb[182].mxu0 %v10632_v25  ;;  %v8035_v25 = vpack.c.bf16 %v4815_v45, %v4814_v14 }
 0x528   : > { %7422 = vmatprep.mubr.f32.mxu0 %v11004_v12 }
 0x52b   : > { %7423 = vmatmul.mubr.f32.gmra.mrb[184].mxu0 %v11006_v3 }
 0x52c   : > { %7457 = vmatprep.mubr.f32.mxu0 %v4569_v5 }
 0x52f   : > { %7458 = vmatmul.mubr.f32.vlgmr.msra.gmra.mrb[166].mxu0 %v4570_v46 }
 0x530   : > { %8030 = vmatpush3.bf16.msra.mxu0 %v8027_v35  ;;  %7460 = vmatprep.mubr.f32.mxu0 %v4571_v49  ;;  %v4583_v35 = vld [vmem:[#allocation3 + $0x91] sm:$0xff] }
 0x531   : > { %8032 = vmatprep.subr.bf16.mxu0 %v8031_v59 }
 0x533   : > { %7461 = vmatmul.mubr.f32.gmra.mrb[168].mxu0 %v4572_v8 }
 0x534   : > { %7463 = vmatprep.mubr.f32.mxu0 %v4573_v48  ;;  %8034 = vmatpush3.bf16.msra.mxu0 %v8031_v59 }
 0x535   : > { %8036 = vmatprep.subr.bf16.mxu0 %v8035_v25 }
 0x537   : > { %7464 = vmatmul.mubr.f32.gmra.mrb[170].mxu0 %v4574_v10 }
 0x538   : > { %7466 = vmatprep.mubr.f32.mxu0 %v4575_v20  ;;  %8038 = vmatpush3.bf16.msra.mxu0 %v8035_v25 }
 0x539   : > { %8040 = vmatprep.subr.bf16.mxu0 %v8039_v4 }
 0x53b   : > { %7467 = vmatmul.mubr.f32.gmra.mrb[172].mxu0 %v4576_v37 }
 0x53c   : > { %7469 = vmatprep.mubr.f32.mxu0 %v4577_v1  ;;  %8042 = vmatpush3.bf16.msra.mxu0 %v8039_v4 }
 0x53d   : > { %8044 = vmatprep.subr.bf16.mxu0 %v8043_v34 }
 0x53f   : > { %7470 = vmatmul.mubr.f32.gmra.mrb[174].mxu0 %v4578_v11 }
 0x540   : > { %7472 = vmatprep.mubr.f32.mxu0 %v4579_v56  ;;  %8046 = vmatpush3.bf16.msra.mxu0 %v8043_v34 }
 0x541   : > { %8048 = vmatprep.subr.bf16.mxu0 %v8047_v42 }
 0x543   : > { %7473 = vmatmul.mubr.f32.gmra.mrb[176].mxu0 %v4580_v24 }
 0x544   : > { %7475 = vmatprep.mubr.f32.mxu0 %v4581_v60  ;;  %8050 = vmatpush3.bf16.msra.mxu0 %v8047_v42 }
 0x545   : > { %8052 = vmatprep.subr.bf16.mxu0 %v8051_v38 }
 0x547   : > { %7476 = vmatmul.mubr.f32.gmra.mrb[178].mxu0 %v4582_v41 }
 0x548   : > { %7478 = vmatprep.mubr.f32.mxu0 %v4583_v35  ;;  %8054 = vmatpush3.bf16.msra.mxu0 %v8051_v38 }
 0x549   : > { %8056 = vmatprep.subr.bf16.mxu0 %v8055_v40 }
 0x54b   : > { %7479 = vmatmul.mubr.f32.gmra.mrb[180].mxu0 %v4584_v33 }
 0x54c   : > { %7481 = vmatprep.mubr.f32.mxu0 %v10771_v50  ;;  %8058 = vmatpush3.bf16.msra.mxu0 %v8055_v40 }
 0x54f   : > { %7482 = vmatmul.mubr.f32.gmra.mrb[182].mxu0 %v10774_v7 }
 0x550   : > { %7484 = vmatprep.mubr.f32.mxu0 %v4587_v28 }
 0x553   : > { %7485 = vmatmul.mubr.f32.gmra.mrb[184].mxu0 %v4588_v36 }
 0x554   : > { %7519 = vmatprep.mubr.f32.mxu0 %v10684_v19  ;;  %v4808_v19 = vld [vmem:[#allocation3 + $0xb2] sm:$0xff] }
 0x557   : > { %7520 = vmatmul.mubr.f32.vlgmr.msra.gmra.mrb[166].mxu0 %v10687_v21  ;;  %v4809_v21 = vld [vmem:[#allocation3 + $0xba] sm:$0xff] }
 0x558   : > { %7522 = vmatprep.mubr.f32.mxu0 %v10690_v6  ;;  %v5204_v6 = vld [vmem:[%s10896_s6] ss:$0 sm:$0xff] }
 0x55b   : > { %7523 = vmatmul.mubr.f32.gmra.mrb[168].mxu0 %v10693_v29 }
 0x55c   : > { %7525 = vmatprep.mubr.f32.mxu0 %v10696_v13 }
 0x55f   : > { %7526 = vmatmul.mubr.f32.gmra.mrb[170].mxu0 %v10699_v44 }
 0x560   : > { %7528 = vmatprep.mubr.f32.mxu0 %v10702_v18 }
 0x563   : > { %7529 = vmatmul.mubr.f32.gmra.mrb[172].mxu0 %v10705_v16 }
 0x564   : > { %7531 = vmatprep.mubr.f32.mxu0 %v10708_v57 }
 0x567   : > { %7532 = vmatmul.mubr.f32.gmra.mrb[174].mxu0 %v10711_v17 }
 0x568   : > { %7534 = vmatprep.mubr.f32.mxu0 %v10714_v55 }
 0x56b   : > { %7535 = vmatmul.mubr.f32.gmra.mrb[176].mxu0 %v10717_v31 }
 0x56c   : > { %7537 = vmatprep.mubr.f32.mxu0 %v10720_v52 }
 0x56f   : > { %7538 = vmatmul.mubr.f32.gmra.mrb[178].mxu0 %v10723_v26 }
 0x570   : > { %7540 = vmatprep.mubr.f32.mxu0 %v11001_v54 }
 0x573   : > { %7541 = vmatmul.mubr.f32.gmra.mrb[180].mxu0 %v11002_v62 }
 0x574   : > { %7543 = vmatprep.mubr.f32.mxu0 %v10795_v0 }
 0x577   : > { %7544 = vmatmul.mubr.f32.gmra.mrb[182].mxu0 %v10798_v63 }
 0x578   : > { %7546 = vmatprep.mubr.f32.mxu0 %v4808_v19 }
 0x57b   : > { %7547 = vmatmul.mubr.f32.gmra.mrb[184].mxu0 %v4809_v21 }
 0x62a   : > { %v7521_v29 = vpop.f32.mrb[166].mxu0 }
 0x62b   : > { %v5019_v13 = vadd.f32 %v7521_v29, %v5204_v6  ;;  %v4892_v44 = vpop.f32.mrb[167].mxu0 }
 0x62c   : > { %v5018_v18 = vadd.f32 %v5204_v6, %v4892_v44 }
 0x62d   : > { %5040 = vst.msk [vmem:[%s10837_s11 + $0x8] sm:$0xff] %vm5038_vm2, %v5019_v13 }
 0x62e   : > { %5039 = vst.msk [vmem:[%s10837_s11] sm:$0xff] %vm5038_vm2, %v5018_v18  ;;  %v7524_v16 = vpop.f32.mrb[168].mxu0 }
 0x62f   : > { %v5021_v57 = vadd.f32 %v7524_v16, %v5204_v6  ;;  %v4902_v17 = vpop.f32.mrb[169].mxu0 }
 0x630   : > { %v5020_v55 = vadd.f32 %v5204_v6, %v4902_v17 }
 0x631   : > { %5042 = vst.msk [vmem:[%s10837_s11 + $0x18] sm:$0xff] %vm5038_vm2, %v5021_v57 }
 0x632   : > { %5041 = vst.msk [vmem:[%s10837_s11 + $0x10] sm:$0xff] %vm5038_vm2, %v5020_v55  ;;  %v7527_v31 = vpop.f32.mrb[170].mxu0 }
 0x633   : > { %v5023_v52 = vadd.f32 %v7527_v31, %v5204_v6  ;;  %v4912_v26 = vpop.f32.mrb[171].mxu0 }
 0x634   : > { %v5022_v50 = vadd.f32 %v5204_v6, %v4912_v26 }
 0x635   : > { %5044 = vst.msk [vmem:[%s10837_s11 + $0x28] sm:$0xff] %vm5038_vm2, %v5023_v52 }
 0x636   : > { %5043 = vst.msk [vmem:[%s10837_s11 + $0x20] sm:$0xff] %vm5038_vm2, %v5022_v50  ;;  %v7530_v7 = vpop.f32.mrb[172].mxu0 }
 0x637   : > { %v5025_v54 = vadd.f32 %v7530_v7, %v5204_v6  ;;  %v4922_v62 = vpop.f32.mrb[173].mxu0 }
 0x638   : > { %v5024_v0 = vadd.f32 %v5204_v6, %v4922_v62 }
 0x639   : > { %5046 = vst.msk [vmem:[%s10837_s11 + $0x38] sm:$0xff] %vm5038_vm2, %v5025_v54 }
 0x63a   : > { %5045 = vst.msk [vmem:[%s10837_s11 + $0x30] sm:$0xff] %vm5038_vm2, %v5024_v0  ;;  %v7533_v63 = vpop.f32.mrb[174].mxu0 }
 0x63b   : > { %v5027_v12 = vadd.f32 %v7533_v63, %v5204_v6  ;;  %v4932_v47 = vpop.f32.mrb[175].mxu0 }
 0x63c   : > { %v5026_v22 = vadd.f32 %v5204_v6, %v4932_v47 }
 0x63d   : > { %5048 = vst.msk [vmem:[%s10837_s11 + $0x48] sm:$0xff] %vm5038_vm2, %v5027_v12 }
 0x63e   : > { %5047 = vst.msk [vmem:[%s10837_s11 + $0x40] sm:$0xff] %vm5038_vm2, %v5026_v22  ;;  %v7536_v15 = vpop.f32.mrb[176].mxu0 }
 0x63f   : > { %v5029_v3 = vadd.f32 %v7536_v15, %v5204_v6  ;;  %v4942_v5 = vpop.f32.mrb[177].mxu0 }
 0x640   : > { %v5028_v59 = vadd.f32 %v5204_v6, %v4942_v5 }
 0x641   : > { %5050 = vst.msk [vmem:[%s10837_s11 + $0x58] sm:$0xff] %vm5038_vm2, %v5029_v3 }
 0x642   : > { %5049 = vst.msk [vmem:[%s10837_s11 + $0x50] sm:$0xff] %vm5038_vm2, %v5028_v59  ;;  %v7539_v46 = vpop.f32.mrb[178].mxu0 }
 0x643   : > { %v5031_v14 = vadd.f32 %v7539_v46, %v5204_v6  ;;  %v4952_v45 = vpop.f32.mrb[179].mxu0 }
 0x644   : > { %v5030_v49 = vadd.f32 %v5204_v6, %v4952_v45 }
 0x645   : > { %5052 = vst.msk [vmem:[%s10837_s11 + $0x68] sm:$0xff] %vm5038_vm2, %v5031_v14 }
 0x646   : > { %5051 = vst.msk [vmem:[%s10837_s11 + $0x60] sm:$0xff] %vm5038_vm2, %v5030_v49  ;;  %v7542_v25 = vpop.f32.mrb[180].mxu0 }
 0x647   : > { %v5033_v8 = vadd.f32 %v7542_v25, %v5204_v6  ;;  %v4962_v32 = vpop.f32.mrb[181].mxu0 }
 0x648   : > { %v5032_v27 = vadd.f32 %v5204_v6, %v4962_v32 }
 0x649   : > { %5054 = vst.msk [vmem:[%s10837_s11 + $0x78] sm:$0xff] %vm5038_vm2, %v5033_v8 }
 0x64a   : > { %5053 = vst.msk [vmem:[%s10837_s11 + $0x70] sm:$0xff] %vm5038_vm2, %v5032_v27  ;;  %v7545_v48 = vpop.f32.mrb[182].mxu0 }
 0x64b   : > { %v5035_v4 = vadd.f32 %v7545_v48, %v5204_v6  ;;  %v4972_v10 = vpop.f32.mrb[183].mxu0 }
 0x64c   : > { %v5034_v39 = vadd.f32 %v5204_v6, %v4972_v10 }
 0x64d   : > { %5056 = vst.msk [vmem:[%s10837_s11 + $0x88] sm:$0xff] %vm5038_vm2, %v5035_v4 }
 0x64e   : > { %5055 = vst.msk [vmem:[%s10837_s11 + $0x80] sm:$0xff] %vm5038_vm2, %v5034_v39  ;;  %v7548_v2 = vpop.f32.mrb[184].mxu0 }
 0x64f   : > { %v8079_v20 = vadd.f32 %v7548_v2, %v10801_v61  ;;  %v4982_v34 = vpop.f32.mrb[185].mxu0 }
 0x650   : > { %v8080_v37 = vadd.f32 %v4982_v34, %v10803_v58 }
 0x651   : > { %v5037_v23 = vadd.f32 %v8079_v20, %v5204_v6 }
 0x652   : > { %v5036_v9 = vadd.f32 %v8080_v37, %v5204_v6 }
 0x653   : > { %5058 = vst.msk [vmem:[%s10837_s11 + $0x98] sm:$0xff] %vm5038_vm2, %v5037_v23 }
 0x654   : > { %5057 = vst.msk [vmem:[%s10837_s11 + $0x90] sm:$0xff] %vm5038_vm2, %v5036_v9 }
 0x655 PF: > { %s18_s26 = sadd.s32 1, %s8335_s26   ;;  %s11007_s24 = smov %s8331_s25 }
 0x656   : > { %p15_p4 = scmp.ge.s32.totalorder %s18_s26, 4   ;;  %s11008_s25 = smov %s11010_s28 }
 0x658   :  { %17 = sbr.rel (!%p15_p4) target bundleno = 2 (0x2), region = 83 }
 0x65f   :  { %5088 = vsyncpa [#allocation5], 1 }
 0x660   :  { %5090 = vsyncpa [#allocation5 + $0x1], 1 }

</bundles_post_ra>
